<compile_context>
chip_gen: v5e
topology: v5e:2x2
jax: 0.10.0
libtpu: 0.0.40
codegen_flags: <defaults>
</compile_context>

<pallas_src>
import functools
import math

import jax
import jax.numpy as jnp
from jax.experimental import pallas as pl
from jax.experimental.pallas import tpu as pltpu


def schema_encoder_kernel(x_ref, a_ref, at_ref, wg_ref, wf_ref, bf_ref, o_ref,
                          *, matmul_dtype):
    """One grid step processes TB batch elements (folded matmul M = TB*N rows)."""
    tb, n, _ = a_ref.shape
    x = x_ref[...]             # (TB*N, F_IN)
    a = a_ref[...]             # (TB, N, N)  A    -- only feeds the row-sum
    at = at_ref[...]           # (TB, N, N)  A^T  -- feeds the MXU aggregation
    wg = wg_ref[...]           # (F_IN, F_OUT)   GCN weight
    wf = wf_ref[...]           # (F_OUT, HID)    fc weight (already transposed)
    bf = bf_ref[...]           # (1, HID)        fc bias

    # support = X @ W_gcn with all TB examples folded into the MXU M dimension.
    support = jnp.dot(x.astype(matmul_dtype), wg.astype(matmul_dtype),
                      preferred_element_type=jnp.float32)          # (TB*N, F_OUT)
    f_out = support.shape[-1]
    support = support.reshape(tb, n, f_out)     # leading-dim split only

    # gen_adj fused:  (D A^T D) S == d * (A^T (d * S)),  d = rowsum(A)^-0.5.
    # Row-sum taken over A's minor axis so d is already per-row (sublane)
    # oriented -- no in-kernel relayout needed.
    d = jax.lax.rsqrt(jnp.sum(a, axis=2, keepdims=True))           # (TB, N, 1)
    ds = d * support                                                # (TB, N, F_OUT)
    # at is pre-transposed in the wrapper: contraction on its minor dim and on
    # ds's second-minor dim = canonical batched matmul for the MXU.
    h = d * jnp.einsum("bkn,bnf->bkf", at, ds,
                       preferred_element_type=jnp.float32)          # (TB, N, F_OUT)
    h = jnp.maximum(h, 0.0)                                          # GCN ReLU (bias=False)

    # fc + ReLU, again with M = TB*N folded; output is lane-dense (HID = 128).
    h2 = h.reshape(tb * n, f_out)
    y = jnp.dot(h2.astype(matmul_dtype), wf.astype(matmul_dtype),
                preferred_element_type=jnp.float32) + bf
    o_ref[...] = jnp.maximum(y, 0.0)


def _num_tensorcores():
    """TensorCores per device: 1 on v5e/v6e, 2 on v7x (and megacore chips)."""
    try:
        info = pltpu.get_tpu_info()
        for attr in ("num_cores", "core_count", "num_tensorcores",
                     "tensorcore_count"):
            val = getattr(info, attr, None)
            if isinstance(val, int) and val > 0:
                return val
    except Exception:
        pass
    try:
        kind = jax.devices()[0].device_kind.lower()
    except Exception:
        return 1
    if any(tag in kind for tag in ("v7", "v4", "v5p", "v5 p")):
        return 2
    return 1


def _pick_grid(batch, n_nodes, f_in, f_out, hid, num_cores,
               target_m=2048, vmem_budget=24 << 20):
    """Return (grid_steps, tb) with grid_steps * tb == batch.

    Single-core chips: 1 grid step (no ~600-cycle per-step overhead to pay
    twice).  Multi-core chips: an even multiple of num_cores so every core
    gets equal work.  Per-step folded rows tb*N capped at target_m, plus a
    coarse VMEM guard (double-buffered streamed blocks + intermediates)."""
    def step_bytes(tb):
        rows = tb * n_nodes
        streamed = rows * f_in + 2 * tb * n_nodes * n_nodes + rows * hid
        interm = 3 * rows * f_out
        return 4 * (2 * streamed + interm)

    cands = []
    for steps in range(1, batch + 1):
        if batch % steps:
            continue
        tb = batch // steps
        rows = tb * n_nodes
        if steps > 1 and rows % 8 != 0:
            continue                        # sublane alignment for folded blocks
        cands.append((steps, tb, rows))
    if num_cores > 1:
        even = [c for c in cands if c[0] % num_cores == 0]
        if even:
            cands = even
    for steps, tb, rows in cands:           # ascending steps == descending M
        if rows <= target_m and step_bytes(tb) <= vmem_budget:
            return steps, tb
    steps, tb, _ = cands[-1]                # fall back to smallest per-step M
    return steps, tb


def schema_encoder(schema_inputs, schema_adjs, w_gcn, w_fc, b_fc,
                   *, tb=None, matmul_dtype=jnp.float32):
    """schema_inputs: (B, N, F_IN); schema_adjs: (B, N, N) -> (B, N, HID)."""
    B, N, F_IN = schema_inputs.shape
    F_OUT = w_gcn.shape[1]
    HID = w_fc.shape[1]
    assert schema_adjs.shape == (B, N, N)

    num_cores = _num_tensorcores()
    if tb is None:
        grid, tb = _pick_grid(B, N, F_IN, F_OUT, HID, num_cores)
    else:
        assert B % tb == 0, (B, tb)
        grid = B // tb

    x_flat = schema_inputs.reshape(B * N, F_IN)      # contiguous, wrapper-side only
    adjs_t = jnp.swapaxes(schema_adjs, 1, 2)         # A^T per example (wrapper-side)
    b_fc2d = b_fc.reshape(1, HID)

    flops = 2 * B * N * (F_IN * F_OUT + N * F_OUT + F_OUT * HID)
    bytes_accessed = 4 * (B * N * F_IN + 2 * B * N * N + F_IN * F_OUT
                          + F_OUT * HID + HID + B * N * HID)

    kernel = functools.partial(schema_encoder_kernel, matmul_dtype=matmul_dtype)

    out_flat = pl.pallas_call(
        kernel,
        out_shape=jax.ShapeDtypeStruct((B * N, HID), jnp.float32),
        grid_spec=pltpu.PrefetchScalarGridSpec(
            num_scalar_prefetch=0,
            grid=(grid,),
            in_specs=[
                pl.BlockSpec((tb * N, F_IN), lambda i: (i, 0)),     # X rows
                pl.BlockSpec((tb, N, N), lambda i: (i, 0, 0)),      # A   (row-sums)
                pl.BlockSpec((tb, N, N), lambda i: (i, 0, 0)),      # A^T (aggregation)
                pl.BlockSpec((F_IN, F_OUT), lambda i: (0, 0)),      # W_gcn (constant)
                pl.BlockSpec((F_OUT, HID), lambda i: (0, 0)),       # W_fc  (constant)
                pl.BlockSpec((1, HID), lambda i: (0, 0)),           # b_fc  (constant)
            ],
            out_specs=pl.BlockSpec((tb * N, HID), lambda i: (i, 0)),
        ),
        compiler_params=pltpu.CompilerParams(
            dimension_semantics=("parallel",)),
        cost_estimate=pl.CostEstimate(
            flops=flops, transcendentals=B * N, bytes_accessed=bytes_accessed),
    )(x_flat, schema_adjs, adjs_t, w_gcn, w_fc, b_fc2d)

    return out_flat.reshape(B, N, HID)


def reference(schema_inputs, schema_adjs, w_gcn, w_fc, b_fc):
    """Pure-JAX reference mirroring the PyTorch per-example loop."""
    outs = []
    for i in range(schema_inputs.shape[0]):
        x = schema_inputs[i]
        a = schema_adjs[i]
        support = x @ w_gcn
        d = jnp.power(jnp.sum(a, axis=1), -0.5)
        D = jnp.diag(d)
        adj_nor = (a @ D).T @ D
        h = jnp.maximum(adj_nor @ support, 0.0)
        y = jnp.maximum(h @ w_fc + b_fc, 0.0)
        outs.append(y)
    return jnp.stack(outs)


if __name__ == "__main__":
    # Small synthetic shapes consistent with the module's forward.
    B, N = 32, 16                    # batch, nodes -> grid=1/M=512 (1 core) or grid=2/M=256 (2 cores)
    F_IN, F_OUT, HID = 64, 64, 128   # GCN in/out features, attention hidden size

    key = jax.random.PRNGKey(0)
    k_x, k_a, k_wg, k_wf, k_bf = jax.random.split(key, 5)

    # Inputs.
    schema_inputs = jax.random.normal(k_x, (B, N, F_IN), dtype=jnp.float32)
    # Adjacency: random (non-symmetric, to exercise the A^T semantics) 0/1 plus
    # self-loops (A + I); strictly positive rowsums so rsqrt is well-defined.
    raw = (jax.random.uniform(k_a, (B, N, N)) > 0.6).astype(jnp.float32)
    schema_adjs = jnp.clip(raw + jnp.eye(N, dtype=jnp.float32)[None], 0.0, 1.0)

    # Deterministic parameter init (mirrors shapes from __init__).
    stdv = 1.0 / math.sqrt(F_OUT)
    w_gcn = jax.random.uniform(k_wg, (F_IN, F_OUT), minval=-stdv, maxval=stdv,
                               dtype=jnp.float32)
    bound = 1.0 / math.sqrt(F_OUT)
    # nn.Linear(F_OUT, HID): stored as (F_OUT, HID) i.e. weight.T for right-multiply.
    w_fc = jax.random.uniform(k_wf, (F_OUT, HID), minval=-bound, maxval=bound,
                              dtype=jnp.float32)
    b_fc = jax.random.uniform(k_bf, (HID,), minval=-bound, maxval=bound,
                              dtype=jnp.float32)

    ref = reference(schema_inputs, schema_adjs, w_gcn, w_fc, b_fc)

    # Exact-precision path (f32 MXU operands): matches reference to 1e-4.
    out = schema_encoder(schema_inputs, schema_adjs, w_gcn, w_fc, b_fc)
    out = jax.block_until_ready(out)
    if not jnp.allclose(out, ref, atol=1e-4, rtol=1e-4):
        raise AssertionError("Pallas kernel (f32) mismatch vs JAX reference")

    # Fast path (bf16 MXU operands, f32 accumulation): looser tolerance.
    out_bf16 = schema_encoder(schema_inputs, schema_adjs, w_gcn, w_fc, b_fc,
                              matmul_dtype=jnp.bfloat16)
    out_bf16 = jax.block_until_ready(out_bf16)
    if not jnp.allclose(out_bf16, ref, atol=2e-2, rtol=2e-2):
        raise AssertionError("Pallas kernel (bf16 matmul) mismatch vs JAX reference")

    print("KERNEL_OK")
</pallas_src>

<mosaic_0001>
module attributes {stable_mosaic.version = 11 : i64} {
  func.func @schema_encoder_kernel(%arg0: i32, %arg1: memref<512x64xf32, #tpu.memory_space<vmem>>, %arg2: memref<32x16x16xf32, #tpu.memory_space<vmem>>, %arg3: memref<32x16x16xf32, #tpu.memory_space<vmem>>, %arg4: memref<64x64xf32, #tpu.memory_space<vmem>>, %arg5: memref<64x128xf32, #tpu.memory_space<vmem>>, %arg6: memref<1x128xf32, #tpu.memory_space<vmem>>, %arg7: memref<512x128xf32, #tpu.memory_space<vmem>>) attributes {dimension_semantics = [#tpu.dimension_semantics<parallel>], iteration_bounds = array<i64: 1>, scalar_prefetch = 0 : i64, scratch_operands = 0 : i64, tpu.core_type = #tpu.core_type<tc>, window_params = [{transform_indices = @transform_0, window_bounds = array<i64: 512, 64>}, {transform_indices = @transform_1, window_bounds = array<i64: 32, 16, 16>}, {transform_indices = @transform_2, window_bounds = array<i64: 32, 16, 16>}, {pipeline_mode = #tpu.pipeline_mode<synchronous>, transform_indices = @transform_3, window_bounds = array<i64: 64, 64>}, {pipeline_mode = #tpu.pipeline_mode<synchronous>, transform_indices = @transform_4, window_bounds = array<i64: 64, 128>}, {pipeline_mode = #tpu.pipeline_mode<synchronous>, transform_indices = @transform_5, window_bounds = array<i64: 1, 128>}, {transform_indices = @transform_6, window_bounds = array<i64: 512, 128>}]} {
    %c0 = arith.constant 0 : index
    %c0_0 = arith.constant 0 : index
    %0 = vector.load %arg1[%c0, %c0_0] : memref<512x64xf32, #tpu.memory_space<vmem>>, vector<512x64xf32>
    %c0_1 = arith.constant 0 : index
    %c0_2 = arith.constant 0 : index
    %c0_3 = arith.constant 0 : index
    %1 = vector.load %arg2[%c0_1, %c0_2, %c0_3] : memref<32x16x16xf32, #tpu.memory_space<vmem>>, vector<32x16x16xf32>
    %c0_4 = arith.constant 0 : index
    %c0_5 = arith.constant 0 : index
    %c0_6 = arith.constant 0 : index
    %2 = vector.load %arg3[%c0_4, %c0_5, %c0_6] : memref<32x16x16xf32, #tpu.memory_space<vmem>>, vector<32x16x16xf32>
    %c0_7 = arith.constant 0 : index
    %c0_8 = arith.constant 0 : index
    %3 = vector.load %arg4[%c0_7, %c0_8] : memref<64x64xf32, #tpu.memory_space<vmem>>, vector<64x64xf32>
    %c0_9 = arith.constant 0 : index
    %c0_10 = arith.constant 0 : index
    %4 = vector.load %arg5[%c0_9, %c0_10] : memref<64x128xf32, #tpu.memory_space<vmem>>, vector<64x128xf32>
    %c0_11 = arith.constant 0 : index
    %c0_12 = arith.constant 0 : index
    %5 = vector.load %arg6[%c0_11, %c0_12] : memref<1x128xf32, #tpu.memory_space<vmem>>, vector<1x128xf32>
    %cst = arith.constant dense<0.000000e+00> : vector<512x64xf32>
    %6 = tpu.matmul %0, %3, %cst {dimension_numbers = #tpu.dot_dimension_numbers<[1], [0], [0], [1], [0, 0, 1, 1], [], []>} : vector<512x64xf32>, vector<64x64xf32>, vector<512x64xf32> -> vector<512x64xf32>
    %7 = vector.shape_cast %6 : vector<512x64xf32> to vector<32x16x64xf32>
    %cst_13 = arith.constant dense<0.000000e+00> : vector<32x16xf32>
    %8 = vector.multi_reduction <add>, %1, %cst_13 [2] : vector<32x16x16xf32> to vector<32x16xf32>
    %9 = vector.shape_cast %8 : vector<32x16xf32> to vector<32x16x1xf32>
    %10 = math.rsqrt %9 : vector<32x16x1xf32>
    %11 = vector.broadcast %10 : vector<32x16x1xf32> to vector<32x16x64xf32>
    %12 = arith.mulf %11, %7 : vector<32x16x64xf32>
    "tpu.trace_start"() <{level = 10 : i32, message = "bkn,bnf->bkf"}> : () -> ()
    %cst_14 = arith.constant dense<0.000000e+00> : vector<32x16x64xf32>
    %13 = tpu.matmul %2, %12, %cst_14 {dimension_numbers = #tpu.dot_dimension_numbers<[2], [1], [1], [2], [0, 0, 0, 1, 1, 2], [0], [0]>} : vector<32x16x16xf32>, vector<32x16x64xf32>, vector<32x16x64xf32> -> vector<32x16x64xf32>
    "tpu.trace_stop"() : () -> ()
    %14 = vector.broadcast %10 : vector<32x16x1xf32> to vector<32x16x64xf32>
    %15 = arith.mulf %14, %13 : vector<32x16x64xf32>
    %cst_15 = arith.constant 0.000000e+00 : f32
    %16 = vector.broadcast %cst_15 : f32 to vector<32x16x64xf32>
    %17 = arith.maximumf %15, %16 : vector<32x16x64xf32>
    %18 = vector.shape_cast %17 : vector<32x16x64xf32> to vector<512x64xf32>
    %cst_16 = arith.constant dense<0.000000e+00> : vector<512x128xf32>
    %19 = tpu.matmul %18, %4, %cst_16 {dimension_numbers = #tpu.dot_dimension_numbers<[1], [0], [0], [1], [0, 0, 1, 1], [], []>} : vector<512x64xf32>, vector<64x128xf32>, vector<512x128xf32> -> vector<512x128xf32>
    %20 = vector.broadcast %5 : vector<1x128xf32> to vector<512x128xf32>
    %21 = arith.addf %19, %20 : vector<512x128xf32>
    %cst_17 = arith.constant 0.000000e+00 : f32
    %22 = vector.broadcast %cst_17 : f32 to vector<512x128xf32>
    %23 = arith.maximumf %21, %22 : vector<512x128xf32>
    %c0_18 = arith.constant 0 : index
    %c0_19 = arith.constant 0 : index
    %24 = vector.load %arg7[%c0_18, %c0_19] : memref<512x128xf32, #tpu.memory_space<vmem>>, vector<512x128xf32>
    tpu.vector_store %arg7[%c0_18, %c0_19], %23 {strides = array<i32>} : memref<512x128xf32, #tpu.memory_space<vmem>>, vector<512x128xf32>,
    return
  }
  func.func @transform_0(%arg0: i32) -> (i32, i32) {
    %c0_i32 = arith.constant 0 : i32
    %c0_i32_0 = arith.constant 0 : i32
    return %arg0, %c0_i32 : i32, i32
  }
  func.func @transform_1(%arg0: i32) -> (i32, i32, i32) {
    %c0_i32 = arith.constant 0 : i32
    %c0_i32_0 = arith.constant 0 : i32
    %c0_i32_1 = arith.constant 0 : i32
    return %arg0, %c0_i32, %c0_i32_0 : i32, i32, i32
  }
  func.func @transform_2(%arg0: i32) -> (i32, i32, i32) {
    %c0_i32 = arith.constant 0 : i32
    %c0_i32_0 = arith.constant 0 : i32
    %c0_i32_1 = arith.constant 0 : i32
    return %arg0, %c0_i32, %c0_i32_0 : i32, i32, i32
  }
  func.func @transform_3(%arg0: i32) -> (i32, i32) {
    %c0_i32 = arith.constant 0 : i32
    %c0_i32_0 = arith.constant 0 : i32
    %c0_i32_1 = arith.constant 0 : i32
    return %c0_i32, %c0_i32_0 : i32, i32
  }
  func.func @transform_4(%arg0: i32) -> (i32, i32) {
    %c0_i32 = arith.constant 0 : i32
    %c0_i32_0 = arith.constant 0 : i32
    %c0_i32_1 = arith.constant 0 : i32
    return %c0_i32, %c0_i32_0 : i32, i32
  }
  func.func @transform_5(%arg0: i32) -> (i32, i32) {
    %c0_i32 = arith.constant 0 : i32
    %c0_i32_0 = arith.constant 0 : i32
    %c0_i32_1 = arith.constant 0 : i32
    return %c0_i32, %c0_i32_0 : i32, i32
  }
  func.func @transform_6(%arg0: i32) -> (i32, i32) {
    %c0_i32 = arith.constant 0 : i32
    %c0_i32_0 = arith.constant 0 : i32
    return %arg0, %c0_i32 : i32, i32
  }
}

</mosaic_0001>

<bundles_post_ra>
// kernel: tpu_custom_call.1
= control target key start
LH: loop header
LB: loop body
LE: loop exit
PB: predicated region body
PF: predicated region fallthrough
CT: control target
= control target key end

     0   :  { %vm635_vm0 = vcmask 130048   ;;  %s5746_s0 = inlined_call_operand.vmem [shape: f32[512,64], index: 0, kind: input, shape index: {}]   ;;  %s5747_s1 = inlined_call_operand.vmem [shape: f32[32,16,16], index: 1, kind: input, shape index: {}]   ;;  %s5748_s2 = inlined_call_operand.vmem [shape: f32[32,16,16], index: 2, kind: input, shape index: {}]   ;;  %s5749_s3 = inlined_call_operand.vmem [shape: f32[64,64], index: 3, kind: input, shape index: {}]   ;;  %s5750_s4 = inlined_call_operand.vmem [shape: f32[64,128], index: 4, kind: input, shape index: {}]   ;;  %s5751_s5 = inlined_call_operand.vmem [shape: f32[1,128], index: 5, kind: input, shape index: {}]   ;;  %s5752_s6 = inlined_call_operand.hbm [shape: f32[512,128], index: 6, kind: output, shape index: {}]  }
   0x1   :  { %v223_v0 = vld [vmem:[%s5749_s3 + $0x38] sm:$0xff]  ;;  %v89_v1 = vld [vmem:[%s5747_s1 + $0x8] sm:$0xff]  ;;  %v222_v2 = vld [vmem:[%s5749_s3 + $0x30] sm:$0xff] }
   0x2   :  { %434 = vmatpush.msra.mxu0 %v223_v0  ;;  %v639_v3 = vsel %vm635_vm0, %v89_v1, 0.0  ;;  %v93_v4 = vld [vmem:[%s5747_s1 + $0x28] sm:$0xff]  ;;  %3330 = vmatpush.msra.mxu2 %v223_v0  ;;  %v220_v7 = vld [vmem:[%s5749_s3 + $0x20] sm:$0xff]  ;;  %v91_v10 = vld [vmem:[%s5747_s1 + $0x18] sm:$0xff] }
   0x3   :  { %640 = vadd.xlane.f32.xlu1 %v639_v3  ;;  %v221_v5 = vld [vmem:[%s5749_s3 + $0x28] sm:$0xff]  ;;  %v651_v6 = vsel %vm635_vm0, %v93_v4, 0.0  ;;  %v88_v8 = vld [vmem:[%s5747_s1] sm:$0xff]  ;;  %v219_v11 = vld [vmem:[%s5749_s3 + $0x18] sm:$0xff]  ;;  %v645_v12 = vsel %vm635_vm0, %v91_v10, 0.0 }
   0x4   :  { %435 = vmatpush.msra.mxu0 %v222_v2  ;;  %652 = vadd.xlane.f32.xlu0 %v651_v6  ;;  %v92_v9 = vld [vmem:[%s5747_s1 + $0x20] sm:$0xff] }
   0x5   :  { %3331 = vmatpush.msra.mxu2 %v222_v2 }
   0x6   :  { %436 = vmatpush.msra.mxu0 %v221_v5 }
   0x7   :  { %3332 = vmatpush.msra.mxu2 %v221_v5 }
   0x8   :  { %11 = vsyncpa [#allocation3], 0  ;;  %437 = vmatpush.msra.mxu0 %v220_v7  ;;  %v636_v13 = vsel %vm635_vm0, %v88_v8, 0.0  ;;  %646 = vadd.xlane.f32.xlu2 %v645_v12  ;;  %v218_v14 = vld [vmem:[%s5749_s3 + $0x10] sm:$0xff]  ;;  %v648_v15 = vsel %vm635_vm0, %v92_v9, 0.0  ;;  %v217_v16 = vld [vmem:[%s5749_s3 + $0x8] sm:$0xff] }
   0x9   :  { %3333 = vmatpush.msra.mxu2 %v220_v7  ;;  %v216_v17 = vld [vmem:[%s5749_s3] sm:$0xff]  ;;  %vm233_vm1 = vcmask 523264   ;;  %v90_v19 = vld [vmem:[%s5747_s1 + $0x10] sm:$0xff]  ;;  %v99_v22 = vld [vmem:[%s5747_s1 + $0x58] sm:$0xff]  ;;  %s3126_s7 = sshll.u32 %s5752_s6, 4  ;;  %s3513_s8 = smov 128   ;;  %s3127_s7 = int_to_ptr.hbm [resolvable:$true] %s3126_s7 }
   0xa   :  { %438 = vmatpush.msra.mxu0 %v219_v11  ;;  %v24_v18 = vld [vmem:[%s5746_s0] sm:$0xff]  ;;  %v642_v21 = vsel %vm635_vm0, %v90_v19, 0.0  ;;  %v669_v23 = vsel %vm635_vm0, %v99_v22, 0.0  ;;  %v25_v24 = vld [vmem:[%s5746_s0 + $0x8] sm:$0xff]  ;;  %v94_v25 = vld [vmem:[%s5747_s1 + $0x30] sm:$0xff]  ;;  %s3514_s9 = smov 8  }
   0xb   :  { %637 = vadd.xlane.f32.xlu1 %v636_v13  ;;  %3334 = vmatpush.msra.mxu2 %v219_v11  ;;  %v72_v20 = vld [vmem:[%s5746_s0 + $0x180] sm:$0xff]  ;;  %v73_v26 = vld [vmem:[%s5746_s0 + $0x188] sm:$0xff]  ;;  %v654_v27 = vsel %vm635_vm0, %v94_v25, 0.0  ;;  %v95_v28 = vld [vmem:[%s5747_s1 + $0x38] sm:$0xff] }
   0xc   :  { %439 = vmatpush.msra.mxu0 %v218_v14  ;;  %649 = vadd.xlane.f32.xlu0 %v648_v15  ;;  %v657_v29 = vsel %vm635_vm0, %v95_v28, 0.0  ;;  %v26_v30 = vld [vmem:[%s5746_s0 + $0x10] sm:$0xff]  ;;  %v96_v32 = vld [vmem:[%s5747_s1 + $0x40] sm:$0xff]  ;;  %v27_v36 = vld [vmem:[%s5746_s0 + $0x18] sm:$0xff] }
   0xd   :  { %3335 = vmatpush.msra.mxu2 %v218_v14  ;;  %v74_v31 = vld [vmem:[%s5746_s0 + $0x190] sm:$0xff]  ;;  %v660_v34 = vsel %vm635_vm0, %v96_v32, 0.0  ;;  %v75_v37 = vld [vmem:[%s5746_s0 + $0x198] sm:$0xff]  ;;  %v97_v38 = vld [vmem:[%s5747_s1 + $0x48] sm:$0xff] }
   0xe   :  { %440 = vmatpush.msra.mxu0 %v217_v16  ;;  %v98_v33 = vld [vmem:[%s5747_s1 + $0x50] sm:$0xff]  ;;  %v663_v39 = vsel %vm635_vm0, %v97_v38, 0.0  ;;  %v28_v40 = vld [vmem:[%s5746_s0 + $0x20] sm:$0xff]  ;;  %v29_v42 = vld [vmem:[%s5746_s0 + $0x28] sm:$0xff] }
   0xf   :  { %3336 = vmatpush.msra.mxu2 %v217_v16  ;;  %v666_v35 = vsel %vm635_vm0, %v98_v33, 0.0  ;;  %v76_v41 = vld [vmem:[%s5746_s0 + $0x1a0] sm:$0xff]  ;;  %v77_v43 = vld [vmem:[%s5746_s0 + $0x1a8] sm:$0xff]  ;;  %v30_v44 = vld [vmem:[%s5746_s0 + $0x30] sm:$0xff] }
  0x10   :  { %441 = vmatpush.msra.mxu0 %v216_v17  ;;  %670 = vadd.xlane.f32.xlu2 %v669_v23  ;;  %v78_v45 = vld [vmem:[%s5746_s0 + $0x1b0] sm:$0xff]  ;;  %v105_v46 = vld [vmem:[%s5747_s1 + $0x88] sm:$0xff]  ;;  %v100_v47 = vld [vmem:[%s5747_s1 + $0x60] sm:$0xff] }
  0x11   :  { %3138 = vmatmul.msk.f32.vlgmr.msra.gmra.mxu0 %vm233_vm1, %v24_v18  ;;  %3337 = vmatpush.msra.mxu2 %v216_v17  ;;  %v687_v48 = vsel %vm635_vm0, %v105_v46, 0.0  ;;  %v672_v49 = vsel %vm635_vm0, %v100_v47, 0.0  ;;  %v31_v50 = vld [vmem:[%s5746_s0 + $0x38] sm:$0xff]  ;;  %v101_v52 = vld [vmem:[%s5747_s1 + $0x68] sm:$0xff]  ;;  %v32_v54 = vld [vmem:[%s5746_s0 + $0x40] sm:$0xff] }
  0x12   :  { %3186 = vmatmul.msk.f32.vlgmr.msra.gmra.mxu2 %vm233_vm1, %v72_v20  ;;  %v79_v51 = vld [vmem:[%s5746_s0 + $0x1b8] sm:$0xff]  ;;  %v675_v53 = vsel %vm635_vm0, %v101_v52, 0.0  ;;  %v80_v55 = vld [vmem:[%s5746_s0 + $0x1c0] sm:$0xff]  ;;  %v33_v56 = vld [vmem:[%s5746_s0 + $0x48] sm:$0xff] }
  0x13   :  { %667 = vadd.xlane.f32.xlu1 %v666_v35  ;;  %v81_v57 = vld [vmem:[%s5746_s0 + $0x1c8] sm:$0xff]  ;;  %v102_v58 = vld [vmem:[%s5747_s1 + $0x70] sm:$0xff]  ;;  %v104_v59 = vld [vmem:[%s5747_s1 + $0x80] sm:$0xff] }
  0x14   :  { %643 = vadd.xlane.f32.xlu0 %v642_v21  ;;  %v678_v60 = vsel %vm635_vm0, %v102_v58, 0.0  ;;  %v684_v61 = vsel %vm635_vm0, %v104_v59, 0.0  ;;  %v34_v62 = vld [vmem:[%s5746_s0 + $0x50] sm:$0xff]  ;;  %v103_v63 = vld [vmem:[%s5747_s1 + $0x78] sm:$0xff]  ;;  %v36_v4 = vld [vmem:[%s5746_s0 + $0x60] sm:$0xff] }
  0x15   :  { %v681_v0 = vsel %vm635_vm0, %v103_v63, 0.0  ;;  %v82_v1 = vld [vmem:[%s5746_s0 + $0x1d0] sm:$0xff]  ;;  %v35_v2 = vld [vmem:[%s5746_s0 + $0x58] sm:$0xff]  ;;  %v84_v5 = vld [vmem:[%s5746_s0 + $0x1e0] sm:$0xff] }
  0x16   :  { %v83_v3 = vld [vmem:[%s5746_s0 + $0x1d8] sm:$0xff]  ;;  %v37_v7 = vld [vmem:[%s5746_s0 + $0x68] sm:$0xff]  ;;  %v106_v9 = vld [vmem:[%s5747_s1 + $0x90] sm:$0xff] }
  0x17   :  { %v111_v8 = vld [vmem:[%s5747_s1 + $0xb8] sm:$0xff]  ;;  %v690_v12 = vsel %vm635_vm0, %v106_v9, 0.0  ;;  %v85_v13 = vld [vmem:[%s5746_s0 + $0x1e8] sm:$0xff]  ;;  %v38_v16 = vld [vmem:[%s5746_s0 + $0x70] sm:$0xff] }
  0x18   :  { %658 = vadd.xlane.f32.xlu2 %v657_v29  ;;  %v705_v11 = vsel %vm635_vm0, %v111_v8, 0.0  ;;  %v107_v17 = vld [vmem:[%s5747_s1 + $0x98] sm:$0xff]  ;;  %v108_v21 = vld [vmem:[%s5747_s1 + $0xa0] sm:$0xff]  ;;  %v86_v23 = vld [vmem:[%s5746_s0 + $0x1f0] sm:$0xff] }
  0x19   :  { %3139 = vmatmul.msk.f32.gmra.mxu0 %vm233_vm1, %v25_v24  ;;  %v693_v19 = vsel %vm635_vm0, %v107_v17, 0.0  ;;  %v696_v22 = vsel %vm635_vm0, %v108_v21, 0.0  ;;  %v39_v28 = vld [vmem:[%s5746_s0 + $0x78] sm:$0xff]  ;;  %v110_v29 = vld [vmem:[%s5747_s1 + $0xb0] sm:$0xff]  ;;  %v112_v35 = vld [vmem:[%s5747_s1 + $0xc0] sm:$0xff] }
  0x1a   :  { %3187 = vmatmul.msk.f32.gmra.mxu2 %vm233_vm1, %v73_v26  ;;  %v115_v21 = vld [vmem:[%s5747_s1 + $0xd8] sm:$0xff] }
  0x1b   :  { %664 = vadd.xlane.f32.xlu1 %v663_v39  ;;  %v87_v39 = vld [vmem:[%s5746_s0 + $0x1f8] sm:$0xff] }
  0x1c   :  { %655 = vadd.xlane.f32.xlu0 %v654_v27 }
  0x20   :  { %688 = vadd.xlane.f32.xlu2 %v687_v48 }
  0x21   :  { %3140 = vmatmul.msk.f32.gmra.mxu0 %vm233_vm1, %v26_v30 }
  0x22   :  { %3188 = vmatmul.msk.f32.gmra.mxu2 %vm233_vm1, %v74_v31  ;;  %v702_v31 = vsel %vm635_vm0, %v110_v29, 0.0 }
  0x23   :  { %685 = vadd.xlane.f32.xlu1 %v684_v61 }
  0x24   :  { %661 = vadd.xlane.f32.xlu0 %v660_v34  ;;  %v117_v34 = vld [vmem:[%s5747_s1 + $0xe8] sm:$0xff] }
  0x28   :  { %676 = vadd.xlane.f32.xlu2 %v675_v53 }
  0x29   :  { %3141 = vmatmul.msk.f32.gmra.mxu0 %vm233_vm1, %v27_v36  ;;  %v723_v36 = vsel %vm635_vm0, %v117_v34, 0.0 }
  0x2a   :  { %3189 = vmatmul.msk.f32.gmra.mxu2 %vm233_vm1, %v75_v37  ;;  %v708_v37 = vsel %vm635_vm0, %v112_v35, 0.0  ;;  %v43_v35 = vld [vmem:[%s5746_s0 + $0x98] sm:$0xff] }
  0x2b   :  { %682 = vadd.xlane.f32.xlu1 %v681_v0  ;;  %v123_v0 = vld [vmem:[%s5747_s1 + $0x118] sm:$0xff] }
  0x2c   :  { %673 = vadd.xlane.f32.xlu0 %v672_v49 }
  0x30   :  { %706 = vadd.xlane.f32.xlu2 %v705_v11 }
  0x31   :  { %3142 = vmatmul.msk.f32.gmra.mxu0 %vm233_vm1, %v28_v40 }
  0x32   :  { %3190 = vmatmul.msk.f32.gmra.mxu2 %vm233_vm1, %v76_v41 }
  0x33   :  { %703 = vadd.xlane.f32.xlu1 %v702_v31 }
  0x34   :  { %679 = vadd.xlane.f32.xlu0 %v678_v60  ;;  %v41_v60 = vld [vmem:[%s5746_s0 + $0x88] sm:$0xff] }
  0x38   :  { %694 = vadd.xlane.f32.xlu2 %v693_v19  ;;  %v119_v19 = vld [vmem:[%s5747_s1 + $0xf8] sm:$0xff] }
  0x39   :  { %3143 = vmatmul.msk.f32.gmra.mxu0 %vm233_vm1, %v29_v42 }
  0x3a   :  { %3191 = vmatmul.msk.f32.gmra.mxu2 %vm233_vm1, %v77_v43 }
  0x3c   :  { %691 = vadd.xlane.f32.xlu0 %v690_v12 }
  0x40   :  { %724 = vadd.xlane.f32.xlu2 %v723_v36 }
  0x41   :  { %3144 = vmatmul.msk.f32.gmra.mxu0 %vm233_vm1, %v30_v44  ;;  %v40_v44 = vld [vmem:[%s5746_s0 + $0x80] sm:$0xff] }
  0x42   :  { %3192 = vmatmul.msk.f32.gmra.mxu2 %vm233_vm1, %v78_v45  ;;  %v109_v45 = vld [vmem:[%s5747_s1 + $0xa8] sm:$0xff] }
  0x43   :  { %v699_v47 = vsel %vm635_vm0, %v109_v45, 0.0 }
  0x44   :  { %697 = vadd.xlane.f32.xlu0 %v696_v22  ;;  %700 = vadd.xlane.f32.xlu1 %v699_v47  ;;  %v152_v22 = vld [vmem:[%s5748_s2] sm:$0xff] }
  0x49   :  { %3145 = vmatmul.msk.f32.gmra.mxu0 %vm233_vm1, %v31_v50  ;;  %v113_v50 = vld [vmem:[%s5747_s1 + $0xc8] sm:$0xff] }
  0x4a   :  { %3193 = vmatmul.msk.f32.gmra.mxu2 %vm233_vm1, %v79_v51  ;;  %v114_v51 = vld [vmem:[%s5747_s1 + $0xd0] sm:$0xff]  ;;  %v711_v52 = vsel %vm635_vm0, %v113_v50, 0.0 }
  0x4b   :  { %712 = vadd.xlane.f32.xlu2 %v711_v52 }
  0x4c   :  { %709 = vadd.xlane.f32.xlu0 %v708_v37 }
  0x51   :  { %3146 = vmatmul.msk.f32.gmra.mxu0 %vm233_vm1, %v32_v54 }
  0x52   :  { %3194 = vmatmul.msk.f32.gmra.mxu2 %vm233_vm1, %v80_v55  ;;  %v714_v55 = vsel %vm635_vm0, %v114_v51, 0.0 }
  0x54   :  { %715 = vadd.xlane.f32.xlu0 %v714_v55 }
  0x59   :  { %3147 = vmatmul.msk.f32.gmra.mxu0 %vm233_vm1, %v33_v56 }
  0x5a   :  { %3195 = vmatmul.msk.f32.gmra.mxu2 %vm233_vm1, %v81_v57 }
  0x61   :  { %3148 = vmatmul.msk.f32.gmra.mxu0 %vm233_vm1, %v34_v62 }
  0x62   :  { %3196 = vmatmul.msk.f32.gmra.mxu2 %vm233_vm1, %v82_v1  ;;  %v118_v1 = vld [vmem:[%s5747_s1 + $0xf0] sm:$0xff] }
  0x69   :  { %3149 = vmatmul.msk.f32.gmra.mxu0 %vm233_vm1, %v35_v2  ;;  %v116_v2 = vld [vmem:[%s5747_s1 + $0xe0] sm:$0xff] }
  0x6a   :  { %3197 = vmatmul.msk.f32.gmra.mxu2 %vm233_vm1, %v83_v3  ;;  %v720_v8 = vsel %vm635_vm0, %v116_v2, 0.0 }
  0x6b   :  { %721 = vadd.xlane.f32.xlu1 %v720_v8 }
  0x71   :  { %3150 = vmatmul.msk.f32.gmra.mxu0 %vm233_vm1, %v36_v4  ;;  %v741_v4 = vsel %vm635_vm0, %v123_v0, 0.0 }
  0x72   :  { %3198 = vmatmul.msk.f32.gmra.mxu2 %vm233_vm1, %v84_v5  ;;  %742 = vadd.xlane.f32.xlu2 %v741_v4 }
  0x76   :  { %v3749_v6 = vpop.xlane.xlu1 %640 }
  0x77   :  { %3358 = vrsqrt.f32 %v3749_v6  ;;  %v3762_v10 = vpop.xlane.xlu0 %652  ;;  %vm844_vm2 = vweird.f32 %v3749_v6 }
  0x78   :  { %vm884_vm14 = vweird.f32 %v3762_v10 }
  0x79   :  { %3151 = vmatmul.msk.f32.gmra.mxu0 %vm233_vm1, %v37_v7  ;;  %v726_v7 = vsel %vm635_vm0, %v118_v1, 0.0 }
  0x7a   :  { %3199 = vmatmul.msk.f32.gmra.mxu2 %vm233_vm1, %v85_v13  ;;  %727 = vadd.xlane.f32.xlu0 %v726_v7 }
  0x7b   :  { %v3793_v25 = vpop.xlane.xlu2 %646 }
  0x7c   :  { %vm864_vm8 = vweird.f32 %v3793_v25 }
  0x7d   :  { %v3770_v14 = vpop.eup %3358 }
  0x7e   :  { %v638_v15 = vpop.xlane.xlu1 %637  ;;  %v839_v20 = vmul.f32 %v3770_v14, %v3749_v6  ;;  %vm845_vm3 = vweird.f32 %v3770_v14 }
  0x7f   :  { %3360 = vrsqrt.f32 %v638_v15  ;;  %v3779_v18 = vpop.xlane.xlu0 %649  ;;  %vm834_vm4 = vweird.f32 %v638_v15  ;;  %vm846_vm6 = vmor %vm844_vm2, %vm845_vm3 }
  0x80   :  { %v840_v24 = vmul.f32 %v3770_v14, %v839_v20  ;;  %3362 = vrsqrt.f32 %v3793_v25  ;;  %v125_v20 = vld [vmem:[%s5747_s1 + $0x128] sm:$0xff]  ;;  %vm874_vm2 = vweird.f32 %v3779_v18 }
  0x81   :  { %3152 = vmatmul.msk.f32.gmra.mxu0 %vm233_vm1, %v38_v16 }
  0x82   :  { %3200 = vmatmul.msk.f32.gmra.mxu2 %vm233_vm1, %v86_v23  ;;  %v841_v32 = vmul.f32 0.5, %v840_v24  ;;  %v729_v23 = vsel %vm635_vm0, %v119_v19, 0.0  ;;  %v747_v24 = vsel %vm635_vm0, %v125_v20, 0.0  ;;  %v156_v19 = vld [vmem:[%s5748_s2 + $0x20] sm:$0xff] }
  0x83   :  { %v3874_v6 = vpop.xlane.xlu2 %670  ;;  %730 = vadd.xlane.f32.xlu2 %v729_v23  ;;  %748 = vadd.xlane.f32.xlu0 %v747_v24 }
  0x84   :  { %v842_v40 = vsub.f32 1.5, %v841_v32 }
  0x85   :  { %v3361_v26 = vpop.eup %3360 }
  0x86   :  { %v829_v27 = vmul.f32 %v3361_v26, %v638_v15  ;;  %v3819_v41 = vpop.eup %3362  ;;  %vm835_vm5 = vweird.f32 %v3361_v26  ;;  %v843_v49 = vmul.f32 %v3770_v14, %v842_v40  ;;  %v122_v40 = vld [vmem:[%s5747_s1 + $0x110] sm:$0xff] }
  0x87   :  { %v3802_v30 = vpop.xlane.xlu0 %643  ;;  %v859_v48 = vmul.f32 %v3819_v41, %v3793_v25  ;;  %vm836_vm7 = vmor %vm834_vm4, %vm835_vm5  ;;  %vm865_vm9 = vweird.f32 %v3819_v41 }
  0x88   :  { %v830_v33 = vmul.f32 %v3361_v26, %v829_v27  ;;  %3364 = vrsqrt.f32 %v3802_v30  ;;  %v3851_v57 = vsel %vm846_vm6, %v3770_v14, %v843_v49  ;;  %v42_v14 = vld [vmem:[%s5746_s0 + $0x90] sm:$0xff]  ;;  %vm854_vm10 = vweird.f32 %v3802_v30  ;;  %vm866_vm12 = vmor %vm864_vm8, %vm865_vm9 }
  0x89   :  { %3153 = vmatmul.msk.f32.gmra.mxu0 %vm233_vm1, %v39_v28  ;;  %v860_v56 = vmul.f32 %v3819_v41, %v859_v48  ;;  %5800 = vst [vmem:[#allocation5_spill] sm:$0xff] %v3851_v57  ;;  %3366 = vrsqrt.f32 %v3762_v10  ;;  %v717_v27 = vsel %vm635_vm0, %v115_v21, 0.0  ;;  %v3954_v48 = vpop.xlane.xlu1 %667 }
  0x8a   :  { %v831_v38 = vmul.f32 0.5, %v830_v33  ;;  %3201 = vmatmul.msk.f32.gmra.mxu2 %vm233_vm1, %v87_v39  ;;  %3368 = vrsqrt.f32 %v3779_v18  ;;  %718 = vadd.xlane.f32.xlu1 %v717_v27  ;;  %v126_v39 = vld [vmem:[%s5747_s1 + $0x130] sm:$0xff] }
  0x8b   :  { %v861_v63 = vmul.f32 0.5, %v860_v56  ;;  %v3920_v31 = vpop.xlane.xlu2 %658  ;;  %v750_v45 = vsel %vm635_vm0, %v126_v39, 0.0 }
  0x8c   :  { %v832_v42 = vsub.f32 1.5, %v831_v38  ;;  %3370 = vrsqrt.f32 %v3920_v31  ;;  %v120_v38 = vld [vmem:[%s5747_s1 + $0x100] sm:$0xff]  ;;  %751 = vadd.xlane.f32.xlu0 %v750_v45  ;;  %vm904_vm6 = vweird.f32 %v3920_v31 }
  0x8d   :  { %v862_v9 = vsub.f32 1.5, %v861_v63 }
  0x8e   :  { %v443_v43 = vpop.f32.mrf.mxu0  ;;  %v3830_v46 = vpop.eup %3364  ;;  %v833_v54 = vmul.f32 %v3361_v26, %v832_v42  ;;  %v154_v42 = vld [vmem:[%s5748_s2 + $0x10] sm:$0xff] }
  0x8f   :  { %v849_v53 = vmul.f32 %v3830_v46, %v3802_v30  ;;  %v3878_v11 = vpop.eup %3366  ;;  %vm855_vm11 = vweird.f32 %v3830_v46  ;;  %v863_v17 = vmul.f32 %v3819_v41, %v862_v9  ;;  %v3922_v32 = vpop.xlane.xlu0 %655 }
  0x90   :  { %v3857_v61 = vsel %vm836_vm7, %v3361_v26, %v833_v54  ;;  %v3885_v15 = vpop.eup %3368  ;;  %v879_v16 = vmul.f32 %v3878_v11, %v3762_v10  ;;  %vm856_vm13 = vmor %vm854_vm10, %vm855_vm11  ;;  %3372 = vrsqrt.f32 %v3922_v32  ;;  %v44_v54 = vld [vmem:[%s5746_s0 + $0xa0] sm:$0xff]  ;;  %vm885_vm15 = vweird.f32 %v3878_v11  ;;  %v127_v10 = vld [vmem:[%s5747_s1 + $0x138] sm:$0xff] }
  0x91   :  { %3154 = vmatmul.msk.f32.gmra.mxu0 %vm233_vm1, %v40_v44  ;;  %v850_v58 = vmul.f32 %v3830_v46, %v849_v53  ;;  %5801 = vst [vmem:[#allocation6_spill] sm:$0xff] %v3857_v61  ;;  %v1468_v3 = vmul.f32 %v3857_v61, %v443_v43  ;;  %v869_v25 = vmul.f32 %v3885_v15, %v3779_v18  ;;  %v153_v43 = vld [vmem:[%s5748_s2 + $0x8] sm:$0xff]  ;;  %v732_v44 = vsel %vm635_vm0, %v120_v38, 0.0  ;;  %vm886_vm4 = vmor %vm884_vm14, %vm885_vm15 }
  0x92   :  { %v880_v28 = vmul.f32 %v3878_v11, %v879_v16  ;;  %v3918_v29 = vsel %vm866_vm12, %v3819_v41, %v863_v17  ;;  %733 = vadd.xlane.f32.xlu2 %v732_v44  ;;  %v3958_v50 = vpop.eup %3370  ;;  %vm875_vm3 = vweird.f32 %v3885_v15  ;;  %v45_v18 = vld [vmem:[%s5746_s0 + $0xa8] sm:$0xff]  ;;  %v132_v16 = vld [vmem:[%s5747_s1 + $0x160] sm:$0xff]  ;;  %vm894_vm8 = vweird.f32 %v3922_v32 }
  0x93   :  { %v851_v5 = vmul.f32 0.5, %v850_v58  ;;  %5802 = vst [vmem:[#allocation7_spill] sm:$0xff] %v3918_v29  ;;  %v870_v33 = vmul.f32 %v3885_v15, %v869_v25  ;;  %v899_v55 = vmul.f32 %v3958_v50, %v3920_v31  ;;  %v131_v58 = vld [vmem:[%s5747_s1 + $0x158] sm:$0xff]  ;;  %vm876_vm5 = vmor %vm874_vm2, %vm875_vm3  ;;  %v768_v21 = vsel %vm635_vm0, %v132_v16, 0.0  ;;  %v133_v31 = vld [vmem:[%s5747_s1 + $0x168] sm:$0xff] }
  0x94   :  { %v881_v37 = vmul.f32 0.5, %v880_v28  ;;  %v765_v63 = vsel %vm635_vm0, %v131_v58, 0.0  ;;  %vm905_vm7 = vweird.f32 %v3958_v50  ;;  %v157_v38 = vld [vmem:[%s5748_s2 + $0x28] sm:$0xff]  ;;  %v771_v39 = vsel %vm635_vm0, %v133_v31, 0.0 }
  0x95   :  { %v852_v12 = vsub.f32 1.5, %v851_v5  ;;  %v871_v47 = vmul.f32 0.5, %v870_v33  ;;  %766 = vadd.xlane.f32.xlu0 %v765_v63  ;;  %v4000_v5 = vpop.xlane.xlu1 %664  ;;  %v46_v33 = vld [vmem:[%s5746_s0 + $0xb0] sm:$0xff]  ;;  %vm906_vm10 = vmor %vm904_vm6, %vm905_vm7  ;;  %vm934_vm6 = vweird.f32 %v3954_v48 }
  0x96   :  { %v446_v59 = vpop.f32.mrf.mxu0  ;;  %v882_v49 = vsub.f32 1.5, %v881_v37  ;;  %v3960_v51 = vpop.eup %3372  ;;  %3374 = vrsqrt.f32 %v4000_v5  ;;  %v129_v37 = vld [vmem:[%s5747_s1 + $0x148] sm:$0xff]  ;;  %vm924_vm12 = vweird.f32 %v4000_v5 }
  0x97   :  { %v1469_v62 = vmul.f32 %v3851_v57, %v446_v59  ;;  %v853_v26 = vmul.f32 %v3830_v46, %v852_v12  ;;  %v872_v52 = vsub.f32 1.5, %v871_v47  ;;  %v121_v59 = vld [vmem:[%s5747_s1 + $0x108] sm:$0xff]  ;;  %v889_v1 = vmul.f32 %v3960_v51, %v3922_v32  ;;  %v4002_v7 = vpop.xlane.xlu0 %661 }
  0x98   :  { %v883_v56 = vmul.f32 %v3878_v11, %v882_v49  ;;  %v735_v0 = vsel %vm635_vm0, %v121_v59, 0.0  ;;  %3376 = vrsqrt.f32 %v4002_v7  ;;  %vm895_vm9 = vweird.f32 %v3960_v51  ;;  %v47_v49 = vld [vmem:[%s5746_s0 + $0xb8] sm:$0xff] }
  0x99   :  { %3155 = vmatmul.msk.f32.gmra.mxu0 %vm233_vm1, %v41_v60  ;;  %1552 = vmatpush.msra.mxu1 %v1469_v62  ;;  %v3929_v30 = vsel %vm856_vm13, %v3830_v46, %v853_v26  ;;  %v738_v46 = vsel %vm635_vm0, %v122_v40, 0.0  ;;  %v155_v60 = vld [vmem:[%s5748_s2 + $0x18] sm:$0xff]  ;;  %v753_v62 = vsel %vm635_vm0, %v127_v10, 0.0  ;;  %v873_v2 = vmul.f32 %v3885_v15, %v872_v52  ;;  %vm896_vm11 = vmor %vm894_vm8, %vm895_vm9 }
  0x9a   :  { %5803 = vst [vmem:[#allocation8_spill] sm:$0xff] %v3929_v30  ;;  %739 = vadd.xlane.f32.xlu1 %v738_v46  ;;  %754 = vadd.xlane.f32.xlu2 %v753_v62  ;;  %v3998_v4 = vsel %vm886_vm4, %v3878_v11, %v883_v56  ;;  %v890_v8 = vmul.f32 %v3960_v51, %v889_v1  ;;  %3378 = vrsqrt.f32 %v3874_v6  ;;  %v158_v56 = vld [vmem:[%s5748_s2 + $0x30] sm:$0xff]  ;;  %v4101_v62 = vpop.xlane.xlu2 %688  ;;  %vm914_vm14 = vweird.f32 %v4002_v7 }
  0x9b   :  { %1553 = vmatpush.msra.mxu1 %v1468_v3  ;;  %v900_v3 = vmul.f32 %v3958_v50, %v899_v55  ;;  %5804 = vst [vmem:[#allocation9_spill] sm:$0xff] %v3998_v4  ;;  %v4009_v12 = vsel %vm876_vm5, %v3885_v15, %v873_v2  ;;  %v124_v15 = vld [vmem:[%s5747_s1 + $0x120] sm:$0xff]  ;;  %3380 = vrsqrt.f32 %v3954_v48  ;;  %vm944_vm4 = vweird.f32 %v3874_v6 }
  0x9c   :  { %3202 = vmatmul.msk.f32.vlgmr.msra.gmra.mxu1 %vm635_vm0, %v152_v22  ;;  %5805 = vst [vmem:[#allocation10_spill] sm:$0xff] %v4009_v12  ;;  %v744_v22 = vsel %vm635_vm0, %v124_v15, 0.0  ;;  %v891_v23 = vmul.f32 0.5, %v890_v8  ;;  %v4032_v25 = vpop.eup %3374  ;;  %v48_v8 = vld [vmem:[%s5746_s0 + $0xc0] sm:$0xff] }
  0x9d   :  { %v901_v11 = vmul.f32 0.5, %v900_v3  ;;  %769 = vadd.xlane.f32.xlu0 %v768_v21  ;;  %vm925_vm13 = vweird.f32 %v4032_v25 }
  0x9e   :  { %v449_v13 = vpop.f32.mrf.mxu0  ;;  %v4034_v26 = vpop.eup %3376  ;;  %v892_v27 = vsub.f32 1.5, %v891_v23  ;;  %vm926_vm2 = vmor %vm924_vm12, %vm925_vm13 }
  0x9f   :  { %v1470_v41 = vmul.f32 %v3929_v30, %v449_v13  ;;  %v902_v24 = vsub.f32 1.5, %v901_v11  ;;  %vm915_vm15 = vweird.f32 %v4034_v26  ;;  %v159_v11 = vld [vmem:[%s5748_s2 + $0x38] sm:$0xff] }
  0xa0   :  { %vm916_vm3 = vmor %vm914_vm14, %vm915_vm15 }
  0xa1   :  { %3156 = vmatmul.msk.f32.gmra.mxu0 %vm233_vm1, %v42_v14  ;;  %v128_v14 = vld [vmem:[%s5747_s1 + $0x140] sm:$0xff] }
  0xa2   :  { %736 = vadd.xlane.f32.xlu1 %v735_v0  ;;  %v756_v20 = vsel %vm635_vm0, %v128_v14, 0.0  ;;  %v4104_v0 = vpop.eup %3378 }
  0xa3   :  { %757 = vadd.xlane.f32.xlu2 %v756_v20  ;;  %v4106_v1 = vpop.eup %3380  ;;  %v4138_v20 = vpop.xlane.xlu2 %676  ;;  %vm945_vm5 = vweird.f32 %v4104_v0 }
  0xa4   :  { %3203 = vmatmul.msk.f32.gmra.mxu1 %vm635_vm0, %v153_v43  ;;  %v893_v43 = vmul.f32 %v3960_v51, %v892_v27  ;;  %v929_v16 = vmul.f32 %v4106_v1, %v3954_v48  ;;  %v4147_v27 = vpop.xlane.xlu0 %673  ;;  %3382 = vrsqrt.f32 %v4138_v20  ;;  %vm935_vm7 = vweird.f32 %v4106_v1  ;;  %vm946_vm8 = vmor %vm944_vm4, %vm945_vm5 }
  0xa5   :  { %3384 = vrsqrt.f32 %v4147_v27  ;;  %vm936_vm9 = vmor %vm934_vm6, %vm935_vm7  ;;  %vm954_vm12 = vweird.f32 %v4147_v27 }
  0xa6   :  { %v452_v34 = vpop.f32.mrf.mxu0  ;;  %v4079_v52 = vsel %vm896_vm11, %v3960_v51, %v893_v43  ;;  %v130_v51 = vld [vmem:[%s5747_s1 + $0x150] sm:$0xff]  ;;  %v930_v21 = vmul.f32 %v4106_v1, %v929_v16 }
  0xa7   :  { %v1471_v36 = vmul.f32 %v3918_v29, %v452_v34  ;;  %v919_v34 = vmul.f32 %v4032_v25, %v4000_v5  ;;  %5807 = vst [vmem:[#allocation12_spill] sm:$0xff] %v4079_v52  ;;  %v762_v59 = vsel %vm635_vm0, %v130_v51, 0.0  ;;  %v137_v5 = vld [vmem:[%s5747_s1 + $0x188] sm:$0xff]  ;;  %v50_v43 = vld [vmem:[%s5746_s0 + $0xd0] sm:$0xff] }
  0xa9   :  { %3157 = vmatmul.msk.f32.gmra.mxu0 %vm233_vm1, %v43_v35  ;;  %1581 = vmatpush.msrb.mxu2 %v1471_v36  ;;  %v903_v35 = vmul.f32 %v3958_v50, %v902_v24  ;;  %v141_v36 = vld [vmem:[%s5747_s1 + $0x1a8] sm:$0xff]  ;;  %v920_v44 = vmul.f32 %v4032_v25, %v919_v34 }
  0xaa   :  { %745 = vadd.xlane.f32.xlu1 %v744_v22  ;;  %v795_v40 = vsel %vm635_vm0, %v141_v36, 0.0  ;;  %v49_v24 = vld [vmem:[%s5746_s0 + $0xc8] sm:$0xff] }
  0xab   :  { %1582 = vmatpush.msrb.mxu2 %v1470_v41  ;;  %v759_v41 = vsel %vm635_vm0, %v129_v37, 0.0  ;;  %772 = vadd.xlane.f32.xlu2 %v771_v39  ;;  %v4072_v45 = vsel %vm906_vm10, %v3958_v50, %v903_v35  ;;  %v134_v50 = vld [vmem:[%s5747_s1 + $0x170] sm:$0xff]  ;;  %v160_v35 = vld [vmem:[%s5748_s2 + $0x40] sm:$0xff]  ;;  %v931_v37 = vmul.f32 0.5, %v930_v21  ;;  %vm964_vm10 = vweird.f32 %v4138_v20 }
  0xac   :  { %3204 = vmatmul.msk.f32.vlgmr.msrb.gmra.mxu2 %vm635_vm0, %v154_v42  ;;  %v909_v42 = vmul.f32 %v4034_v26, %v4002_v7  ;;  %796 = vadd.xlane.f32.xlu0 %v795_v40  ;;  %5806 = vst [vmem:[#allocation11_spill] sm:$0xff] %v4072_v45  ;;  %v774_v10 = vsel %vm635_vm0, %v134_v50, 0.0  ;;  %v783_v7 = vsel %vm635_vm0, %v137_v5, 0.0  ;;  %v3383_v40 = vpop.eup %3382  ;;  %v52_v5 = vld [vmem:[%s5746_s0 + $0xe0] sm:$0xff] }
  0xad   :  { %vm965_vm11 = vweird.f32 %v3383_v40 }
  0xae   :  { %v455_v53 = vpop.f32.mrf.mxu0  ;;  %v910_v46 = vmul.f32 %v4034_v26, %v909_v42  ;;  %vm966_vm14 = vmor %vm964_vm10, %vm965_vm11 }
  0xaf   :  { %v1472_v17 = vmul.f32 %v4009_v12, %v455_v53  ;;  %v921_v53 = vmul.f32 0.5, %v920_v44  ;;  %v3385_v44 = vpop.eup %3384 }
  0xb0   :  { %v949_v48 = vmul.f32 %v3385_v44, %v4147_v27  ;;  %vm955_vm13 = vweird.f32 %v3385_v44  ;;  %v53_v27 = vld [vmem:[%s5746_s0 + $0xe8] sm:$0xff] }
  0xb1   :  { %3158 = vmatmul.msk.f32.gmra.mxu0 %vm233_vm1, %v44_v54  ;;  %v136_v54 = vld [vmem:[%s5747_s1 + $0x180] sm:$0xff]  ;;  %v922_v63 = vsub.f32 1.5, %v921_v53  ;;  %vm956_vm15 = vmor %vm954_vm12, %vm955_vm13 }
  0xb2   :  { %760 = vadd.xlane.f32.xlu1 %v759_v41  ;;  %v780_v58 = vsel %vm635_vm0, %v136_v54, 0.0  ;;  %v932_v41 = vsub.f32 1.5, %v931_v37 }
  0xb3   :  { %775 = vadd.xlane.f32.xlu2 %v774_v10  ;;  %v51_v10 = vld [vmem:[%s5746_s0 + $0xd8] sm:$0xff] }
  0xb4   :  { %3205 = vmatmul.msk.f32.gmra.mxu2 %vm635_vm0, %v155_v60  ;;  %v911_v60 = vmul.f32 0.5, %v910_v46  ;;  %781 = vadd.xlane.f32.xlu0 %v780_v58  ;;  %v959_v46 = vmul.f32 %v3383_v40, %v4138_v20  ;;  %v933_v53 = vmul.f32 %v4106_v1, %v932_v41  ;;  %v4257_v41 = vpop.xlane.xlu2 %706 }
  0xb6   :  { %v458_v9 = vpop.f32.mrf.mxu0  ;;  %v912_v2 = vsub.f32 1.5, %v911_v60  ;;  %v960_v50 = vmul.f32 %v3383_v40, %v959_v46  ;;  %v4197_v58 = vsel %vm936_vm9, %v4106_v1, %v933_v53  ;;  %v149_v53 = vld [vmem:[%s5747_s1 + $0x1e8] sm:$0xff] }
  0xb7   :  { %v1473_v13 = vmul.f32 %v3998_v4, %v458_v9  ;;  %v939_v9 = vmul.f32 %v4104_v0, %v3874_v6  ;;  %v139_v6 = vld [vmem:[%s5747_s1 + $0x198] sm:$0xff]  ;;  %5811 = vst [vmem:[#allocation16_spill] sm:$0xff] %v4197_v58 }
  0xb8   :  { %v913_v15 = vmul.f32 %v4034_v26, %v912_v2  ;;  %v162_v2 = vld [vmem:[%s5748_s2 + $0x50] sm:$0xff] }
  0xb9   :  { %3159 = vmatmul.msk.f32.gmra.mxu0 %vm233_vm1, %v45_v18  ;;  %1610 = vmatpush.msra.mxu3 %v1473_v13  ;;  %v923_v18 = vmul.f32 %v4032_v25, %v922_v63  ;;  %v135_v13 = vld [vmem:[%s5747_s1 + $0x178] sm:$0xff]  ;;  %v961_v63 = vmul.f32 0.5, %v960_v50  ;;  %v165_v50 = vld [vmem:[%s5748_s2 + $0x68] sm:$0xff] }
  0xba   :  { %763 = vadd.xlane.f32.xlu1 %v762_v59  ;;  %v777_v14 = vsel %vm635_vm0, %v135_v13, 0.0  ;;  %v4142_v22 = vsel %vm916_vm3, %v4034_v26, %v913_v15  ;;  %v140_v26 = vld [vmem:[%s5747_s1 + $0x1a0] sm:$0xff]  ;;  %v4199_v59 = vpop.xlane.xlu0 %679 }
  0xbb   :  { %1611 = vmatpush.msra.mxu3 %v1472_v17  ;;  %784 = vadd.xlane.f32.xlu2 %v783_v7  ;;  %v940_v17 = vmul.f32 %v4104_v0, %v939_v9  ;;  %5809 = vst [vmem:[#allocation14_spill] sm:$0xff] %v4142_v22  ;;  %v792_v36 = vsel %vm635_vm0, %v140_v26, 0.0  ;;  %v142_v26 = vld [vmem:[%s5747_s1 + $0x1b0] sm:$0xff]  ;;  %vm974_vm4 = vweird.f32 %v4199_v59 }
  0xbc   :  { %3206 = vmatmul.msk.f32.vlgmr.msra.gmra.mxu3 %vm635_vm0, %v156_v19  ;;  %v4135_v19 = vsel %vm926_vm2, %v4032_v25, %v923_v18  ;;  %v798_v37 = vsel %vm635_vm0, %v142_v26, 0.0  ;;  %v167_v26 = vld [vmem:[%s5748_s2 + $0x78] sm:$0xff] }
  0xbd   :  { %5808 = vst [vmem:[#allocation13_spill] sm:$0xff] %v4135_v19 }
  0xbe   :  { %v461_v28 = vpop.f32.mrf.mxu0 }
  0xbf   :  { %v1474_v55 = vmul.f32 %v4079_v52, %v461_v28  ;;  %v941_v28 = vmul.f32 0.5, %v940_v17 }
  0xc1   :  { %3160 = vmatmul.msk.f32.gmra.mxu0 %vm233_vm1, %v46_v33  ;;  %v138_v33 = vld [vmem:[%s5747_s1 + $0x190] sm:$0xff]  ;;  %v942_v39 = vsub.f32 1.5, %v941_v28 }
  0xc2   :  { %778 = vadd.xlane.f32.xlu1 %v777_v14  ;;  %v786_v31 = vsel %vm635_vm0, %v138_v33, 0.0  ;;  %v163_v14 = vld [vmem:[%s5748_s2 + $0x58] sm:$0xff] }
  0xc3   :  { %787 = vadd.xlane.f32.xlu0 %v786_v31  ;;  %v147_v33 = vld [vmem:[%s5747_s1 + $0x1d8] sm:$0xff]  ;;  %v164_v31 = vld [vmem:[%s5748_s2 + $0x60] sm:$0xff] }
  0xc4   :  { %3207 = vmatmul.msk.f32.gmra.mxu3 %vm635_vm0, %v157_v38  ;;  %v4165_v38 = vpop.xlane.xlu1 %685 }
  0xc5   :  { %vm994_vm10 = vweird.f32 %v4165_v38 }
  0xc6   :  { %v464_v47 = vpop.f32.mrf.mxu0 }
  0xc7   :  { %v1475_v32 = vmul.f32 %v4072_v45, %v464_v47  ;;  %v943_v47 = vmul.f32 %v4104_v0, %v942_v39 }
  0xc9   :  { %3161 = vmatmul.msk.f32.gmra.mxu0 %vm233_vm1, %v47_v49  ;;  %1639 = vmatpush.msrb.mxu1 %v1475_v32  ;;  %v161_v49 = vld [vmem:[%s5748_s2 + $0x48] sm:$0xff]  ;;  %v789_v32 = vsel %vm635_vm0, %v139_v6, 0.0  ;;  %v4189_v54 = vsel %vm946_vm8, %v4104_v0, %v943_v47  ;;  %v54_v6 = vld [vmem:[%s5746_s0 + $0xf0] sm:$0xff]  ;;  %vm1004_vm8 = vweird.f32 %v4101_v62 }
  0xca   :  { %793 = vadd.xlane.f32.xlu1 %v792_v36  ;;  %5810 = vst [vmem:[#allocation15_spill] sm:$0xff] %v4189_v54  ;;  %v813_v36 = vsel %vm635_vm0, %v147_v33, 0.0 }
  0xcb   :  { %1640 = vmatpush.msrb.mxu1 %v1474_v55  ;;  %v950_v55 = vmul.f32 %v3385_v44, %v949_v48  ;;  %814 = vadd.xlane.f32.xlu2 %v813_v36  ;;  %v143_v48 = vld [vmem:[%s5747_s1 + $0x1b8] sm:$0xff] }
  0xcc   :  { %3208 = vmatmul.msk.f32.vlgmr.msrb.gmra.mxu1 %vm635_vm0, %v158_v56  ;;  %v4191_v51 = vpop.xlane.xlu1 %682  ;;  %799 = vadd.xlane.f32.xlu0 %v798_v37 }
  0xcd   :  { %3386 = vrsqrt.f32 %v4191_v51  ;;  %v951_v1 = vmul.f32 0.5, %v950_v55  ;;  %vm984_vm2 = vweird.f32 %v4191_v51  ;;  %v819_v55 = vsel %vm635_vm0, %v149_v53, 0.0 }
  0xce   :  { %v467_v3 = vpop.f32.mrf.mxu0  ;;  %3388 = vrsqrt.f32 %v4199_v59 }
  0xcf   :  { %v1476_v34 = vmul.f32 %v4142_v22, %v467_v3  ;;  %v962_v3 = vsub.f32 1.5, %v961_v63  ;;  %v952_v9 = vsub.f32 1.5, %v951_v1  ;;  %3390 = vrsqrt.f32 %v4101_v62  ;;  %v4294_v63 = vpop.xlane.xlu2 %694 }
  0xd0   :  { %3392 = vrsqrt.f32 %v4165_v38 }
  0xd1   :  { %3162 = vmatmul.msk.f32.gmra.mxu0 %vm233_vm1, %v48_v8  ;;  %v963_v7 = vmul.f32 %v3383_v40, %v962_v3  ;;  %v953_v15 = vmul.f32 %v3385_v44, %v952_v9  ;;  %v55_v3 = vld [vmem:[%s5746_s0 + $0xf8] sm:$0xff]  ;;  %v4303_v9 = vpop.xlane.xlu0 %691  ;;  %3394 = vrsqrt.f32 %v4294_v63 }
  0xd2   :  { %790 = vadd.xlane.f32.xlu1 %v789_v32  ;;  %3396 = vrsqrt.f32 %v4303_v9 }
  0xd3   :  { %v4210_v8 = vpop.eup %3386  ;;  %v4229_v20 = vsel %vm966_vm14, %v3383_v40, %v963_v7  ;;  %vm1024_vm14 = vweird.f32 %v4294_v63 }
  0xd4   :  { %3209 = vmatmul.msk.f32.gmra.mxu1 %vm635_vm0, %v159_v11  ;;  %v4216_v13 = vpop.eup %3388  ;;  %v979_v11 = vmul.f32 %v4210_v8, %v4191_v51  ;;  %5812 = vst [vmem:[#allocation17_spill] sm:$0xff] %v4229_v20  ;;  %vm985_vm3 = vweird.f32 %v4210_v8  ;;  %v801_v51 = vsel %vm635_vm0, %v143_v48, 0.0 }
  0xd5   :  { %v969_v16 = vmul.f32 %v4216_v13, %v4199_v59  ;;  %vm975_vm5 = vweird.f32 %v4216_v13  ;;  %vm986_vm6 = vmor %vm984_vm2, %vm985_vm3  ;;  %802 = vadd.xlane.f32.xlu2 %v801_v51  ;;  %vm1014_vm2 = vweird.f32 %v4303_v9 }
  0xd6   :  { %v470_v23 = vpop.f32.mrf.mxu0  ;;  %v980_v17 = vmul.f32 %v4210_v8, %v979_v11  ;;  %vm976_vm7 = vmor %vm974_vm4, %vm975_vm5 }
  0xd7   :  { %v1477_v25 = vmul.f32 %v4135_v19, %v470_v23  ;;  %v970_v21 = vmul.f32 %v4216_v13, %v969_v16  ;;  %v4232_v23 = vsel %vm956_vm15, %v3385_v44, %v953_v15 }
  0xd8   :  { %5813 = vst [vmem:[#allocation18_spill] sm:$0xff] %v4232_v23  ;;  %v981_v28 = vmul.f32 0.5, %v980_v17 }
  0xd9   :  { %3163 = vmatmul.msk.f32.gmra.mxu0 %vm233_vm1, %v49_v24  ;;  %1668 = vmatpush.msra.mxu2 %v1477_v25  ;;  %v971_v40 = vmul.f32 0.5, %v970_v21 }
  0xdb   :  { %1669 = vmatpush.msra.mxu2 %v1476_v34  ;;  %v146_v34 = vld [vmem:[%s5747_s1 + $0x1d0] sm:$0xff]  ;;  %v972_v46 = vsub.f32 1.5, %v971_v40 }
  0xdc   :  { %3210 = vmatmul.msk.f32.vlgmr.msra.gmra.mxu2 %vm635_vm0, %v160_v35  ;;  %v810_v39 = vsel %vm635_vm0, %v146_v34, 0.0 }
  0xdd   :  { %811 = vadd.xlane.f32.xlu1 %v810_v39 }
  0xde   :  { %v473_v42 = vpop.f32.mrf.mxu0 }
  0xdf   :  { %v1478_v0 = vmul.f32 %v4197_v58, %v473_v42  ;;  %v982_v42 = vsub.f32 1.5, %v981_v28 }
  0xe1   :  { %3164 = vmatmul.msk.f32.gmra.mxu0 %vm233_vm1, %v50_v43  ;;  %v4260_v43 = vpop.eup %3390  ;;  %v983_v32 = vmul.f32 %v4210_v8, %v982_v42 }
  0xe2   :  { %v4262_v44 = vpop.eup %3392  ;;  %vm1005_vm9 = vweird.f32 %v4260_v43 }
  0xe3   :  { %v3395_v17 = vpop.eup %3394  ;;  %vm995_vm11 = vweird.f32 %v4262_v44  ;;  %vm1006_vm12 = vmor %vm1004_vm8, %vm1005_vm9 }
  0xe4   :  { %3211 = vmatmul.msk.f32.gmra.mxu2 %vm635_vm0, %v161_v49  ;;  %v999_v49 = vmul.f32 %v4260_v43, %v4101_v62  ;;  %v1019_v28 = vmul.f32 %v3395_v17, %v4294_v63  ;;  %v145_v62 = vld [vmem:[%s5747_s1 + $0x1c8] sm:$0xff]  ;;  %vm996_vm13 = vmor %vm994_vm10, %vm995_vm11  ;;  %vm1025_vm15 = vweird.f32 %v3395_v17 }
  0xe5   :  { %820 = vadd.xlane.f32.xlu1 %v819_v55  ;;  %v807_v34 = vsel %vm635_vm0, %v145_v62, 0.0  ;;  %v58_v55 = vld [vmem:[%s5746_s0 + $0x110] sm:$0xff]  ;;  %vm1026_vm4 = vmor %vm1024_vm14, %vm1025_vm15  ;;  %v169_v63 = vld [vmem:[%s5748_s2 + $0x88] sm:$0xff] }
  0xe6   :  { %v476_v56 = vpop.f32.mrf.mxu0  ;;  %v1000_v59 = vmul.f32 %v4260_v43, %v999_v49  ;;  %808 = vadd.xlane.f32.xlu0 %v807_v34  ;;  %v4353_v49 = vpop.xlane.xlu0 %697 }
  0xe7   :  { %v1479_v60 = vmul.f32 %v4189_v54, %v476_v56  ;;  %v989_v56 = vmul.f32 %v4262_v44, %v4165_v38  ;;  %vm1034_vm8 = vweird.f32 %v4353_v49 }
  0xe9   :  { %3165 = vmatmul.msk.f32.gmra.mxu0 %vm233_vm1, %v51_v10  ;;  %1697 = vmatpush.msrb.mxu3 %v1479_v60  ;;  %v973_v10 = vmul.f32 %v4216_v13, %v972_v46  ;;  %v4292_v60 = vsel %vm986_vm6, %v4210_v8, %v983_v32  ;;  %v1001_v8 = vmul.f32 0.5, %v1000_v59  ;;  %v57_v46 = vld [vmem:[%s5746_s0 + $0x108] sm:$0xff] }
  0xea   :  { %5814 = vst [vmem:[#allocation19_spill] sm:$0xff] %v4292_v60 }
  0xeb   :  { %1698 = vmatpush.msrb.mxu3 %v1478_v0  ;;  %v990_v0 = vmul.f32 %v4262_v44, %v989_v56  ;;  %v1002_v15 = vsub.f32 1.5, %v1001_v8 }
  0xec   :  { %3212 = vmatmul.msk.f32.vlgmr.msrb.gmra.mxu3 %vm635_vm0, %v162_v2  ;;  %v4298_v2 = vsel %vm976_vm7, %v4216_v13, %v973_v10  ;;  %v166_v13 = vld [vmem:[%s5748_s2 + $0x70] sm:$0xff] }
  0xed   :  { %5815 = vst [vmem:[#allocation20_spill] sm:$0xff] %v4298_v2  ;;  %v991_v7 = vmul.f32 0.5, %v990_v0  ;;  %v1003_v33 = vmul.f32 %v4260_v43, %v1002_v15 }
  0xee   :  { %v479_v18 = vpop.f32.mrf.mxu0 }
  0xef   :  { %v1480_v35 = vmul.f32 %v4232_v23, %v479_v18  ;;  %v992_v21 = vsub.f32 1.5, %v991_v7  ;;  %v4341_v36 = vsel %vm1006_vm12, %v4260_v43, %v1003_v33  ;;  %vm1064_vm12 = vweird.f32 %v4257_v41 }
  0xf0   :  { %5816 = vst [vmem:[#allocation21_spill] sm:$0xff] %v4341_v36 }
  0xf1   :  { %3166 = vmatmul.msk.f32.gmra.mxu0 %vm233_vm1, %v52_v5  ;;  %v144_v5 = vld [vmem:[%s5747_s1 + $0x1c0] sm:$0xff] }
  0xf2   :  { %v804_v16 = vsel %vm635_vm0, %v144_v5, 0.0 }
  0xf3   :  { %805 = vadd.xlane.f32.xlu1 %v804_v16  ;;  %v148_v16 = vld [vmem:[%s5747_s1 + $0x1e0] sm:$0xff] }
  0xf4   :  { %3213 = vmatmul.msk.f32.gmra.mxu3 %vm635_vm0, %v163_v14  ;;  %v4316_v14 = vpop.xlane.xlu1 %703 }
  0xf5   :  { %vm1054_vm14 = vweird.f32 %v4316_v14 }
  0xf6   :  { %v482_v24 = vpop.f32.mrf.mxu0 }
  0xf7   :  { %v1481_v25 = vmul.f32 %v4229_v20, %v482_v24 }
  0xf9   :  { %3167 = vmatmul.msk.f32.gmra.mxu0 %vm233_vm1, %v53_v27  ;;  %1726 = vmatpush.msra.mxu1 %v1481_v25  ;;  %v56_v27 = vld [vmem:[%s5746_s0 + $0x100] sm:$0xff]  ;;  %v3397_v25 = vpop.eup %3396 }
  0xfa   :  { %v1009_v38 = vmul.f32 %v3397_v25, %v4303_v9  ;;  %vm1015_vm3 = vweird.f32 %v3397_v25 }
  0xfb   :  { %1727 = vmatpush.msra.mxu1 %v1480_v35  ;;  %v993_v35 = vmul.f32 %v4262_v44, %v992_v21  ;;  %vm1016_vm5 = vmor %vm1014_vm2, %vm1015_vm3  ;;  %v816_v21 = vsel %vm635_vm0, %v148_v16, 0.0  ;;  %v173_v16 = vld [vmem:[%s5748_s2 + $0xa8] sm:$0xff] }
  0xfc   :  { %3214 = vmatmul.msk.f32.vlgmr.msra.gmra.mxu1 %vm635_vm0, %v164_v31  ;;  %v1020_v31 = vmul.f32 %v3395_v17, %v1019_v28  ;;  %v4343_v37 = vpop.xlane.xlu1 %700  ;;  %v1010_v39 = vmul.f32 %v3397_v25, %v1009_v38  ;;  %817 = vadd.xlane.f32.xlu2 %v816_v21 }
  0xfd   :  { %v4346_v40 = vsel %vm996_vm13, %v4262_v44, %v993_v35  ;;  %3398 = vrsqrt.f32 %v4343_v37  ;;  %v168_v44 = vld [vmem:[%s5748_s2 + $0x80] sm:$0xff]  ;;  %vm1044_vm6 = vweird.f32 %v4343_v37 }
  0xfe   :  { %v485_v47 = vpop.f32.mrf.mxu0  ;;  %5817 = vst [vmem:[#allocation22_spill] sm:$0xff] %v4346_v40  ;;  %3400 = vrsqrt.f32 %v4353_v49  ;;  %v1011_v32 = vmul.f32 0.5, %v1010_v39 }
  0xff   :  { %v1482_v11 = vmul.f32 %v4298_v2, %v485_v47  ;;  %3402 = vrsqrt.f32 %v4257_v41 }
 0x100   :  { %3404 = vrsqrt.f32 %v4316_v14 }
 0x101   :  { %3168 = vmatmul.msk.f32.gmra.mxu0 %vm233_vm1, %v54_v6  ;;  %v1021_v6 = vmul.f32 0.5, %v1020_v31  ;;  %v171_v31 = vld [vmem:[%s5748_s2 + $0x98] sm:$0xff] }
 0x103   :  { %v1022_v48 = vsub.f32 1.5, %v1021_v6  ;;  %v3399_v53 = vpop.eup %3398 }
 0x104   :  { %3215 = vmatmul.msk.f32.gmra.mxu1 %vm635_vm0, %v165_v50  ;;  %v1012_v50 = vsub.f32 1.5, %v1011_v32  ;;  %v3401_v56 = vpop.eup %3400  ;;  %v1039_v10 = vmul.f32 %v3399_v53, %v4343_v37  ;;  %vm1045_vm7 = vweird.f32 %v3399_v53 }
 0x105   :  { %v1023_v59 = vmul.f32 %v3395_v17, %v1022_v48  ;;  %v1029_v0 = vmul.f32 %v3401_v56, %v4353_v49  ;;  %v4396_v28 = vpop.eup %3402  ;;  %vm1035_vm9 = vweird.f32 %v3401_v56  ;;  %vm1046_vm10 = vmor %vm1044_vm6, %vm1045_vm7 }
 0x106   :  { %v488_v1 = vpop.f32.mrf.mxu0  ;;  %v3405_v34 = vpop.eup %3404  ;;  %v1059_v38 = vmul.f32 %v4396_v28, %v4257_v41  ;;  %vm1036_vm11 = vmor %vm1034_vm8, %vm1035_vm9  ;;  %vm1065_vm13 = vweird.f32 %v4396_v28 }
 0x107   :  { %v1483_v18 = vmul.f32 %v4292_v60, %v488_v1  ;;  %v1013_v1 = vmul.f32 %v3397_v25, %v1012_v50  ;;  %v1030_v9 = vmul.f32 %v3401_v56, %v1029_v0  ;;  %v1049_v37 = vmul.f32 %v3405_v34, %v4316_v14  ;;  %v4423_v50 = vpop.xlane.xlu0 %709  ;;  %vm1066_vm2 = vmor %vm1064_vm12, %vm1065_vm13 }
 0x108   :  { %vm1055_vm15 = vweird.f32 %v3405_v34  ;;  %vm1074_vm6 = vweird.f32 %v4423_v50 }
 0x109   :  { %3169 = vmatmul.msk.f32.gmra.mxu0 %vm233_vm1, %v55_v3  ;;  %1755 = vmatpush.msrb.mxu2 %v1483_v18  ;;  %v1040_v3 = vmul.f32 %v3399_v53, %v1039_v10  ;;  %v4374_v18 = vsel %vm1026_vm4, %v3395_v17, %v1023_v59  ;;  %v4376_v8 = vsel %vm1016_vm5, %v3397_v25, %v1013_v1  ;;  %v170_v17 = vld [vmem:[%s5748_s2 + $0x90] sm:$0xff]  ;;  %v4393_v25 = vpop.xlane.xlu2 %724  ;;  %v4434_v59 = vpop.xlane.xlu1 %721  ;;  %vm1056_vm3 = vmor %vm1054_vm14, %vm1055_vm15 }
 0x10a   :  { %5818 = vst [vmem:[#allocation23_spill] sm:$0xff] %v4374_v18 }
 0x10b   :  { %1756 = vmatpush.msrb.mxu2 %v1482_v11  ;;  %5819 = vst [vmem:[#allocation24_spill] sm:$0xff] %v4376_v8  ;;  %v59_v11 = vld [vmem:[%s5746_s0 + $0x118] sm:$0xff]  ;;  %v1041_v7 = vmul.f32 0.5, %v1040_v3 }
 0x10c   :  { %3216 = vmatmul.msk.f32.vlgmr.msrb.gmra.mxu2 %vm635_vm0, %v166_v13 }
 0x10e   :  { %v491_v24 = vpop.f32.mrf.mxu0 }
 0x10f   :  { %v1484_v43 = vmul.f32 %v4346_v40, %v491_v24  ;;  %v1031_v24 = vmul.f32 0.5, %v1030_v9  ;;  %v62_v9 = vld [vmem:[%s5746_s0 + $0x130] sm:$0xff] }
 0x111   :  { %3170 = vmatmul.msk.f32.gmra.mxu0 %vm233_vm1, %v56_v27  ;;  %v1042_v27 = vsub.f32 1.5, %v1041_v7  ;;  %v1032_v33 = vsub.f32 1.5, %v1031_v24  ;;  %v4416_v49 = vpop.xlane.xlu2 %712  ;;  %v151_v7 = vld [vmem:[%s5747_s1 + $0x1f8] sm:$0xff] }
 0x112   :  { %3406 = vrsqrt.f32 %v4416_v49  ;;  %vm1084_vm4 = vweird.f32 %v4416_v49 }
 0x113   :  { %v1043_v35 = vmul.f32 %v3399_v53, %v1042_v27  ;;  %v1033_v39 = vmul.f32 %v3401_v56, %v1032_v33  ;;  %3408 = vrsqrt.f32 %v4423_v50 }
 0x114   :  { %3217 = vmatmul.msk.f32.gmra.mxu2 %vm635_vm0, %v167_v26  ;;  %v60_v26 = vld [vmem:[%s5746_s0 + $0x120] sm:$0xff] }
 0x115   :  { %v4414_v6 = vsel %vm1036_vm11, %v3401_v56, %v1033_v39  ;;  %v150_v56 = vld [vmem:[%s5747_s1 + $0x1f0] sm:$0xff] }
 0x116   :  { %v494_v42 = vpop.f32.mrf.mxu0  ;;  %5821 = vst [vmem:[#allocation26_spill] sm:$0xff] %v4414_v6  ;;  %v822_v0 = vsel %vm635_vm0, %v150_v56, 0.0 }
 0x117   :  { %v1485_v47 = vmul.f32 %v4341_v36, %v494_v42  ;;  %v1060_v42 = vmul.f32 %v4396_v28, %v1059_v38  ;;  %823 = vadd.xlane.f32.xlu0 %v822_v0  ;;  %v63_v38 = vld [vmem:[%s5746_s0 + $0x138] sm:$0xff] }
 0x119   :  { %3171 = vmatmul.msk.f32.gmra.mxu0 %vm233_vm1, %v57_v46  ;;  %1784 = vmatpush.msra.mxu3 %v1485_v47  ;;  %v4412_v46 = vsel %vm1046_vm10, %v3399_v53, %v1043_v35  ;;  %v1050_v47 = vmul.f32 %v3405_v34, %v1049_v37  ;;  %v1061_v48 = vmul.f32 0.5, %v1060_v42  ;;  %v4474_v37 = vpop.xlane.xlu0 %715 }
 0x11a   :  { %5820 = vst [vmem:[#allocation25_spill] sm:$0xff] %v4412_v46  ;;  %vm1094_vm12 = vweird.f32 %v4474_v37 }
 0x11b   :  { %1785 = vmatpush.msra.mxu3 %v1484_v43  ;;  %v1062_v10 = vsub.f32 1.5, %v1061_v48  ;;  %v64_v48 = vld [vmem:[%s5746_s0 + $0x140] sm:$0xff] }
 0x11c   :  { %3218 = vmatmul.msk.f32.vlgmr.msra.gmra.mxu3 %vm635_vm0, %v168_v44  ;;  %v61_v44 = vld [vmem:[%s5746_s0 + $0x128] sm:$0xff] }
 0x11d   :  { %v1063_v41 = vmul.f32 %v4396_v28, %v1062_v10 }
 0x11e   :  { %v497_v51 = vpop.f32.mrf.mxu0 }
 0x11f   :  { %v1486_v15 = vmul.f32 %v4376_v8, %v497_v51  ;;  %v172_v51 = vld [vmem:[%s5748_s2 + $0xa0] sm:$0xff]  ;;  %v4463_v24 = vsel %vm1066_vm2, %v4396_v28, %v1063_v41  ;;  %v65_v41 = vld [vmem:[%s5746_s0 + $0x148] sm:$0xff]  ;;  %vm1124_vm2 = vweird.f32 %v4393_v25 }
 0x120   :  { %5822 = vst [vmem:[#allocation27_spill] sm:$0xff] %v4463_v24 }
 0x121   :  { %3172 = vmatmul.msk.f32.gmra.mxu0 %vm233_vm1, %v58_v55  ;;  %v1051_v55 = vmul.f32 0.5, %v1050_v47 }
 0x123   :  { %v1052_v1 = vsub.f32 1.5, %v1051_v55 }
 0x124   :  { %3219 = vmatmul.msk.f32.gmra.mxu3 %vm635_vm0, %v169_v63  ;;  %v4437_v63 = vpop.eup %3406 }
 0x125   :  { %vm1085_vm5 = vweird.f32 %v4437_v63 }
 0x126   :  { %v500_v5 = vpop.f32.mrf.mxu0  ;;  %vm1086_vm8 = vmor %vm1084_vm4, %vm1085_vm5  ;;  %vm1114_vm4 = vweird.f32 %v4434_v59 }
 0x127   :  { %v1487_v13 = vmul.f32 %v4374_v18, %v500_v5  ;;  %v3409_v5 = vpop.eup %3408 }
 0x128   :  { %v1069_v14 = vmul.f32 %v3409_v5, %v4423_v50  ;;  %vm1075_vm7 = vweird.f32 %v3409_v5 }
 0x129   :  { %3173 = vmatmul.msk.f32.gmra.mxu0 %vm233_vm1, %v59_v11  ;;  %1813 = vmatpush.msrb.mxu1 %v1487_v13  ;;  %v4445_v11 = vpop.f32.mrf.mxu2  ;;  %v1079_v13 = vmul.f32 %v4437_v63, %v4416_v49  ;;  %v175_v49 = vld [vmem:[%s5748_s2 + $0xb8] sm:$0xff]  ;;  %vm1076_vm9 = vmor %vm1074_vm6, %vm1075_vm7 }
 0x12a   :  { %v1070_v27 = vmul.f32 %v3409_v5, %v1069_v14  ;;  %v4517_v14 = vpop.xlane.xlu2 %742 }
 0x12b   :  { %1814 = vmatpush.msrb.mxu1 %v1486_v15  ;;  %v825_v15 = vsel %vm635_vm0, %v151_v7, 0.0  ;;  %v1080_v21 = vmul.f32 %v4437_v63, %v1079_v13 }
 0x12c   :  { %3220 = vmatmul.msk.f32.vlgmr.msrb.gmra.mxu1 %vm635_vm0, %v170_v17  ;;  %v1053_v17 = vmul.f32 %v3405_v34, %v1052_v1  ;;  %826 = vadd.xlane.f32.xlu2 %v825_v15  ;;  %v1071_v42 = vmul.f32 0.5, %v1070_v27 }
 0x12e   :  { %v503_v62 = vpop.f32.mrf.mxu0  ;;  %v4465_v33 = vsel %vm1056_vm3, %v3405_v34, %v1053_v17  ;;  %v174_v34 = vld [vmem:[%s5748_s2 + $0xb0] sm:$0xff] }
 0x12f   :  { %v1488_v53 = vmul.f32 %v4414_v6, %v503_v62  ;;  %5823 = vst [vmem:[#allocation28_spill] sm:$0xff] %v4465_v33  ;;  %v4467_v62 = vpop.xlane.xlu1 %718 }
 0x130   :  { %3410 = vrsqrt.f32 %v4467_v62  ;;  %vm1104_vm10 = vweird.f32 %v4467_v62 }
 0x131   :  { %3174 = vmatmul.msk.f32.gmra.mxu0 %vm233_vm1, %v60_v26  ;;  %3412 = vrsqrt.f32 %v4474_v37  ;;  %v4482_v39 = vpop.f32.mrf.mxu2 }
 0x132   :  { %3414 = vrsqrt.f32 %v4393_v25 }
 0x133   :  { %3416 = vrsqrt.f32 %v4434_v59 }
 0x134   :  { %3221 = vmatmul.msk.f32.gmra.mxu1 %vm635_vm0, %v171_v31  ;;  %v1081_v31 = vmul.f32 0.5, %v1080_v21 }
 0x136   :  { %v506_v43 = vpop.f32.mrf.mxu0  ;;  %v1082_v47 = vsub.f32 1.5, %v1081_v31 }
 0x137   :  { %v1489_v32 = vmul.f32 %v4412_v46, %v506_v43  ;;  %v3411_v43 = vpop.eup %3410 }
 0x138   :  { %v1083_v55 = vmul.f32 %v4437_v63, %v1082_v47  ;;  %vm1105_vm11 = vweird.f32 %v3411_v43 }
 0x139   :  { %3175 = vmatmul.msk.f32.gmra.mxu0 %vm233_vm1, %v61_v44  ;;  %1842 = vmatpush.msra.mxu2 %v1489_v32  ;;  %v1072_v44 = vsub.f32 1.5, %v1071_v42  ;;  %v4498_v0 = vpop.f32.mrf.mxu2  ;;  %v177_v42 = vld [vmem:[%s5748_s2 + $0xc8] sm:$0xff]  ;;  %vm1106_vm14 = vmor %vm1104_vm10, %vm1105_vm11 }
 0x13a   :  { %v4502_v50 = vsel %vm1086_vm8, %v4437_v63, %v1083_v55  ;;  %v176_v63 = vld [vmem:[%s5748_s2 + $0xc0] sm:$0xff] }
 0x13b   :  { %1843 = vmatpush.msra.mxu2 %v1488_v53  ;;  %v3413_v53 = vpop.eup %3412  ;;  %v1073_v10 = vmul.f32 %v3409_v5, %v1072_v44  ;;  %5824 = vst [vmem:[#allocation29_spill] sm:$0xff] %v4502_v50 }
 0x13c   :  { %3222 = vmatmul.msk.f32.vlgmr.msra.gmra.mxu2 %vm635_vm0, %v172_v51  ;;  %v1099_v51 = vmul.f32 %v3411_v43, %v4467_v62  ;;  %v1089_v56 = vmul.f32 %v3413_v53, %v4474_v37  ;;  %v3415_v21 = vpop.eup %3414  ;;  %vm1095_vm13 = vweird.f32 %v3413_v53  ;;  %v4536_v37 = vpop.xlane.xlu2 %730 }
 0x13d   :  { %v3417_v31 = vpop.eup %3416  ;;  %vm1096_vm15 = vmor %vm1094_vm12, %vm1095_vm13  ;;  %3418 = vrsqrt.f32 %v4536_v37  ;;  %vm1125_vm3 = vweird.f32 %v3415_v21  ;;  %vm1144_vm8 = vweird.f32 %v4536_v37 }
 0x13e   :  { %v509_v3 = vpop.f32.mrf.mxu0  ;;  %v1100_v1 = vmul.f32 %v3411_v43, %v1099_v51  ;;  %v1109_v62 = vmul.f32 %v3417_v31, %v4434_v59  ;;  %vm1115_vm5 = vweird.f32 %v3417_v31  ;;  %vm1126_vm6 = vmor %vm1124_vm2, %vm1125_vm3 }
 0x13f   :  { %v1490_v28 = vmul.f32 %v4465_v33, %v509_v3  ;;  %v1090_v3 = vmul.f32 %v3413_v53, %v1089_v56  ;;  %vm1116_vm7 = vmor %vm1114_vm4, %vm1115_vm5 }
 0x141   :  { %3176 = vmatmul.msk.f32.gmra.mxu0 %vm233_vm1, %v62_v9  ;;  %v4504_v9 = vsel %vm1076_vm9, %v3409_v5, %v1073_v10  ;;  %v1091_v5 = vmul.f32 0.5, %v1090_v3  ;;  %v4520_v27 = vpop.f32.mrf.mxu2  ;;  %v4547_v3 = vpop.xlane.xlu0 %727 }
 0x142   :  { %5825 = vst [vmem:[#allocation30_spill] sm:$0xff] %v4504_v9  ;;  %3420 = vrsqrt.f32 %v4547_v3  ;;  %vm1134_vm10 = vweird.f32 %v4547_v3 }
 0x144   :  { %3223 = vmatmul.msk.f32.gmra.mxu2 %vm635_vm0, %v173_v16  ;;  %v1101_v16 = vmul.f32 0.5, %v1100_v1 }
 0x146   :  { %v512_v26 = vpop.f32.mrf.mxu0  ;;  %v1102_v17 = vsub.f32 1.5, %v1101_v16  ;;  %v3419_v16 = vpop.eup %3418 }
 0x147   :  { %v1491_v35 = vmul.f32 %v4463_v24, %v512_v26  ;;  %v1092_v26 = vsub.f32 1.5, %v1091_v5  ;;  %v68_v5 = vld [vmem:[%s5746_s0 + $0x160] sm:$0xff]  ;;  %vm1145_vm9 = vweird.f32 %v3419_v16 }
 0x148   :  { %vm1146_vm12 = vmor %vm1144_vm8, %vm1145_vm9 }
 0x149   :  { %3177 = vmatmul.msk.f32.gmra.mxu0 %vm233_vm1, %v63_v38  ;;  %1871 = vmatpush.msrb.mxu3 %v1491_v35  ;;  %v66_v35 = vld [vmem:[%s5746_s0 + $0x150] sm:$0xff]  ;;  %v1093_v47 = vmul.f32 %v3413_v53, %v1092_v26  ;;  %v4545_v10 = vpop.f32.mrf.mxu2  ;;  %v1139_v26 = vmul.f32 %v3419_v16, %v4536_v37 }
 0x14a   :  { %5828 = vst [vmem:[#allocation33_spill] sm:$0xff] %v4545_v10 }
 0x14b   :  { %1872 = vmatpush.msrb.mxu3 %v1490_v28  ;;  %v1119_v28 = vmul.f32 %v3415_v21, %v4393_v25  ;;  %v4538_v51 = vsel %vm1096_vm15, %v3413_v53, %v1093_v47  ;;  %v178_v53 = vld [vmem:[%s5748_s2 + $0xd0] sm:$0xff]  ;;  %v179_v25 = vld [vmem:[%s5748_s2 + $0xd8] sm:$0xff] }
 0x14c   :  { %3224 = vmatmul.msk.f32.vlgmr.msrb.gmra.mxu3 %vm635_vm0, %v174_v34  ;;  %v1103_v34 = vmul.f32 %v3411_v43, %v1102_v17  ;;  %5827 = vst [vmem:[#allocation32_spill] sm:$0xff] %v4538_v51  ;;  %v3421_v17 = vpop.eup %3420 }
 0x14d   :  { %v1120_v44 = vmul.f32 %v3415_v21, %v1119_v28  ;;  %v1129_v28 = vmul.f32 %v3421_v17, %v4547_v3  ;;  %vm1135_vm11 = vweird.f32 %v3421_v17 }
 0x14e   :  { %v515_v32 = vpop.f32.mrf.mxu0  ;;  %vm1136_vm13 = vmor %vm1134_vm10, %vm1135_vm11 }
 0x14f   :  { %v1492_v15 = vmul.f32 %v4504_v9, %v515_v32  ;;  %v4534_v32 = vsel %vm1106_vm14, %v3411_v43, %v1103_v34  ;;  %v1121_v1 = vmul.f32 0.5, %v1120_v44 }
 0x150   :  { %5826 = vst [vmem:[#allocation31_spill] sm:$0xff] %v4534_v32 }
 0x151   :  { %3178 = vmatmul.msk.f32.gmra.mxu0 %vm233_vm1, %v64_v48  ;;  %v1110_v48 = vmul.f32 %v3417_v31, %v1109_v62  ;;  %v1130_v62 = vmul.f32 %v3421_v17, %v1129_v28  ;;  %v181_v28 = vld [vmem:[%s5748_s2 + $0xe8] sm:$0xff] }
 0x154   :  { %3225 = vmatmul.msk.f32.gmra.mxu3 %vm635_vm0, %v175_v49  ;;  %v67_v49 = vld [vmem:[%s5746_s0 + $0x158] sm:$0xff] }
 0x156   :  { %v518_v13 = vpop.f32.mrf.mxu0 }
 0x157   :  { %v1493_v7 = vmul.f32 %v4502_v50, %v518_v13  ;;  %v1111_v13 = vmul.f32 0.5, %v1110_v48 }
 0x159   :  { %3179 = vmatmul.msk.f32.gmra.mxu0 %vm233_vm1, %v65_v41  ;;  %1900 = vmatpush.msra.mxu1 %v1493_v7  ;;  %v1122_v41 = vsub.f32 1.5, %v1121_v1  ;;  %v4555_v7 = vpop.xlane.xlu1 %739  ;;  %v4583_v1 = vpop.xlane.xlu2 %733 }
 0x15a   :  { %vm1154_vm2 = vweird.f32 %v4583_v1  ;;  %vm1174_vm8 = vweird.f32 %v4555_v7 }
 0x15b   :  { %1901 = vmatpush.msra.mxu1 %v1492_v15  ;;  %v1112_v15 = vsub.f32 1.5, %v1111_v13 }
 0x15c   :  { %3226 = vmatmul.msk.f32.vlgmr.msra.gmra.mxu1 %vm635_vm0, %v176_v63 }
 0x15d   :  { %v1113_v34 = vmul.f32 %v3417_v31, %v1112_v15 }
 0x15e   :  { %v521_v38 = vpop.f32.mrf.mxu0 }
 0x15f   :  { %v1494_v43 = vmul.f32 %v4538_v51, %v521_v38  ;;  %v1123_v38 = vmul.f32 %v3415_v21, %v1122_v41  ;;  %v4576_v44 = vsel %vm1116_vm7, %v3417_v31, %v1113_v34  ;;  %v180_v31 = vld [vmem:[%s5748_s2 + $0xe0] sm:$0xff] }
 0x160   :  { %5830 = vst [vmem:[#allocation35_spill] sm:$0xff] %v4576_v44 }
 0x161   :  { %3180 = vmatmul.msk.f32.gmra.mxu0 %vm233_vm1, %v66_v35  ;;  %v4568_v35 = vpop.f32.mrf.mxu2  ;;  %v4572_v59 = vsel %vm1126_vm6, %v3415_v21, %v1123_v38  ;;  %v4574_v47 = vpop.xlane.xlu1 %736  ;;  %vm1184_vm6 = vweird.f32 %v4517_v14 }
 0x162   :  { %5829 = vst [vmem:[#allocation34_spill] sm:$0xff] %v4572_v59  ;;  %3422 = vrsqrt.f32 %v4574_v47  ;;  %vm1164_vm14 = vweird.f32 %v4574_v47 }
 0x163   :  { %3424 = vrsqrt.f32 %v4583_v1 }
 0x164   :  { %3227 = vmatmul.msk.f32.gmra.mxu1 %vm635_vm0, %v177_v42  ;;  %v1140_v42 = vmul.f32 %v3419_v16, %v1139_v26  ;;  %3426 = vrsqrt.f32 %v4517_v14 }
 0x165   :  { %3428 = vrsqrt.f32 %v4555_v7 }
 0x166   :  { %v524_v55 = vpop.f32.mrf.mxu0 }
 0x167   :  { %v1495_v56 = vmul.f32 %v4534_v32, %v524_v55  ;;  %v69_v55 = vld [vmem:[%s5746_s0 + $0x168] sm:$0xff] }
 0x168   :  { %v3423_v41 = vpop.eup %3422 }
 0x169   :  { %3181 = vmatmul.msk.f32.gmra.mxu0 %vm233_vm1, %v67_v49  ;;  %1929 = vmatpush.msrb.mxu2 %v1495_v56  ;;  %v1141_v56 = vmul.f32 0.5, %v1140_v42  ;;  %v3425_v26 = vpop.eup %3424  ;;  %v1159_v38 = vmul.f32 %v3423_v41, %v4574_v47  ;;  %vm1165_vm15 = vweird.f32 %v3423_v41 }
 0x16a   :  { %v1149_v37 = vmul.f32 %v3425_v26, %v4583_v1  ;;  %vm1155_vm3 = vweird.f32 %v3425_v26  ;;  %vm1166_vm4 = vmor %vm1164_vm14, %vm1165_vm15 }
 0x16b   :  { %1930 = vmatpush.msrb.mxu2 %v1494_v43  ;;  %v1131_v43 = vmul.f32 0.5, %v1130_v62  ;;  %v1142_v13 = vsub.f32 1.5, %v1141_v56  ;;  %v1160_v42 = vmul.f32 %v3423_v41, %v1159_v38  ;;  %v71_v56 = vld [vmem:[%s5746_s0 + $0x178] sm:$0xff]  ;;  %v3427_v38 = vpop.eup %3426  ;;  %vm1156_vm5 = vmor %vm1154_vm2, %vm1155_vm3 }
 0x16c   :  { %3228 = vmatmul.msk.f32.vlgmr.msrb.gmra.mxu2 %vm635_vm0, %v178_v53  ;;  %v4591_v53 = vpop.f32.mrf.mxu2  ;;  %v1179_v47 = vmul.f32 %v3427_v38, %v4517_v14  ;;  %vm1185_vm7 = vweird.f32 %v3427_v38 }
 0x16d   :  { %v1132_v15 = vsub.f32 1.5, %v1131_v43  ;;  %vm1186_vm10 = vmor %vm1184_vm6, %vm1185_vm7 }
 0x16e   :  { %v527_v63 = vpop.f32.mrf.mxu0 }
 0x16f   :  { %v1496_v21 = vmul.f32 %v4576_v44, %v527_v63  ;;  %v70_v63 = vld [vmem:[%s5746_s0 + $0x170] sm:$0xff]  ;;  %v1133_v34 = vmul.f32 %v3421_v17, %v1132_v15 }
 0x171   :  { %3182 = vmatmul.msk.f32.gmra.mxu0 %vm233_vm1, %v68_v5 }
 0x174   :  { %3229 = vmatmul.msk.f32.gmra.mxu2 %vm635_vm0, %v179_v25  ;;  %v1143_v25 = vmul.f32 %v3419_v16, %v1142_v13  ;;  %v4608_v3 = vpop.f32.mrf.mxu2  ;;  %v4622_v13 = vpop.xlane.xlu0 %748 }
 0x175   :  { %3430 = vrsqrt.f32 %v4622_v13 }
 0x176   :  { %v530_v48 = vpop.f32.mrf.mxu0  ;;  %v4606_v62 = vsel %vm1146_vm12, %v3419_v16, %v1143_v25  ;;  %v182_v16 = vld [vmem:[%s5748_s2 + $0xf0] sm:$0xff]  ;;  %v4627_v25 = vpop.xlane.xlu1 %745  ;;  %vm1204_vm12 = vweird.f32 %v4622_v13 }
 0x177   :  { %v1497_v49 = vmul.f32 %v4572_v59, %v530_v48  ;;  %5831 = vst [vmem:[#allocation36_spill] sm:$0xff] %v4606_v62  ;;  %v1150_v48 = vmul.f32 %v3425_v26, %v1149_v37  ;;  %3432 = vrsqrt.f32 %v4627_v25  ;;  %vm1194_vm14 = vweird.f32 %v4627_v25 }
 0x179   :  { %3183 = vmatmul.msk.f32.gmra.mxu0 %vm233_vm1, %v69_v55  ;;  %1958 = vmatpush.msra.mxu3 %v1497_v49  ;;  %v4610_v55 = vsel %vm1136_vm13, %v3421_v17, %v1133_v34  ;;  %v1151_v17 = vmul.f32 0.5, %v1150_v48  ;;  %v3429_v34 = vpop.eup %3428  ;;  %v183_v48 = vld [vmem:[%s5748_s2 + $0xf8] sm:$0xff] }
 0x17a   :  { %5832 = vst [vmem:[#allocation37_spill] sm:$0xff] %v4610_v55  ;;  %vm1175_vm9 = vweird.f32 %v3429_v34 }
 0x17b   :  { %1959 = vmatpush.msra.mxu3 %v1496_v21  ;;  %vm1176_vm11 = vmor %vm1174_vm8, %vm1175_vm9 }
 0x17c   :  { %3230 = vmatmul.msk.f32.vlgmr.msra.gmra.mxu3 %vm635_vm0, %v180_v31  ;;  %v1161_v31 = vmul.f32 0.5, %v1160_v42  ;;  %v4632_v42 = vpop.xlane.xlu2 %754  ;;  %v4642_v1 = vpop.xlane.xlu0 %751 }
 0x17d   :  { %3434 = vrsqrt.f32 %v4632_v42  ;;  %vm1214_vm6 = vweird.f32 %v4642_v1 }
 0x17e   :  { %v533_v5 = vpop.f32.mrf.mxu0  ;;  %v1162_v15 = vsub.f32 1.5, %v1161_v31  ;;  %v1180_v31 = vmul.f32 %v3427_v38, %v1179_v47  ;;  %3436 = vrsqrt.f32 %v4642_v1 }
 0x17f   :  { %v1498_v43 = vmul.f32 %v4610_v55, %v533_v5 }
 0x180   :  { %v1163_v37 = vmul.f32 %v3423_v41, %v1162_v15 }
 0x181   :  { %3184 = vmatmul.msk.f32.gmra.mxu0 %vm233_vm1, %v70_v63  ;;  %v1152_v63 = vsub.f32 1.5, %v1151_v17 }
 0x184   :  { %3231 = vmatmul.msk.f32.gmra.mxu3 %vm635_vm0, %v181_v28  ;;  %v4629_v28 = vpop.f32.mrf.mxu2  ;;  %v4660_v9 = vpop.xlane.xlu0 %766 }
 0x186   :  { %v536_v49 = vpop.f32.mrf.mxu0 }
 0x187   :  { %v1499_v21 = vmul.f32 %v4606_v62, %v536_v49  ;;  %v1153_v49 = vmul.f32 %v3425_v26, %v1152_v63  ;;  %v4649_v63 = vpop.xlane.xlu1 %760 }
 0x188   :  { %3438 = vrsqrt.f32 %v4649_v63 }
 0x189   :  { %3185 = vmatmul.msk.f32.gmra.mxu0 %vm233_vm1, %v71_v56  ;;  %1987 = vmatpush.msrb.mxu1 %v1499_v21  ;;  %v1169_v56 = vmul.f32 %v3429_v34, %v4555_v7  ;;  %v4640_v21 = vsel %vm1166_vm4, %v3423_v41, %v1163_v37  ;;  %v184_v41 = vld [vmem:[%s5748_s2 + $0x100] sm:$0xff]  ;;  %vm1224_vm4 = vweird.f32 %v4632_v42 }
 0x18a   :  { %5833 = vst [vmem:[#allocation38_spill] sm:$0xff] %v4640_v21 }
 0x18b   :  { %1988 = vmatpush.msrb.mxu1 %v1498_v43  ;;  %v4644_v43 = vsel %vm1156_vm5, %v3425_v26, %v1153_v49  ;;  %v1170_v15 = vmul.f32 %v3429_v34, %v1169_v56  ;;  %v1181_v26 = vmul.f32 0.5, %v1180_v31  ;;  %v3431_v49 = vpop.eup %3430  ;;  %v185_v31 = vld [vmem:[%s5748_s2 + $0x108] sm:$0xff] }
 0x18c   :  { %3232 = vmatmul.msk.f32.vlgmr.msrb.gmra.mxu1 %vm635_vm0, %v182_v16  ;;  %5834 = vst [vmem:[#allocation39_spill] sm:$0xff] %v4644_v43  ;;  %v4655_v37 = vpop.f32.mrf.mxu2  ;;  %v3433_v50 = vpop.eup %3432  ;;  %vm1205_vm13 = vweird.f32 %v3431_v49 }
 0x18d   :  { %v1171_v47 = vmul.f32 0.5, %v1170_v15  ;;  %v1182_v56 = vsub.f32 1.5, %v1181_v26  ;;  %vm1195_vm15 = vweird.f32 %v3433_v50  ;;  %vm1206_vm2 = vmor %vm1204_vm12, %vm1205_vm13 }
 0x18e   :  { %v539_v5 = vpop.f32.mrf.mxu0  ;;  %vm1196_vm3 = vmor %vm1194_vm14, %vm1195_vm15 }
 0x18f   :  { %v1500_v51 = vmul.f32 %v4644_v43, %v539_v5  ;;  %v1172_v5 = vsub.f32 1.5, %v1171_v47  ;;  %v1183_v15 = vmul.f32 %v3427_v38, %v1182_v56  ;;  %v4682_v56 = vpop.xlane.xlu0 %769 }
 0x191   :  { %v1173_v14 = vmul.f32 %v3429_v34, %v1172_v5  ;;  %v4676_v6 = vsel %vm1186_vm10, %v3427_v38, %v1183_v15  ;;  %vm1244_vm10 = vweird.f32 %v4649_v63 }
 0x192   :  { %5836 = vst [vmem:[#allocation41_spill] sm:$0xff] %v4676_v6 }
 0x193   :  { %v4679_v18 = vsel %vm1176_vm11, %v3429_v34, %v1173_v14 }
 0x194   :  { %3233 = vmatmul.msk.f32.gmra.mxu1 %vm635_vm0, %v183_v48  ;;  %v4657_v48 = vpop.xlane.xlu2 %757  ;;  %v4671_v26 = vpop.f32.mrf.mxu2  ;;  %5837 = vst [vmem:[#allocation42_spill] sm:$0xff] %v4679_v18 }
 0x195   :  { %5835 = vst [vmem:[#allocation40_spill] sm:$0xff] %v4671_v26  ;;  %3440 = vrsqrt.f32 %v4657_v48  ;;  %vm1234_vm12 = vweird.f32 %v4657_v48 }
 0x196   :  { %v542_v16 = vpop.f32.mrf.mxu0  ;;  %3442 = vrsqrt.f32 %v4660_v9 }
 0x197   :  { %v1501_v17 = vmul.f32 %v4640_v21, %v542_v16 }
 0x199   :  { %2016 = vmatpush.msra.mxu2 %v1501_v17  ;;  %v1199_v17 = vmul.f32 %v3431_v49, %v4622_v13 }
 0x19b   :  { %2017 = vmatpush.msra.mxu2 %v1500_v51  ;;  %v1189_v51 = vmul.f32 %v3433_v50, %v4627_v25  ;;  %v1200_v24 = vmul.f32 %v3431_v49, %v1199_v17 }
 0x19c   :  { %3234 = vmatmul.msk.f32.vlgmr.msra.gmra.mxu2 %vm635_vm0, %v184_v41  ;;  %v4669_v41 = vpop.xlane.xlu1 %763  ;;  %v4674_v47 = vpop.xlane.xlu2 %772 }
 0x19d   :  { %v1190_v33 = vmul.f32 %v3433_v50, %v1189_v51  ;;  %v1201_v17 = vmul.f32 0.5, %v1200_v24  ;;  %v4692_v38 = vpop.f32.mrf.mxu2 }
 0x19e   :  { %v545_v16 = vpop.f32.mrf.mxu0  ;;  %5838 = vst [vmem:[#allocation43_spill] sm:$0xff] %v4692_v38  ;;  %v193_v38 = vld [vmem:[%s5748_s2 + $0x148] sm:$0xff] }
 0x19f   :  { %v1502_v5 = vmul.f32 %v4679_v18, %v545_v16  ;;  %v1191_v51 = vmul.f32 0.5, %v1190_v33  ;;  %v1202_v34 = vsub.f32 1.5, %v1201_v17  ;;  %v3435_v16 = vpop.eup %3434  ;;  %v187_v33 = vld [vmem:[%s5748_s2 + $0x118] sm:$0xff] }
 0x1a0   :  { %v3437_v24 = vpop.eup %3436  ;;  %vm1225_vm5 = vweird.f32 %v3435_v16 }
 0x1a1   :  { %v1192_v15 = vsub.f32 1.5, %v1191_v51  ;;  %v1203_v17 = vmul.f32 %v3431_v49, %v1202_v34  ;;  %v4702_v51 = vpop.xlane.xlu0 %796  ;;  %v1209_v13 = vmul.f32 %v3437_v24, %v4642_v1  ;;  %vm1215_vm7 = vweird.f32 %v3437_v24  ;;  %vm1226_vm8 = vmor %vm1224_vm4, %vm1225_vm5 }
 0x1a2   :  { %vm1216_vm9 = vmor %vm1214_vm6, %vm1215_vm7  ;;  %vm1254_vm5 = vweird.f32 %v4669_v41 }
 0x1a3   :  { %v4708_v40 = vsel %vm1206_vm2, %v3431_v49, %v1203_v17  ;;  %v1210_v34 = vmul.f32 %v3437_v24, %v1209_v13  ;;  %v4726_v17 = vpop.eup %3438  ;;  %vm1264_vm2 = vweird.f32 %v4660_v9 }
 0x1a4   :  { %3235 = vmatmul.msk.f32.gmra.mxu2 %vm635_vm0, %v185_v31  ;;  %v186_v31 = vld [vmem:[%s5748_s2 + $0x110] sm:$0xff]  ;;  %5840 = vst [vmem:[#allocation45_spill] sm:$0xff] %v4708_v40  ;;  %vm1245_vm11 = vweird.f32 %v4726_v17 }
 0x1a5   :  { %vm1246_vm14 = vmor %vm1244_vm10, %vm1245_vm11 }
 0x1a6   :  { %v548_v46 = vpop.f32.mrf.mxu0 }
 0x1a7   :  { %v1503_v7 = vmul.f32 %v4676_v6, %v548_v46  ;;  %v4690_v46 = vpop.xlane.xlu1 %778 }
 0x1a9   :  { %2045 = vmatpush.msrb.mxu3 %v1503_v7  ;;  %v4695_v7 = vpop.xlane.xlu2 %775 }
 0x1ab   :  { %2046 = vmatpush.msrb.mxu3 %v1502_v5  ;;  %v1219_v5 = vmul.f32 %v3435_v16, %v4632_v42 }
 0x1ac   :  { %3236 = vmatmul.msk.f32.vlgmr.msrb.gmra.mxu3 %vm635_vm0, %v186_v31  ;;  %v1193_v31 = vmul.f32 %v3433_v50, %v1192_v15  ;;  %v4713_v15 = vpop.f32.mrf.mxu2 }
 0x1ad   :  { %v1220_v8 = vmul.f32 %v3435_v16, %v1219_v5 }
 0x1ae   :  { %v551_v14 = vpop.f32.mrf.mxu0  ;;  %v4706_v25 = vsel %vm1196_vm3, %v3433_v50, %v1193_v31  ;;  %v188_v50 = vld [vmem:[%s5748_s2 + $0x120] sm:$0xff] }
 0x1af   :  { %5839 = vst [vmem:[#allocation44_spill] sm:$0xff] %v4706_v25  ;;  %v4710_v60 = vpop.xlane.xlu1 %793  ;;  %v1504_v23 = vmul.f32 %v4706_v25, %v551_v14  ;;  %v1221_v49 = vmul.f32 0.5, %v1220_v8 }
 0x1b1   :  { %v4716_v20 = vpop.xlane.xlu2 %784  ;;  %v1222_v5 = vsub.f32 1.5, %v1221_v49 }
 0x1b3   :  { %v1223_v42 = vmul.f32 %v3435_v16, %v1222_v5 }
 0x1b4   :  { %3237 = vmatmul.msk.f32.gmra.mxu3 %vm635_vm0, %v187_v33  ;;  %v1211_v33 = vmul.f32 0.5, %v1210_v34  ;;  %v4738_v34 = vpop.f32.mrf.mxu2 }
 0x1b5   :  { %v4751_v19 = vsel %vm1226_vm8, %v3435_v16, %v1223_v42 }
 0x1b6   :  { %v554_v36 = vpop.f32.mrf.mxu0  ;;  %v1212_v13 = vsub.f32 1.5, %v1211_v33  ;;  %5841 = vst [vmem:[#allocation46_spill] sm:$0xff] %v4751_v19 }
 0x1b7   :  { %v1505_v2 = vmul.f32 %v4708_v40, %v554_v36  ;;  %v4724_v36 = vpop.xlane.xlu0 %781  ;;  %v4731_v14 = vpop.xlane.xlu1 %790 }
 0x1b8   :  { %v1213_v33 = vmul.f32 %v3437_v24, %v1212_v13  ;;  %3444 = vrsqrt.f32 %v4724_v36  ;;  %vm1314_vm3 = vweird.f32 %v4724_v36 }
 0x1b9   :  { %2074 = vmatpush.msra.mxu1 %v1505_v2  ;;  %v4729_v2 = vpop.eup %3440  ;;  %v4733_v8 = vpop.xlane.xlu2 %814  ;;  %3446 = vrsqrt.f32 %v4669_v41 }
 0x1ba   :  { %v1229_v49 = vmul.f32 %v4729_v2, %v4657_v48  ;;  %v4755_v22 = vsel %vm1216_vm9, %v3437_v24, %v1213_v33  ;;  %3448 = vrsqrt.f32 %v4682_v56  ;;  %v4765_v42 = vpop.eup %3442  ;;  %vm1235_vm13 = vweird.f32 %v4729_v2 }
 0x1bb   :  { %2075 = vmatpush.msra.mxu1 %v1504_v23  ;;  %v189_v23 = vld [vmem:[%s5748_s2 + $0x128] sm:$0xff]  ;;  %5842 = vst [vmem:[#allocation47_spill] sm:$0xff] %v4755_v22  ;;  %3450 = vrsqrt.f32 %v4716_v20  ;;  %vm1236_vm15 = vmor %vm1234_vm12, %vm1235_vm13  ;;  %vm1265_vm6 = vweird.f32 %v4765_v42  ;;  %vm1324_vm9 = vweird.f32 %v4716_v20 }
 0x1bc   :  { %3238 = vmatmul.msk.f32.vlgmr.msra.gmra.mxu1 %vm635_vm0, %v188_v50  ;;  %v1239_v50 = vmul.f32 %v4726_v17, %v4649_v63  ;;  %v1230_v18 = vmul.f32 %v4729_v2, %v1229_v49  ;;  %v4772_v33 = vpop.f32.mrf.mxu2  ;;  %vm4915_vm11 = vmor %vm1264_vm2, %vm1265_vm6  ;;  %vm1274_vm6 = vweird.f32 %v4682_v56 }
 0x1bd   :  { %5843 = vst [vmem:[#allocation48_spill] sm:$0xff] %v4772_v33 }
 0x1be   :  { %v557_v31 = vpop.f32.mrf.mxu0  ;;  %v1240_v58 = vmul.f32 %v4726_v17, %v1239_v50  ;;  %v190_v50 = vld [vmem:[%s5748_s2 + $0x130] sm:$0xff]  ;;  %v4770_v49 = vpop.eup %3444 }
 0x1bf   :  { %v4747_v54 = vpop.xlane.xlu0 %787  ;;  %v4758_v13 = vpop.xlane.xlu1 %811  ;;  %vm1315_vm4 = vweird.f32 %v4770_v49 }
 0x1c0   :  { %v1241_v16 = vmul.f32 0.5, %v1240_v58  ;;  %v4780_v45 = vpop.eup %3446  ;;  %vm4899_vm8 = vmor %vm1314_vm3, %vm1315_vm4  ;;  %vm1284_vm4 = vweird.f32 %v4674_v47 }
 0x1c1   :  { %v4768_v24 = vpop.xlane.xlu2 %802  ;;  %v4787_v43 = vpop.eup %3448  ;;  %v1249_v52 = vmul.f32 %v4780_v45, %v4669_v41  ;;  %vm1255_vm7 = vweird.f32 %v4780_v45 }
 0x1c2   :  { %v1242_v21 = vsub.f32 1.5, %v1241_v16  ;;  %3452 = vrsqrt.f32 %v4768_v24  ;;  %v4792_v16 = vpop.eup %3450  ;;  %v1269_v55 = vmul.f32 %v4787_v43, %v4682_v56  ;;  %vm1256_vm12 = vmor %vm1254_vm5, %vm1255_vm7 }
 0x1c3   :  { %3454 = vrsqrt.f32 %v4674_v47  ;;  %v1319_v12 = vmul.f32 %v4792_v16, %v4716_v20  ;;  %v1250_v59 = vmul.f32 %v4780_v45, %v1249_v52  ;;  %vm1325_vm10 = vweird.f32 %v4792_v16 }
 0x1c4   :  { %3239 = vmatmul.msk.f32.gmra.mxu1 %vm635_vm0, %v189_v23  ;;  %v1506_v23 = vmul.f32 %v4755_v22, %v557_v31  ;;  %v1231_v31 = vmul.f32 0.5, %v1230_v18  ;;  %v1309_v18 = vmul.f32 %v4770_v49, %v4724_v36  ;;  %v1270_v30 = vmul.f32 %v4787_v43, %v1269_v55  ;;  %vm4945_vm13 = vmor %vm1324_vm9, %vm1325_vm10 }
 0x1c5   :  { %v1320_v52 = vmul.f32 %v4792_v16, %v1319_v12  ;;  %v1251_v12 = vmul.f32 0.5, %v1250_v59  ;;  %vm1334_vm10 = vweird.f32 %v4747_v54 }
 0x1c6   :  { %v560_v1 = vpop.f32.mrf.mxu0  ;;  %v1310_v62 = vmul.f32 %v4770_v49, %v1309_v18  ;;  %v4818_v18 = vpop.f32.mrf.mxu3 }
 0x1c7   :  { %v1507_v5 = vmul.f32 %v4751_v19, %v560_v1  ;;  %v4775_v1 = vpop.f32.mrf.mxu1  ;;  %v191_v19 = vld [vmem:[%s5748_s2 + $0x138] sm:$0xff]  ;;  %v4805_v22 = vpop.xlane.xlu1 %820  ;;  %5845 = vst [vmem:[#allocation50_spill] sm:$0xff] %v4818_v18  ;;  %v1321_v57 = vmul.f32 0.5, %v1320_v52 }
 0x1c8   :  { %5844 = vst [vmem:[#allocation49_spill] sm:$0xff] %v4775_v1  ;;  %v4807_v4 = vpop.eup %3452  ;;  %v1311_v44 = vmul.f32 0.5, %v1310_v62 }
 0x1c9   :  { %2103 = vmatpush.msrb.mxu2 %v1507_v5  ;;  %v4777_v5 = vpop.xlane.xlu0 %799  ;;  %v1379_v18 = vmul.f32 %v4807_v4, %v4768_v24 }
 0x1ca   :  { %3456 = vrsqrt.f32 %v4777_v5  ;;  %vm1374_vm2 = vweird.f32 %v4777_v5 }
 0x1cb   :  { %2104 = vmatpush.msrb.mxu2 %v1506_v23  ;;  %v1259_v23 = vmul.f32 %v4765_v42, %v4660_v9  ;;  %3458 = vrsqrt.f32 %v4702_v51 }
 0x1cc   :  { %3240 = vmatmul.msk.f32.vlgmr.msrb.gmra.mxu2 %vm635_vm0, %v190_v50  ;;  %v1232_v50 = vsub.f32 1.5, %v1231_v31  ;;  %v1243_v31 = vmul.f32 %v4726_v17, %v1242_v21  ;;  %3460 = vrsqrt.f32 %v4731_v14 }
 0x1cd   :  { %v1260_v63 = vmul.f32 %v4765_v42, %v1259_v23  ;;  %v4816_v23 = vpop.eup %3454  ;;  %3462 = vrsqrt.f32 %v4747_v54 }
 0x1ce   :  { %v563_v58 = vpop.f32.mrf.mxu0  ;;  %v1233_v21 = vmul.f32 %v4729_v2, %v1232_v50  ;;  %v4828_v25 = vsel %vm1246_vm14, %v4726_v17, %v1243_v31  ;;  %v4830_v50 = vpop.f32.mrf.mxu2  ;;  %v1279_v62 = vmul.f32 %v4816_v23, %v4674_v47  ;;  %3464 = vrsqrt.f32 %v4805_v22 }
 0x1cf   :  { %5846 = vst [vmem:[#allocation51_spill] sm:$0xff] %v4828_v25  ;;  %v1261_v6 = vmul.f32 0.5, %v1260_v63  ;;  %v1312_v63 = vsub.f32 1.5, %v1311_v44  ;;  %v4873_v61 = vpop.xlane.xlu1 %805  ;;  %vm1384_vm14 = vweird.f32 %v4768_v24 }
 0x1d0   :  { %v4824_v40 = vpop.eup %3456  ;;  %5847 = vst [vmem:[#allocation52_spill] sm:$0xff] %v4830_v50  ;;  %v4841_v17 = vsel %vm1236_vm15, %v4729_v2, %v1233_v21  ;;  %v4855_v2 = vpop.xlane.xlu2 %817  ;;  %v1380_v21 = vmul.f32 %v4807_v4, %v1379_v18  ;;  %v1280_v44 = vmul.f32 %v4816_v23, %v1279_v62  ;;  %vm1385_vm15 = vweird.f32 %v4807_v4 }
 0x1d1   :  { %5849 = vst [vmem:[#allocation54_spill] sm:$0xff] %v4841_v17  ;;  %v4843_v31 = vpop.eup %3458  ;;  %v1369_v32 = vmul.f32 %v4824_v40, %v4777_v5  ;;  %3466 = vrsqrt.f32 %v4855_v2  ;;  %v1313_v62 = vmul.f32 %v4770_v49, %v1312_v63  ;;  %vm1375_vm3 = vweird.f32 %v4824_v40  ;;  %vm4984_vm5 = vmor %vm1384_vm14, %vm1385_vm15 }
 0x1d2   :  { %v4853_v55 = vpop.eup %3460  ;;  %vm5009_vm7 = vmor %vm1374_vm2, %vm1375_vm3  ;;  %vm1444_vm14 = vweird.f32 %v4805_v22  ;;  %vm1275_vm3 = vweird.f32 %v4787_v43 }
 0x1d3   :  { %v4867_v59 = vpop.eup %3462  ;;  %v1339_v18 = vmul.f32 %v4853_v55, %v4731_v14  ;;  %v1370_v1 = vmul.f32 %v4824_v40, %v1369_v32  ;;  %v1381_v32 = vmul.f32 0.5, %v1380_v21  ;;  %vm1345_vm9 = vweird.f32 %v4853_v55 }
 0x1d4   :  { %3241 = vmatmul.msk.f32.gmra.mxu2 %vm635_vm0, %v191_v19  ;;  %v4832_v19 = vpop.f32.mrf.mxu1  ;;  %v1329_v26 = vmul.f32 %v4867_v59, %v4747_v54 }
 0x1d5   :  { %5848 = vst [vmem:[#allocation53_spill] sm:$0xff] %v4832_v19  ;;  %v1508_v19 = vmul.f32 %v4841_v17, %v563_v58  ;;  %v1262_v58 = vsub.f32 1.5, %v1261_v6  ;;  %v1359_v17 = vmul.f32 %v4843_v31, %v4702_v51  ;;  %v1371_v21 = vmul.f32 0.5, %v1370_v1 }
 0x1d6   :  { %v566_v29 = vpop.f32.mrf.mxu0  ;;  %v1382_v10 = vsub.f32 1.5, %v1381_v32 }
 0x1d7   :  { %v1509_v48 = vmul.f32 %v4828_v25, %v566_v29  ;;  %v192_v29 = vld [vmem:[%s5748_s2 + $0x140] sm:$0xff]  ;;  %v4860_v25 = vpop.xlane.xlu0 %808  ;;  %v1360_v33 = vmul.f32 %v4843_v31, %v1359_v17  ;;  %v4939_v17 = vsel %vm4899_vm8, %v4770_v49, %v1313_v62  ;;  %vm1344_vm8 = vweird.f32 %v4731_v14 }
 0x1d8   :  { %3468 = vrsqrt.f32 %v4860_v25  ;;  %v4998_v24 = vpop.xlane.xlu2 %826 }
 0x1d9   :  { %2132 = vmatpush.msra.mxu3 %v1509_v48  ;;  %v4862_v48 = vmul.f32 0.5, %v1270_v30  ;;  %v1252_v30 = vsub.f32 1.5, %v1251_v12  ;;  %3470 = vrsqrt.f32 %v4873_v61  ;;  %v4890_v12 = vpop.eup %3464 }
 0x1da   :  { %v4919_v1 = vpop.eup %3466  ;;  %3472 = vrsqrt.f32 %v4690_v46  ;;  %vm1445_vm15 = vweird.f32 %v4890_v12 }
 0x1db   :  { %2133 = vmatpush.msra.mxu3 %v1508_v19  ;;  %v4879_v19 = vpop.f32.mrf.mxu3  ;;  %v1429_v49 = vmul.f32 %v4919_v1, %v4855_v2  ;;  %3474 = vrsqrt.f32 %v4695_v7  ;;  %v5877_v47 = vsub.f32 1.5, %v4862_v48 }
 0x1dc   :  { %3242 = vmatmul.msk.f32.vlgmr.msra.gmra.mxu3 %vm635_vm0, %v192_v29  ;;  %5850 = vst [vmem:[#allocation55_spill] sm:$0xff] %v4879_v19  ;;  %v4881_v52 = vpop.f32.mrf.mxu1  ;;  %v1322_v29 = vsub.f32 1.5, %v1321_v57  ;;  %v4892_v19 = vpop.f32.mrf.mxu2  ;;  %v1340_v57 = vmul.f32 %v4853_v55, %v1339_v18  ;;  %v4921_v18 = vmul.f32 0.5, %v1280_v44  ;;  %v1439_v44 = vmul.f32 %v4890_v12, %v4805_v22 }
 0x1dd   :  { %5851 = vst [vmem:[#allocation56_spill] sm:$0xff] %v4881_v52  ;;  %v1253_v52 = vmul.f32 %v4780_v45, %v1252_v30  ;;  %v1330_v30 = vmul.f32 %v4867_v59, %v1329_v26  ;;  %v1372_v26 = vsub.f32 1.5, %v1371_v21  ;;  %3476 = vrsqrt.f32 %v4710_v60 }
 0x1de   :  { %v569_v6 = vpop.f32.mrf.mxu0  ;;  %5852 = vst [vmem:[#allocation57_spill] sm:$0xff] %v4892_v19  ;;  %v1263_v19 = vmul.f32 %v4765_v42, %v1262_v58  ;;  %v4929_v58 = vpop.eup %3468  ;;  %v1323_v9 = vmul.f32 %v4792_v16, %v1322_v29  ;;  %v1341_v32 = vmul.f32 0.5, %v1340_v57  ;;  %v1383_v57 = vmul.f32 %v4807_v4, %v1382_v10 }
 0x1df   :  { %v4957_v62 = vsel %vm1256_vm12, %v4780_v45, %v1253_v52  ;;  %v1399_v21 = vmul.f32 %v4929_v58, %v4860_v25  ;;  %v4972_v45 = vmul.f32 0.5, %v1360_v33  ;;  %v1282_v36 = vsub.f32 1.5, %v4921_v18  ;;  %v5024_v5 = vpop.xlane.xlu0 %823  ;;  %vm5057_vm12 = vmor %vm1344_vm8, %vm1345_vm9 }
 0x1e0   :  { %5859 = vst [vmem:[#allocation58_spill] sm:$0xff] %v4957_v62  ;;  %v4962_v29 = vsel %vm4915_vm11, %v4765_v42, %v1263_v19  ;;  %v4978_v42 = vsel %vm4945_vm13, %v4792_v16, %v1323_v9  ;;  %v1440_v19 = vmul.f32 %v4890_v12, %v1439_v44  ;;  %v1373_v41 = vmul.f32 %v4824_v40, %v1372_v26  ;;  %v194_v44 = vld [vmem:[%s5748_s2 + $0x150] sm:$0xff] }
 0x1e1   :  { %5860 = vst [vmem:[#allocation59_spill] sm:$0xff] %v4962_v29  ;;  %v1510_v9 = vmul.f32 %v4957_v62, %v569_v6  ;;  %v1430_v6 = vmul.f32 %v4919_v1, %v1429_v49  ;;  %v1517_v62 = vmul.f32 %v4978_v42, %v4482_v39  ;;  %3478 = vrsqrt.f32 %v4998_v24 }
 0x1e2   :  { %5862 = vst [vmem:[#allocation61_spill] sm:$0xff] %v4978_v42  ;;  %3480 = vrsqrt.f32 %v4733_v8  ;;  %v5039_v39 = vsel %vm5009_vm7, %v4824_v40, %v1373_v41  ;;  %vm1335_vm11 = vweird.f32 %v4867_v59  ;;  %vm1285_vm13 = vweird.f32 %v4816_v23  ;;  %vm5116_vm7 = vmor %vm1444_vm14, %vm1445_vm15 }
 0x1e3   :  { %v4964_v63 = vpop.f32.mrf.mxu3  ;;  %5868 = vst [vmem:[#allocation63_spill] sm:$0xff] %v5039_v39  ;;  %3482 = vrsqrt.f32 %v5024_v5  ;;  %vm5083_vm2 = vmor %vm1334_vm10, %vm1335_vm11  ;;  %vm1434_vm8 = vweird.f32 %v4855_v2  ;;  %vm1435_vm9 = vweird.f32 %v4919_v1  ;;  %vm1405_vm10 = vweird.f32 %v4929_v58 }
 0x1e4   :  { %3243 = vmatmul.msk.f32.gmra.mxu3 %vm635_vm0, %v193_v38  ;;  %v4951_v38 = vpop.eup %3470  ;;  %5861 = vst [vmem:[#allocation60_spill] sm:$0xff] %v4964_v63  ;;  %v4991_v33 = vpop.f32.mrf.mxu1  ;;  %v1342_v63 = vsub.f32 1.5, %v1341_v32  ;;  %3484 = vrsqrt.f32 %v4758_v13  ;;  %vm5134_vm11 = vmor %vm1274_vm6, %vm1275_vm3  ;;  %vm1365_vm3 = vweird.f32 %v4843_v31 }
 0x1e5   :  { %v4989_v52 = vpop.eup %3472  ;;  %v1389_v16 = vmul.f32 %v4951_v38, %v4873_v61  ;;  %v5016_v26 = vpop.f32.mrf.mxu2  ;;  %vm1395_vm6 = vweird.f32 %v4951_v38 }
 0x1e6   :  { %v572_v20 = vpop.f32.mrf.mxu0  ;;  %v1299_v49 = vmul.f32 %v4989_v52, %v4690_v46  ;;  %v5041_v32 = vpop.eup %3474 }
 0x1e7   :  { %v1511_v50 = vmul.f32 %v4962_v29, %v572_v20  ;;  %v1331_v20 = vmul.f32 0.5, %v1330_v30  ;;  %v5021_v30 = vsel %vm4984_vm5, %v4807_v4, %v1383_v57  ;;  %v1400_v29 = vmul.f32 %v4929_v58, %v1399_v21  ;;  %v5051_v40 = vpop.eup %3476  ;;  %vm5105_vm5 = vmor %vm1284_vm4, %vm1285_vm13 }
 0x1e8   :  { %5867 = vst [vmem:[#allocation62_spill] sm:$0xff] %v5021_v30  ;;  %v1390_v4 = vmul.f32 %v4951_v38, %v1389_v16  ;;  %v1431_v57 = vmul.f32 0.5, %v1430_v6  ;;  %v1523_v10 = vmul.f32 %v5021_v30, %v4608_v3  ;;  %v5076_v18 = vpop.eup %3478  ;;  %v1349_v30 = vmul.f32 %v5051_v40, %v4710_v60  ;;  %vm5155_vm13 = vmor %vm1434_vm8, %vm1435_vm9 }
 0x1e9   :  { %2161 = vmatpush.msrb.mxu1 %v1511_v50  ;;  %v1516_v50 = vmul.f32 %v4939_v17, %v4445_v11  ;;  %v1441_v11 = vmul.f32 0.5, %v1440_v19  ;;  %v1332_v19 = vsub.f32 1.5, %v1331_v20  ;;  %v1401_v16 = vmul.f32 0.5, %v1400_v29  ;;  %v195_v20 = vld [vmem:[%s5748_s2 + $0x158] sm:$0xff] }
 0x1ea   :  { %v1289_v29 = vmul.f32 %v5041_v32, %v4695_v7  ;;  %v1391_v14 = vmul.f32 0.5, %v1390_v4  ;;  %v5089_v4 = vpop.eup %3480  ;;  %vm1404_vm4 = vweird.f32 %v4860_v25  ;;  %v1459_v22 = vmul.f32 %v5076_v18, %v4998_v24 }
 0x1eb   :  { %2162 = vmatpush.msrb.mxu1 %v1510_v9  ;;  %v1442_v3 = vsub.f32 1.5, %v1441_v11  ;;  %v1522_v9 = vmul.f32 %v5039_v39, %v4591_v53  ;;  %v1300_v53 = vmul.f32 %v4989_v52, %v1299_v49  ;;  %v1283_v11 = vmul.f32 %v4816_v23, %v1282_v36  ;;  %vm5172_vm14 = vmor %vm1404_vm4, %vm1405_vm10 }
 0x1ec   :  { %3244 = vmatmul.msk.f32.vlgmr.msrb.gmra.mxu1 %vm635_vm0, %v194_v44  ;;  %v5069_v44 = vpop.f32.mrf.mxu1  ;;  %v1333_v49 = vmul.f32 %v4867_v59, %v1332_v19  ;;  %vm1354_vm8 = vweird.f32 %v4710_v60  ;;  %vm1355_vm9 = vweird.f32 %v5051_v40  ;;  %vm1294_vm10 = vweird.f32 %v4695_v7  ;;  %v208_v7 = vld [vmem:[%s5748_s2 + $0x1c0] sm:$0xff] }
 0x1ed   :  { %2248 = vmatpush.msra.mxu1 %v1517_v62  ;;  %v1343_v62 = vmul.f32 %v4853_v55, %v1342_v63  ;;  %v5067_v63 = vpop.f32.mrf.mxu3  ;;  %v1443_v19 = vmul.f32 %v4890_v12, %v1442_v3  ;;  %v1419_v3 = vmul.f32 %v5089_v4, %v4733_v8  ;;  %v1301_v6 = vmul.f32 0.5, %v1300_v53 }
 0x1ee   :  { %v5045_v21 = vpop.f32.mrf.mxu0 }
 0x1ef   :  { %2249 = vmatpush.msra.mxu1 %v1516_v50  ;;  %v1432_v50 = vsub.f32 1.5, %v1431_v57  ;;  %v5099_v54 = vsel %vm5057_vm12, %v4853_v55, %v1343_v62  ;;  %v1402_v57 = vsub.f32 1.5, %v1401_v16  ;;  %v1273_v62 = vmul.f32 %v4787_v43, %v5877_v47 }
 0x1f0   :  { %v1392_v16 = vsub.f32 1.5, %v1391_v14  ;;  %vm1394_vm12 = vweird.f32 %v4873_v61  ;;  %v5147_v47 = vsel %vm5105_vm5, %v4816_v23, %v1283_v11  ;;  %v1290_v23 = vmul.f32 %v5041_v32, %v1289_v29 }
 0x1f1   :  { %2335 = vmatpush.msrb.mxu1 %v1523_v10  ;;  %v5091_v10 = vpop.f32.mrf.mxu2  ;;  %v1433_v14 = vmul.f32 %v4919_v1, %v1432_v50  ;;  %v1403_v56 = vmul.f32 %v4929_v58, %v1402_v57  ;;  %v5166_v11 = vsel %vm5116_vm7, %v4890_v12, %v1443_v19  ;;  %v5179_v57 = vsel %vm5134_vm11, %v4787_v43, %v1273_v62  ;;  %v196_v43 = vld [vmem:[%s5748_s2 + $0x160] sm:$0xff]  ;;  %vm5205_vm15 = vmor %vm1394_vm12, %vm1395_vm6 }
 0x1f2   :  { %v5184_v29 = vsel %vm5083_vm2, %v4867_v59, %v1333_v49  ;;  %v1393_v25 = vmul.f32 %v4951_v38, %v1392_v16  ;;  %v1460_v19 = vmul.f32 %v5076_v18, %v1459_v22  ;;  %v1512_v55 = vmul.f32 %v5179_v57, %v5045_v21  ;;  %v200_v59 = vld [vmem:[%s5748_s2 + $0x180] sm:$0xff] }
 0x1f3   :  { %2336 = vmatpush.msrb.mxu1 %v1522_v9  ;;  %v5109_v9 = vpop.eup %3482  ;;  %v1350_v49 = vmul.f32 %v5051_v40, %v1349_v30  ;;  %v5214_v21 = vsel %vm5155_vm13, %v4919_v1, %v1433_v14  ;;  %v1420_v30 = vmul.f32 %v5089_v4, %v1419_v3  ;;  %v5222_v61 = vsel %vm5172_vm14, %v4929_v58, %v1403_v56  ;;  %vm5288_vm14 = vmor %vm1354_vm8, %vm1355_vm9 }
 0x1f4   :  { %3245 = vmatmul.msk.f32.gmra.mxu1 %vm635_vm0, %v195_v20  ;;  %v5138_v48 = vpop.eup %3484  ;;  %v1449_v50 = vmul.f32 %v5109_v9, %v5024_v5  ;;  %v5216_v16 = vpop.f32.mrf.mxu1  ;;  %v1291_v22 = vmul.f32 0.5, %v1290_v23  ;;  %v1518_v1 = vmul.f32 %v5184_v29, %v4498_v0  ;;  %v1461_v58 = vmul.f32 0.5, %v1460_v19 }
 0x1f5   :  { %v1409_v12 = vmul.f32 %v5138_v48, %v4758_v13  ;;  %v5188_v36 = vpop.f32.mrf.mxu3  ;;  %v1528_v3 = vmul.f32 %v5214_v21, %v4713_v15  ;;  %vm1364_vm2 = vweird.f32 %v4702_v51  ;;  %v1302_v14 = vsub.f32 1.5, %v1301_v6  ;;  %v203_v51 = vld [vmem:[%s5748_s2 + $0x198] sm:$0xff] }
 0x1f6   :  { %v578_v20 = vpop.f32.mrf.mxu0  ;;  %v1450_v53 = vmul.f32 %v5109_v9, %v1449_v50  ;;  %v1525_v56 = vmul.f32 %v5222_v61, %v4655_v37  ;;  %v1362_v50 = vsub.f32 1.5, %v4972_v45  ;;  %v1421_v23 = vmul.f32 0.5, %v1420_v30  ;;  %vm5262_vm4 = vmor %vm1364_vm2, %vm1365_vm3 }
 0x1f7   :  { %v1513_v42 = vmul.f32 %v5147_v47, %v578_v20  ;;  %v1410_v41 = vmul.f32 %v5138_v48, %v1409_v12  ;;  %v1351_v20 = vmul.f32 0.5, %v1350_v49  ;;  %v1292_v15 = vsub.f32 1.5, %v1291_v22  ;;  %v197_v12 = vld [vmem:[%s5748_s2 + $0x168] sm:$0xff] }
 0x1f8   :  { %v1451_v2 = vmul.f32 0.5, %v1450_v53  ;;  %vm1304_vm5 = vweird.f32 %v4690_v46  ;;  %vm1305_vm7 = vweird.f32 %v4989_v52  ;;  %v1462_v45 = vsub.f32 1.5, %v1461_v58 }
 0x1f9   :  { %2190 = vmatpush.msra.mxu2 %v1513_v42  ;;  %v1519_v42 = vmul.f32 %v5099_v54, %v4520_v27  ;;  %v1529_v27 = vmul.f32 %v5166_v11, %v4738_v34  ;;  %v5231_v39 = vpop.f32.mrf.mxu2  ;;  %v5239_v34 = vsel %vm5205_vm15, %v4951_v38, %v1393_v25  ;;  %v1411_v37 = vmul.f32 0.5, %v1410_v41  ;;  %v201_v25 = vld [vmem:[%s5748_s2 + $0x188] sm:$0xff]  ;;  %vm5279_vm13 = vmor %vm1304_vm5, %vm1305_vm7 }
 0x1fa   :  { %v1524_v38 = vmul.f32 %v5239_v34, %v4629_v28  ;;  %v1352_v19 = vsub.f32 1.5, %v1351_v20  ;;  %vm1295_vm11 = vweird.f32 %v5041_v32  ;;  %v1452_v49 = vsub.f32 1.5, %v1451_v2  ;;  %v231_v2 = vld [vmem:[%s5750_s4 + $0x38] sm:$0xff]  ;;  %v230_v28 = vld [vmem:[%s5750_s4 + $0x30] sm:$0xff] }
 0x1fb   :  { %2191 = vmatpush.msra.mxu2 %v1512_v55  ;;  %v1303_v55 = vmul.f32 %v4989_v52, %v1302_v14  ;;  %vm1464_vm12 = vweird.f32 %v4998_v24  ;;  %vm1465_vm6 = vweird.f32 %v5076_v18  ;;  %v1363_v62 = vmul.f32 %v4843_v31, %v1362_v50  ;;  %vm1296_vm7 = vmor %vm1294_vm10, %vm1295_vm11 }
 0x1fc   :  { %3246 = vmatmul.msk.f32.vlgmr.msra.gmra.mxu2 %vm635_vm0, %v196_v43  ;;  %3250 = vmatmul.msk.f32.vlgmr.msra.gmra.mxu1 %vm635_vm0, %v200_v59  ;;  %v1422_v43 = vsub.f32 1.5, %v1421_v23  ;;  %v5271_v6 = vpop.f32.mrf.mxu1  ;;  %vm1424_vm15 = vweird.f32 %v4733_v8  ;;  %vm1425_vm2 = vweird.f32 %v5089_v4  ;;  %v1293_v46 = vmul.f32 %v5041_v32, %v1292_v15  ;;  %vm1466_vm9 = vmor %vm1464_vm12, %vm1465_vm6 }
 0x1fd   :  { %2277 = vmatpush.msrb.mxu2 %v1519_v42  ;;  %2422 = vmatpush.msra.mxu1 %v1529_v27  ;;  %v5269_v59 = vpop.f32.mrf.mxu3  ;;  %v1412_v53 = vsub.f32 1.5, %v1411_v37  ;;  %vm1454_vm3 = vweird.f32 %v5024_v5  ;;  %vm1455_vm5 = vweird.f32 %v5109_v9  ;;  %v1463_v60 = vmul.f32 %v5076_v18, %v1462_v45  ;;  %vm5322_vm10 = vmor %vm1424_vm15, %vm1425_vm2  ;;  %v5898_v37 = vld [vmem:[#allocation48_spill] sm:$0xff]  ;;  %v228_v42 = vld [vmem:[%s5750_s4 + $0x20] sm:$0xff] }
 0x1fe   :  { %v581_v0 = vpop.f32.mrf.mxu0  ;;  %v1353_v27 = vmul.f32 %v5051_v40, %v1352_v19  ;;  %vm1414_vm8 = vweird.f32 %v4758_v13  ;;  %v1423_v41 = vmul.f32 %v5089_v4, %v1422_v43  ;;  %vm1415_vm11 = vweird.f32 %v5138_v48  ;;  %vm1456_vm12 = vmor %vm1454_vm3, %vm1455_vm5  ;;  %v229_v43 = vld [vmem:[%s5750_s4 + $0x28] sm:$0xff] }
 0x1ff   :  { %2278 = vmatpush.msrb.mxu2 %v1518_v1  ;;  %2423 = vmatpush.msra.mxu1 %v1528_v3  ;;  %v5315_v1 = vsel %vm5279_vm13, %v4989_v52, %v1303_v55  ;;  %v1453_v24 = vmul.f32 %v5109_v9, %v1452_v49  ;;  %v5332_v52 = vsel %vm5262_vm4, %v4843_v31, %v1363_v62  ;;  %v202_v31 = vld [vmem:[%s5748_s2 + $0x190] sm:$0xff]  ;;  %vm5352_vm4 = vmor %vm1414_vm8, %vm1415_vm11  ;;  %v5900_v55 = vld [vmem:[#allocation40_spill] sm:$0xff] }
 0x200   :  { %v5337_v8 = vsel %vm1296_vm7, %v5041_v32, %v1293_v46  ;;  %v1413_v3 = vmul.f32 %v5138_v48, %v1412_v53  ;;  %v5341_v14 = vsel %vm1466_vm9, %v5076_v18, %v1463_v60  ;;  %v206_v32 = vld [vmem:[%s5748_s2 + $0x1b0] sm:$0xff]  ;;  %v5362_v18 = vsel %vm5288_vm14, %v5051_v40, %v1353_v27  ;;  %v5896_v40 = vld [vmem:[#allocation52_spill] sm:$0xff]  ;;  %v205_v5 = vld [vmem:[%s5748_s2 + $0x1a8] sm:$0xff] }
 0x201   :  { %2364 = vmatpush.msra.mxu2 %v1525_v56  ;;  %v5297_v30 = vpop.f32.mrf.mxu2  ;;  %v1514_v20 = vmul.f32 %v5337_v8, %v581_v0  ;;  %v198_v56 = vld [vmem:[%s5748_s2 + $0x170] sm:$0xff]  ;;  %v5367_v0 = vsel %vm5322_vm10, %v5089_v4, %v1423_v41  ;;  %v1521_v13 = vmul.f32 %v5332_v52, %v4568_v35  ;;  %v5374_v23 = vsel %vm1456_vm12, %v5109_v9, %v1453_v24  ;;  %v5897_v35 = vld [vmem:[#allocation33_spill] sm:$0xff]  ;;  %v199_v49 = vld [vmem:[%s5748_s2 + $0x178] sm:$0xff] }
 0x202   :  { %v1531_v15 = vmul.f32 %v5341_v14, %v5896_v40  ;;  %v1520_v9 = vmul.f32 %v5362_v18, %v5897_v35  ;;  %v1530_v45 = vmul.f32 %v5374_v23, %v5898_v37  ;;  %v207_v62 = vld [vmem:[%s5748_s2 + $0x1b8] sm:$0xff]  ;;  %v204_v41 = vld [vmem:[%s5748_s2 + $0x1a0] sm:$0xff] }
 0x203   :  { %2365 = vmatpush.msra.mxu2 %v1524_v38  ;;  %v5391_v38 = vsel %vm5352_vm4, %v5138_v48, %v1413_v3  ;;  %v227_v60 = vld [vmem:[%s5750_s4 + $0x18] sm:$0xff]  ;;  %v212_v24 = vld [vmem:[%s5748_s2 + $0x1e0] sm:$0xff] }
 0x204   :  { %3247 = vmatmul.msk.f32.gmra.mxu2 %vm635_vm0, %v197_v12  ;;  %3251 = vmatmul.msk.f32.gmra.mxu1 %vm635_vm0, %v201_v25  ;;  %v5383_v4 = vpop.f32.mrf.mxu1  ;;  %v5899_v12 = vld [vmem:[#allocation43_spill] sm:$0xff]  ;;  %v1526_v48 = vmul.f32 %v5391_v38, %v5900_v55  ;;  %v5902_v40 = vld [vmem:[#allocation49_spill] sm:$0xff] }
 0x205   :  { %v5369_v50 = vpop.f32.mrf.mxu3  ;;  %v1527_v25 = vmul.f32 %v5367_v0, %v5899_v12  ;;  %v214_v12 = vld [vmem:[%s5748_s2 + $0x1f0] sm:$0xff]  ;;  %v5904_v55 = vld [vmem:[#allocation53_spill] sm:$0xff] }
 0x206   :  { %v584_v22 = vpop.f32.mrf.mxu0 }
 0x207   :  { %v1515_v58 = vmul.f32 %v5315_v1, %v584_v22  ;;  %v226_v22 = vld [vmem:[%s5750_s4 + $0x10] sm:$0xff] }
 0x209   :  { %2219 = vmatpush.msrb.mxu3 %v1515_v58  ;;  %v5400_v19 = vpop.f32.mrf.mxu2  ;;  %v225_v58 = vld [vmem:[%s5750_s4 + $0x8] sm:$0xff] }
 0x20b   :  { %2220 = vmatpush.msrb.mxu3 %v1514_v20  ;;  %v224_v20 = vld [vmem:[%s5750_s4] sm:$0xff] }
 0x20c   :  { %3248 = vmatmul.msk.f32.vlgmr.msrb.gmra.mxu3 %vm635_vm0, %v198_v56  ;;  %3252 = vmatmul.msk.f32.vlgmr.msrb.gmra.mxu2 %vm635_vm0, %v202_v31  ;;  %v5423_v53 = vpop.f32.mrf.mxu1 }
 0x20d   :  { %2306 = vmatpush.msra.mxu3 %v1521_v13  ;;  %3256 = vmatmul.msk.f32.vlgmr.msrb.gmra.mxu1 %vm635_vm0, %v206_v32  ;;  %v5421_v46 = vpop.f32.mrf.mxu3  ;;  %v209_v32 = vld [vmem:[%s5748_s2 + $0x1c8] sm:$0xff] }
 0x20e   :  { %2451 = vmatpush.msrb.mxu2 %v1531_v15  ;;  %2791 = vmatpush.msrb.mxu1 %v231_v2  ;;  %v213_v13 = vld [vmem:[%s5748_s2 + $0x1e8] sm:$0xff] }
 0x20f   :  { %2307 = vmatpush.msra.mxu3 %v1520_v9 }
 0x210   :  { %2452 = vmatpush.msrb.mxu2 %v1530_v45  ;;  %2792 = vmatpush.msrb.mxu1 %v230_v28  ;;  %v210_v45 = vld [vmem:[%s5748_s2 + $0x1d0] sm:$0xff] }
 0x211   :  { %2393 = vmatpush.msrb.mxu3 %v1527_v25  ;;  %v5429_v27 = vpop.f32.mrf.mxu2 }
 0x212   :  { %2793 = vmatpush.msrb.mxu1 %v229_v43 }
 0x213   :  { %2394 = vmatpush.msrb.mxu3 %v1526_v48 }
 0x214   :  { %3249 = vmatmul.msk.f32.gmra.mxu3 %vm635_vm0, %v199_v49  ;;  %3253 = vmatmul.msk.f32.gmra.mxu2 %vm635_vm0, %v203_v51  ;;  %v5452_v56 = vpop.f32.mrf.mxu1  ;;  %v211_v51 = vld [vmem:[%s5748_s2 + $0x1d8] sm:$0xff] }
 0x215   :  { %3257 = vmatmul.msk.f32.gmra.mxu1 %vm635_vm0, %v207_v62  ;;  %v1961_v3 = vpop.f32.mrf.mxu3  ;;  %v215_v62 = vld [vmem:[%s5748_s2 + $0x1f8] sm:$0xff] }
 0x216   :  { %2794 = vmatpush.msrb.mxu1 %v228_v42 }
 0x218   :  { %2795 = vmatpush.msrb.mxu1 %v227_v60 }
 0x219   :  { %v5454_v31 = vpop.f32.mrf.mxu2 }
 0x21a   :  { %2796 = vmatpush.msrb.mxu1 %v226_v22 }
 0x21c   :  { %3254 = vmatmul.msk.f32.vlgmr.msra.gmra.mxu3 %vm635_vm0, %v204_v41  ;;  %3258 = vmatmul.msk.f32.vlgmr.msra.gmra.mxu2 %vm635_vm0, %v208_v7  ;;  %v1990_v9 = vpop.f32.mrf.mxu1  ;;  %v5906_v7 = vld [vmem:[#allocation8_spill] sm:$0xff] }
 0x21d   :  { %3262 = vmatmul.msk.f32.vlgmr.msra.gmra.mxu1 %vm635_vm0, %v212_v24  ;;  %3338 = vmatpush.msra.mxu2 %v231_v2  ;;  %v1964_v35 = vpop.f32.mrf.mxu3  ;;  %v5907_v24 = vld [vmem:[#allocation57_spill] sm:$0xff] }
 0x21e   :  { %2797 = vmatpush.msrb.mxu1 %v225_v58  ;;  %3339 = vmatpush.msra.mxu3 %v231_v2  ;;  %v5901_v2 = vld [vmem:[#allocation6_spill] sm:$0xff] }
 0x21f   :  { %3340 = vmatpush.msra.mxu2 %v230_v28  ;;  %v2460_v15 = vmul.f32 %v5902_v40, %v5901_v2 }
 0x220   :  { %2798 = vmatpush.msrb.mxu1 %v224_v20  ;;  %3341 = vmatpush.msra.mxu3 %v230_v28  ;;  %v5903_v28 = vld [vmem:[#allocation5_spill] sm:$0xff] }
 0x221   :  { %3342 = vmatpush.msra.mxu2 %v229_v43  ;;  %v5470_v37 = vpop.f32.mrf.mxu2  ;;  %v2524_v25 = vmax.f32 %v2460_v15, 0.0  ;;  %v2461_v48 = vmul.f32 %v5904_v55, %v5903_v28  ;;  %v5910_v28 = vld [vmem:[#allocation44_spill] sm:$0xff] }
 0x222   :  { %3343 = vmatpush.msra.mxu3 %v229_v43 }
 0x223   :  { %3344 = vmatpush.msra.mxu2 %v228_v42 }
 0x224   :  { %3255 = vmatmul.msk.f32.gmra.mxu3 %vm635_vm0, %v205_v5  ;;  %3259 = vmatmul.msk.f32.gmra.mxu2 %vm635_vm0, %v209_v32  ;;  %v1993_v49 = vpop.f32.mrf.mxu1  ;;  %v5908_v5 = vld [vmem:[#allocation41_spill] sm:$0xff] }
 0x225   :  { %3263 = vmatmul.msk.f32.gmra.mxu1 %vm635_vm0, %v213_v13  ;;  %3345 = vmatpush.msra.mxu3 %v228_v42  ;;  %v2525_v42 = vmax.f32 %v2461_v48, 0.0  ;;  %v5911_v48 = vld [vmem:[#allocation7_spill] sm:$0xff] }
 0x226   :  { %3346 = vmatpush.msra.mxu2 %v227_v60 }
 0x227   :  { %3347 = vmatpush.msra.mxu3 %v227_v60 }
 0x228   :  { %3348 = vmatpush.msra.mxu2 %v226_v22 }
 0x229   :  { %3349 = vmatpush.msra.mxu3 %v226_v22  ;;  %v1935_v60 = vpop.f32.mrf.mxu2  ;;  %v5905_v22 = vld [vmem:[#allocation31_spill] sm:$0xff] }
 0x22a   :  { %3350 = vmatpush.msra.mxu2 %v225_v58  ;;  %v2487_v41 = vmul.f32 %v1935_v60, %v5905_v22 }
 0x22b   :  { %3351 = vmatpush.msra.mxu3 %v225_v58  ;;  %v2462_v58 = vmul.f32 %v5907_v24, %v5906_v7  ;;  %v5913_v24 = vld [vmem:[#allocation45_spill] sm:$0xff] }
 0x22c   :  { %3260 = vmatmul.msk.f32.vlgmr.msrb.gmra.mxu3 %vm635_vm0, %v210_v45  ;;  %3264 = vmatmul.msk.f32.vlgmr.msrb.gmra.mxu2 %vm635_vm0, %v214_v12  ;;  %v2551_v2 = vmax.f32 %v2487_v41, 0.0  ;;  %v5909_v12 = vld [vmem:[#allocation35_spill] sm:$0xff]  ;;  %v5912_v41 = vld [vmem:[#allocation34_spill] sm:$0xff] }
 0x22d   :  { %3266 = vmatmul.msk.f32.vlgmr.msrb.gmra.mxu1 %vm233_vm1, %v2524_v25  ;;  %3352 = vmatpush.msra.mxu2 %v224_v20  ;;  %v2526_v15 = vmax.f32 %v2462_v58, 0.0  ;;  %v2488_v25 = vmul.f32 %v1961_v3, %v5909_v12  ;;  %v2489_v7 = vmul.f32 %v1964_v35, %v5912_v41  ;;  %v5914_v3 = vld [vmem:[#allocation10_spill] sm:$0xff]  ;;  %v5917_v12 = vld [vmem:[#allocation9_spill] sm:$0xff]  ;;  %v5921_v41 = vld [vmem:[#allocation12_spill] sm:$0xff] }
 0x22e   :  { %3353 = vmatpush.msra.mxu3 %v224_v20 }
 0x22f   :  { %v5483_v43 = vpop.f32.mrf.mxu3 }
 0x231   :  { %v2019_v45 = vpop.f32.mrf.mxu2 }
 0x234   :  { %3261 = vmatmul.msk.f32.gmra.mxu3 %vm635_vm0, %v211_v51  ;;  %3265 = vmatmul.msk.f32.gmra.mxu2 %vm635_vm0, %v215_v62  ;;  %v2463_v51 = vmul.f32 %v5016_v26, %v5911_v48  ;;  %v2552_v62 = vmax.f32 %v2488_v25, 0.0  ;;  %v5918_v25 = vld [vmem:[#allocation55_spill] sm:$0xff] }
 0x235   :  { %3267 = vmatmul.msk.f32.gmra.mxu1 %vm233_vm1, %v2525_v42  ;;  %v2465_v35 = vmul.f32 %v5918_v25, %v5917_v12  ;;  %v5926_v12 = vld [vmem:[#allocation54_spill] sm:$0xff] }
 0x236   :  { %v2527_v60 = vmax.f32 %v2463_v51, 0.0 }
 0x237   :  { %v2051_v20 = vpop.f32.mrf.mxu3 }
 0x238   :  { %v2495_v32 = vmul.f32 %v2051_v20, %v5908_v5  ;;  %v5915_v20 = vld [vmem:[#allocation50_spill] sm:$0xff] }
 0x239   :  { %v2077_v13 = vpop.f32.mrf.mxu1  ;;  %v2464_v5 = vmul.f32 %v5915_v20, %v5914_v3 }
 0x23a   :  { %v2559_v40 = vmax.f32 %v2495_v32, 0.0  ;;  %v2496_v55 = vmul.f32 %v2077_v13, %v5910_v28  ;;  %v2022_v32 = vpop.f32.mrf.mxu2  ;;  %v2553_v13 = vmax.f32 %v2489_v7, 0.0  ;;  %v5922_v7 = vld [vmem:[#allocation56_spill] sm:$0xff] }
 0x23c   :  { %3293 = vmatmul.msk.f32.vlgmr.msra.gmra.mxu2 %vm233_vm1, %v2551_v2  ;;  %3301 = vmatmul.msk.f32.vlgmr.msra.gmra.mxu3 %vm233_vm1, %v2559_v40  ;;  %v2560_v42 = vmax.f32 %v2496_v55, 0.0  ;;  %v2528_v2 = vmax.f32 %v2464_v5, 0.0  ;;  %v5916_v40 = vld [vmem:[#allocation37_spill] sm:$0xff]  ;;  %v5919_v55 = vld [vmem:[#allocation47_spill] sm:$0xff] }
 0x23d   :  { %3268 = vmatmul.msk.f32.gmra.mxu1 %vm233_vm1, %v2526_v15  ;;  %v2490_v15 = vmul.f32 %v1990_v9, %v5916_v40  ;;  %v2466_v9 = vmul.f32 %v5922_v7, %v5921_v41  ;;  %v5925_v40 = vld [vmem:[#allocation11_spill] sm:$0xff] }
 0x23f   :  { %v2554_v51 = vmax.f32 %v2490_v15, 0.0 }
 0x241   :  { %v2080_v22 = vpop.f32.mrf.mxu1 }
 0x242   :  { %v2497_v58 = vmul.f32 %v2080_v22, %v5913_v24 }
 0x244   :  { %3294 = vmatmul.msk.f32.gmra.mxu2 %vm233_vm1, %v2552_v62  ;;  %3302 = vmatmul.msk.f32.gmra.mxu3 %vm233_vm1, %v2560_v42  ;;  %v2561_v26 = vmax.f32 %v2497_v58, 0.0  ;;  %v2529_v42 = vmax.f32 %v2465_v35, 0.0  ;;  %v5923_v58 = vld [vmem:[#allocation46_spill] sm:$0xff] }
 0x245   :  { %3269 = vmatmul.msk.f32.gmra.mxu1 %vm233_vm1, %v2527_v60  ;;  %v5920_v60 = vld [vmem:[#allocation36_spill] sm:$0xff] }
 0x246   :  { %v2491_v22 = vmul.f32 %v1993_v49, %v5920_v60  ;;  %v2467_v49 = vmul.f32 %v4991_v33, %v5925_v40  ;;  %v5929_v60 = vld [vmem:[#allocation51_spill] sm:$0xff] }
 0x247   :  { %v5933_v40 = vld [vmem:[#allocation59_spill] sm:$0xff] }
 0x248   :  { %v2555_v20 = vmax.f32 %v2491_v22, 0.0 }
 0x24c   :  { %3295 = vmatmul.msk.f32.gmra.mxu2 %vm233_vm1, %v2553_v13  ;;  %3303 = vmatmul.msk.f32.gmra.mxu3 %vm233_vm1, %v2561_v26  ;;  %v2530_v13 = vmax.f32 %v2466_v9, 0.0  ;;  %v5924_v26 = vld [vmem:[#allocation39_spill] sm:$0xff] }
 0x24d   :  { %3270 = vmatmul.msk.f32.gmra.mxu1 %vm233_vm1, %v2528_v2  ;;  %v2492_v2 = vmul.f32 %v2019_v45, %v5924_v26 }
 0x24f   :  { %v2106_v28 = vpop.f32.mrf.mxu2  ;;  %v2556_v35 = vmax.f32 %v2492_v2, 0.0 }
 0x250   :  { %v2498_v48 = vmul.f32 %v2106_v28, %v5919_v55  ;;  %v2531_v55 = vmax.f32 %v2467_v49, 0.0 }
 0x252   :  { %v2562_v62 = vmax.f32 %v2498_v48, 0.0  ;;  %v5927_v48 = vld [vmem:[#allocation38_spill] sm:$0xff] }
 0x254   :  { %3296 = vmatmul.msk.f32.gmra.mxu2 %vm233_vm1, %v2554_v51  ;;  %3304 = vmatmul.msk.f32.gmra.mxu3 %vm233_vm1, %v2562_v62  ;;  %v2493_v51 = vmul.f32 %v2022_v32, %v5927_v48  ;;  %v5928_v62 = vld [vmem:[#allocation14_spill] sm:$0xff] }
 0x255   :  { %3271 = vmatmul.msk.f32.gmra.mxu1 %vm233_vm1, %v2529_v42  ;;  %v2468_v45 = vmul.f32 %v5091_v10, %v5928_v62  ;;  %v5931_v32 = vld [vmem:[#allocation58_spill] sm:$0xff] }
 0x256   :  { %v2557_v41 = vmax.f32 %v2493_v51, 0.0 }
 0x257   :  { %v2109_v24 = vpop.f32.mrf.mxu2  ;;  %v2532_v9 = vmax.f32 %v2468_v45, 0.0 }
 0x258   :  { %v2499_v3 = vmul.f32 %v2109_v24, %v5923_v58  ;;  %v5930_v24 = vld [vmem:[#allocation42_spill] sm:$0xff] }
 0x259   :  { %v2494_v58 = vmul.f32 %v5483_v43, %v5930_v24 }
 0x25a   :  { %v2563_v5 = vmax.f32 %v2499_v3, 0.0 }
 0x25c   :  { %3297 = vmatmul.msk.f32.gmra.mxu2 %vm233_vm1, %v2555_v20  ;;  %3305 = vmatmul.msk.f32.gmra.mxu3 %vm233_vm1, %v2563_v5  ;;  %v5932_v20 = vld [vmem:[#allocation13_spill] sm:$0xff] }
 0x25d   :  { %3272 = vmatmul.msk.f32.gmra.mxu1 %vm233_vm1, %v2530_v13  ;;  %v2469_v10 = vmul.f32 %v5231_v39, %v5932_v20  ;;  %v2558_v13 = vmax.f32 %v2494_v58, 0.0  ;;  %v5936_v39 = vld [vmem:[#allocation15_spill] sm:$0xff] }
 0x25f   :  { %v2135_v15 = vpop.f32.mrf.mxu3  ;;  %v2533_v2 = vmax.f32 %v2469_v10, 0.0 }
 0x260   :  { %v2500_v25 = vmul.f32 %v2135_v15, %v5926_v12  ;;  %v5934_v15 = vld [vmem:[#allocation16_spill] sm:$0xff] }
 0x261   :  { %v5935_v12 = vld [vmem:[#allocation60_spill] sm:$0xff] }
 0x262   :  { %v2564_v28 = vmax.f32 %v2500_v25, 0.0  ;;  %v2470_v43 = vmul.f32 %v5935_v12, %v5934_v15  ;;  %v5940_v15 = vld [vmem:[#allocation19_spill] sm:$0xff] }
 0x263   :  { %v2475_v12 = vmul.f32 %v5400_v19, %v5940_v15  ;;  %v5599_v19 = vld [vmem:[%s5751_s5] ss:$0 sm:$0xff]  ;;  %s3512_s5 = smov [#allocation2]  }
 0x264   :  { %3298 = vmatmul.msk.f32.gmra.mxu2 %vm233_vm1, %v2556_v35  ;;  %3306 = vmatmul.msk.f32.gmra.mxu3 %vm233_vm1, %v2564_v28  ;;  %v2534_v28 = vmax.f32 %v2470_v43, 0.0  ;;  %s3124_s3 = sshll.u32 %s3512_s5, 4  ;;  %s3125_s3 = int_to_ptr.vmem [resolvable:$true] %s3124_s3 }
 0x265   :  { %3273 = vmatmul.msk.f32.gmra.mxu1 %vm233_vm1, %v2531_v55  ;;  %v2471_v55 = vmul.f32 %v5067_v63, %v5936_v39  ;;  %v5941_v39 = vld [vmem:[#allocation61_spill] sm:$0xff] }
 0x267   :  { %v2138_v42 = vpop.f32.mrf.mxu3 }
 0x268   :  { %v2501_v33 = vmul.f32 %v2138_v42, %v5929_v60  ;;  %v2535_v42 = vmax.f32 %v2471_v55, 0.0  ;;  %v5937_v60 = vld [vmem:[#allocation18_spill] sm:$0xff] }
 0x269   :  { %v2164_v22 = vpop.f32.mrf.mxu1 }
 0x26a   :  { %v2565_v7 = vmax.f32 %v2501_v33, 0.0  ;;  %v2502_v3 = vmul.f32 %v2164_v22, %v5931_v32  ;;  %v2472_v33 = vmul.f32 %v5069_v44, %v5937_v60 }
 0x26c   :  { %3299 = vmatmul.msk.f32.gmra.mxu2 %vm233_vm1, %v2557_v41  ;;  %3307 = vmatmul.msk.f32.gmra.mxu3 %vm233_vm1, %v2565_v7  ;;  %v2566_v26 = vmax.f32 %v2502_v3, 0.0  ;;  %v2536_v63 = vmax.f32 %v2472_v33, 0.0 }
 0x26d   :  { %3274 = vmatmul.msk.f32.gmra.mxu1 %vm233_vm1, %v2532_v9 }
 0x271   :  { %v2167_v5 = vpop.f32.mrf.mxu1 }
 0x272   :  { %v2503_v49 = vmul.f32 %v2167_v5, %v5933_v40 }
 0x274   :  { %3300 = vmatmul.msk.f32.gmra.mxu2 %vm233_vm1, %v2558_v13  ;;  %3308 = vmatmul.msk.f32.gmra.mxu3 %vm233_vm1, %v2566_v26  ;;  %v2567_v35 = vmax.f32 %v2503_v49, 0.0 }
 0x275   :  { %3275 = vmatmul.msk.f32.gmra.mxu1 %vm233_vm1, %v2533_v2 }
 0x279   :  { %v2251_v25 = vpop.f32.mrf.mxu1 }
 0x27c   :  { %3309 = vmatmul.msk.f32.gmra.mxu3 %vm233_vm1, %v2567_v35 }
 0x27d   :  { %3276 = vmatmul.msk.f32.gmra.mxu1 %vm233_vm1, %v2534_v28 }
 0x27f   :  { %v2193_v48 = vpop.f32.mrf.mxu2 }
 0x280   :  { %v2504_v51 = vmul.f32 %v2193_v48, %v5179_v57  ;;  %v5938_v57 = vld [vmem:[#allocation17_spill] sm:$0xff]  ;;  %v5942_v48 = vld [vmem:[#allocation22_spill] sm:$0xff] }
 0x281   :  { %v2254_v62 = vpop.f32.mrf.mxu1  ;;  %v2473_v24 = vmul.f32 %v5216_v16, %v5938_v57 }
 0x282   :  { %v2568_v45 = vmax.f32 %v2504_v51, 0.0  ;;  %v2509_v55 = vmul.f32 %v2254_v62, %v5941_v39  ;;  %v2476_v51 = vmul.f32 %v5188_v36, %v5942_v48  ;;  %v5943_v62 = vld [vmem:[#allocation21_spill] sm:$0xff] }
 0x283   :  { %v2537_v10 = vmax.f32 %v2473_v24, 0.0 }
 0x284   :  { %3310 = vmatmul.msk.f32.gmra.mxu3 %vm233_vm1, %v2568_v45  ;;  %v2573_v45 = vmax.f32 %v2509_v55, 0.0  ;;  %v2540_v60 = vmax.f32 %v2476_v51, 0.0 }
 0x285   :  { %3277 = vmatmul.msk.f32.gmra.mxu1 %vm233_vm1, %v2535_v42 }
 0x287   :  { %v2196_v22 = vpop.f32.mrf.mxu2 }
 0x288   :  { %v2505_v41 = vmul.f32 %v2196_v22, %v5147_v47  ;;  %v5939_v47 = vld [vmem:[#allocation20_spill] sm:$0xff] }
 0x289   :  { %v2474_v5 = vmul.f32 %v5297_v30, %v5939_v47 }
 0x28a   :  { %v2569_v7 = vmax.f32 %v2505_v41, 0.0  ;;  %v5564_v9 = vpop.f32.mrf.mxu1  ;;  %v2477_v41 = vmul.f32 %v5269_v59, %v5943_v62 }
 0x28b   :  { %v2538_v49 = vmax.f32 %v2474_v5, 0.0 }
 0x28c   :  { %3311 = vmatmul.msk.f32.gmra.mxu3 %vm233_vm1, %v2569_v7 }
 0x28d   :  { %3278 = vmatmul.msk.f32.gmra.mxu1 %vm233_vm1, %v2536_v63 }
 0x28f   :  { %v2222_v58 = vpop.f32.mrf.mxu3  ;;  %v2280_v32 = vpop.f32.mrf.mxu2 }
 0x290   :  { %v2506_v3 = vmul.f32 %v2222_v58, %v5337_v8  ;;  %v2508_v8 = vmul.f32 %v2251_v25, %v4939_v17  ;;  %v2510_v36 = vmul.f32 %v2280_v32, %v5184_v29  ;;  %v2541_v58 = vmax.f32 %v2477_v41, 0.0  ;;  %v5944_v32 = vld [vmem:[#allocation24_spill] sm:$0xff] }
 0x291   :  { %v2478_v59 = vmul.f32 %v5271_v6, %v5944_v32 }
 0x292   :  { %v2570_v20 = vmax.f32 %v2506_v3, 0.0  ;;  %v5571_v44 = vpop.f32.mrf.mxu1  ;;  %v2572_v30 = vmax.f32 %v2508_v8, 0.0  ;;  %v2574_v57 = vmax.f32 %v2510_v36, 0.0 }
 0x294   :  { %3312 = vmatmul.msk.f32.gmra.mxu3 %vm233_vm1, %v2570_v20 }
 0x295   :  { %3279 = vmatmul.msk.f32.gmra.mxu1 %vm233_vm1, %v2537_v10 }
 0x297   :  { %v2225_v13 = vpop.f32.mrf.mxu3  ;;  %v2283_v26 = vpop.f32.mrf.mxu2 }
 0x298   :  { %v2507_v2 = vmul.f32 %v2225_v13, %v5315_v1  ;;  %v2539_v1 = vmax.f32 %v2475_v12, 0.0  ;;  %v2511_v29 = vmul.f32 %v2283_v26, %v5099_v54  ;;  %v5945_v26 = vld [vmem:[#allocation23_spill] sm:$0xff] }
 0x299   :  { %v2479_v6 = vmul.f32 %v5383_v4, %v5945_v26 }
 0x29a   :  { %v2571_v16 = vmax.f32 %v2507_v2, 0.0  ;;  %v5578_v40 = vpop.f32.mrf.mxu1  ;;  %v2575_v5 = vmax.f32 %v2511_v29, 0.0  ;;  %v2542_v2 = vmax.f32 %v2478_v59, 0.0 }
 0x29b   :  { %v2543_v51 = vmax.f32 %v2479_v6, 0.0 }
 0x29c   :  { %3313 = vmatmul.msk.f32.gmra.mxu3 %vm233_vm1, %v2571_v16 }
 0x29d   :  { %3280 = vmatmul.msk.f32.gmra.mxu1 %vm233_vm1, %v2538_v49 }
 0x29f   :  { %v2309_v43 = vpop.f32.mrf.mxu3  ;;  %v5585_v35 = vpop.f32.mrf.mxu2 }
 0x2a0   :  { %v2512_v54 = vmul.f32 %v2309_v43, %v5362_v18  ;;  %v5946_v43 = vld [vmem:[#allocation26_spill] sm:$0xff] }
 0x2a2   :  { %v5587_v28 = vpop.f32.mrf.mxu1 }
 0x2a4   :  { %3314 = vmatmul.msk.f32.gmra.mxu3 %vm233_vm1, %v2572_v30 }
 0x2a5   :  { %3281 = vmatmul.msk.f32.gmra.mxu1 %vm233_vm1, %v2539_v1  ;;  %v2576_v1 = vmax.f32 %v2512_v54, 0.0 }
 0x2a7   :  { %v2312_v17 = vpop.f32.mrf.mxu3  ;;  %v5594_v25 = vpop.f32.mrf.mxu2 }
 0x2a8   :  { %v2513_v4 = vmul.f32 %v2312_v17, %v5332_v52 }
 0x2aa   :  { %v2800_v42 = vpop.f32.mrf.mxu1  ;;  %v2577_v62 = vmax.f32 %v2513_v4, 0.0 }
 0x2ab   :  { %v2801_v33 = vadd.f32 %v5599_v19, %v2800_v42  ;;  %v2480_v42 = vmul.f32 %v5429_v27, %v5946_v43  ;;  %v5947_v27 = vld [vmem:[#allocation63_spill] sm:$0xff] }
 0x2ac   :  { %3315 = vmatmul.msk.f32.gmra.mxu3 %vm233_vm1, %v2573_v45  ;;  %v2514_v17 = vmul.f32 %v5564_v9, %v5947_v27 }
 0x2ad   :  { %v2992_v22 = vmax.f32 %v2801_v33, 0.0  ;;  %3282 = vmatmul.msk.f32.gmra.mxu1 %vm233_vm1, %v2540_v60 }
 0x2af   :  { %3056 = vst [vmem:[#allocation2] sm:$0xff] %v2992_v22  ;;  %v5607_v7 = vpop.f32.mrf.mxu3  ;;  %v5609_v63 = vpop.f32.mrf.mxu2 }
 0x2b2   :  { %v2803_v24 = vpop.f32.mrf.mxu1 }
 0x2b3   :  { %v2804_v3 = vadd.f32 %v5599_v19, %v2803_v24 }
 0x2b4   :  { %3316 = vmatmul.msk.f32.gmra.mxu3 %vm233_vm1, %v2574_v57 }
 0x2b5   :  { %v2993_v20 = vmax.f32 %v2804_v3, 0.0  ;;  %3283 = vmatmul.msk.f32.gmra.mxu1 %vm233_vm1, %v2541_v58  ;;  %v2544_v58 = vmax.f32 %v2480_v42, 0.0  ;;  %v5951_v42 = vld [vmem:[#allocation27_spill] sm:$0xff] }
 0x2b7   :  { %3057 = vst [vmem:[#allocation2 + $0x8] sm:$0xff] %v2993_v20  ;;  %v5617_v10 = vpop.f32.mrf.mxu3  ;;  %v5619_v47 = vpop.f32.mrf.mxu2  ;;  %v5948_v20 = vld [vmem:[#allocation25_spill] sm:$0xff] }
 0x2b8   :  { %v2481_v29 = vmul.f32 %v5454_v31, %v5948_v20  ;;  %v5949_v31 = vld [vmem:[#allocation62_spill] sm:$0xff] }
 0x2ba   :  { %v2806_v13 = vpop.f32.mrf.mxu1  ;;  %v2545_v26 = vmax.f32 %v2481_v29, 0.0 }
 0x2bb   :  { %v2807_v16 = vadd.f32 %v5599_v19, %v2806_v13 }
 0x2bc   :  { %3317 = vmatmul.msk.f32.gmra.mxu3 %vm233_vm1, %v2575_v5 }
 0x2bd   :  { %v2994_v49 = vmax.f32 %v2807_v16, 0.0  ;;  %3284 = vmatmul.msk.f32.gmra.mxu1 %vm233_vm1, %v2542_v2  ;;  %v2578_v2 = vmax.f32 %v2514_v17, 0.0 }
 0x2bf   :  { %3058 = vst [vmem:[#allocation2 + $0x10] sm:$0xff] %v2994_v49  ;;  %v2881_v8 = vpop.f32.mrf.mxu2  ;;  %v2905_v15 = vpop.f32.mrf.mxu3 }
 0x2c0   :  { %v2882_v12 = vadd.f32 %v5599_v19, %v2881_v8  ;;  %v2906_v30 = vadd.f32 %v5599_v19, %v2905_v15  ;;  %v2515_v8 = vmul.f32 %v5571_v44, %v5949_v31  ;;  %v5950_v15 = vld [vmem:[#allocation28_spill] sm:$0xff] }
 0x2c2   :  { %v3019_v39 = vmax.f32 %v2882_v12, 0.0  ;;  %v3027_v55 = vmax.f32 %v2906_v30, 0.0  ;;  %v2809_v48 = vpop.f32.mrf.mxu1  ;;  %v2482_v12 = vmul.f32 %v5369_v50, %v5950_v15  ;;  %v2516_v50 = vmul.f32 %v5585_v35, %v5239_v34  ;;  %v5952_v35 = vld [vmem:[#allocation30_spill] sm:$0xff] }
 0x2c3   :  { %v2810_v45 = vadd.f32 %v5599_v19, %v2809_v48  ;;  %v2579_v48 = vmax.f32 %v2515_v8, 0.0  ;;  %v2484_v27 = vmul.f32 %v5423_v53, %v5952_v35  ;;  %v2518_v53 = vmul.f32 %v5607_v7, %v5391_v38  ;;  %v5954_v7 = vld [vmem:[#allocation32_spill] sm:$0xff] }
 0x2c4   :  { %3083 = vst [vmem:[#allocation2 + $0xd8] sm:$0xff] %v3019_v39  ;;  %3318 = vmatmul.msk.f32.gmra.mxu3 %vm233_vm1, %v2576_v1  ;;  %v2546_v4 = vmax.f32 %v2482_v12, 0.0  ;;  %v2522_v35 = vmul.f32 %v5609_v63, %v5374_v23 }
 0x2c5   :  { %3091 = vst [vmem:[#allocation2 + $0x118] sm:$0xff] %v3027_v55  ;;  %v2995_v18 = vmax.f32 %v2810_v45, 0.0  ;;  %3285 = vmatmul.msk.f32.gmra.mxu1 %vm233_vm1, %v2543_v51  ;;  %v2582_v8 = vmax.f32 %v2518_v53, 0.0 }
 0x2c7   :  { %3059 = vst [vmem:[#allocation2 + $0x18] sm:$0xff] %v2995_v18  ;;  %v2884_v60 = vpop.f32.mrf.mxu2  ;;  %v2908_v33 = vpop.f32.mrf.mxu3 }
 0x2c8   :  { %v2885_v22 = vadd.f32 %v5599_v19, %v2884_v60  ;;  %v2909_v36 = vadd.f32 %v5599_v19, %v2908_v33  ;;  %v2483_v60 = vmul.f32 %v5421_v46, %v5951_v42  ;;  %v2517_v46 = vmul.f32 %v5594_v25, %v5222_v61  ;;  %v5953_v25 = vld [vmem:[#allocation29_spill] sm:$0xff] }
 0x2ca   :  { %v3020_v41 = vmax.f32 %v2885_v22, 0.0  ;;  %v3028_v57 = vmax.f32 %v2909_v36, 0.0  ;;  %v2812_v24 = vpop.f32.mrf.mxu1 }
 0x2cb   :  { %v2813_v3 = vadd.f32 %v5599_v19, %v2812_v24 }
 0x2cc   :  { %3084 = vst [vmem:[#allocation2 + $0xe0] sm:$0xff] %v3020_v41  ;;  %3319 = vmatmul.msk.f32.gmra.mxu3 %vm233_vm1, %v2577_v62  ;;  %v2580_v41 = vmax.f32 %v2516_v50, 0.0 }
 0x2cd   :  { %3092 = vst [vmem:[#allocation2 + $0x120] sm:$0xff] %v3028_v57  ;;  %v2996_v52 = vmax.f32 %v2813_v3, 0.0  ;;  %3286 = vmatmul.msk.f32.gmra.mxu1 %vm233_vm1, %v2544_v58  ;;  %v2547_v3 = vmax.f32 %v2483_v60, 0.0 }
 0x2cf   :  { %3060 = vst [vmem:[#allocation2 + $0x20] sm:$0xff] %v2996_v52  ;;  %v2887_v32 = vpop.f32.mrf.mxu2  ;;  %v2911_v59 = vpop.f32.mrf.mxu3 }
 0x2d0   :  { %v2888_v5 = vadd.f32 %v5599_v19, %v2887_v32  ;;  %v2912_v13 = vadd.f32 %v5599_v19, %v2911_v59  ;;  %v2581_v59 = vmax.f32 %v2517_v46, 0.0 }
 0x2d2   :  { %v3021_v16 = vmax.f32 %v2888_v5, 0.0  ;;  %v3029_v49 = vmax.f32 %v2912_v13, 0.0  ;;  %v2815_v54 = vpop.f32.mrf.mxu1 }
 0x2d3   :  { %v2816_v6 = vadd.f32 %v5599_v19, %v2815_v54  ;;  %v2485_v54 = vmul.f32 %v5452_v56, %v5953_v25  ;;  %v2519_v56 = vmul.f32 %v5617_v10, %v5367_v0 }
 0x2d4   :  { %3085 = vst [vmem:[#allocation2 + $0xe8] sm:$0xff] %v3021_v16  ;;  %3320 = vmatmul.msk.f32.gmra.mxu3 %vm233_vm1, %v2578_v2  ;;  %v2548_v16 = vmax.f32 %v2484_v27, 0.0 }
 0x2d5   :  { %3093 = vst [vmem:[#allocation2 + $0x128] sm:$0xff] %v3029_v49  ;;  %v2997_v9 = vmax.f32 %v2816_v6, 0.0  ;;  %3287 = vmatmul.msk.f32.gmra.mxu1 %vm233_vm1, %v2545_v26 }
 0x2d7   :  { %3061 = vst [vmem:[#allocation2 + $0x28] sm:$0xff] %v2997_v9  ;;  %v2890_v30 = vpop.f32.mrf.mxu2  ;;  %v2914_v1 = vpop.f32.mrf.mxu3 }
 0x2d8   :  { %v2891_v39 = vadd.f32 %v5599_v19, %v2890_v30  ;;  %v2915_v55 = vadd.f32 %v5599_v19, %v2914_v1  ;;  %v2549_v1 = vmax.f32 %v2485_v54, 0.0 }
 0x2da   :  { %v3022_v51 = vmax.f32 %v2891_v39, 0.0  ;;  %v3030_v45 = vmax.f32 %v2915_v55, 0.0  ;;  %v2818_v18 = vpop.f32.mrf.mxu1  ;;  %v2486_v55 = vmul.f32 %v5470_v37, %v5954_v7  ;;  %v2520_v37 = vmul.f32 %v5578_v40, %v5214_v21 }
 0x2db   :  { %v2819_v43 = vadd.f32 %v5599_v19, %v2818_v18 }
 0x2dc   :  { %3086 = vst [vmem:[#allocation2 + $0xf0] sm:$0xff] %v3022_v51  ;;  %3321 = vmatmul.msk.f32.gmra.mxu3 %vm233_vm1, %v2579_v48  ;;  %v2550_v42 = vmax.f32 %v2486_v55, 0.0 }
 0x2dd   :  { %3094 = vst [vmem:[#allocation2 + $0x130] sm:$0xff] %v3030_v45  ;;  %v2998_v44 = vmax.f32 %v2819_v43, 0.0  ;;  %3288 = vmatmul.msk.f32.gmra.mxu1 %vm233_vm1, %v2546_v4  ;;  %v2583_v4 = vmax.f32 %v2519_v56, 0.0 }
 0x2df   :  { %3062 = vst [vmem:[#allocation2 + $0x30] sm:$0xff] %v2998_v44  ;;  %v2893_v33 = vpop.f32.mrf.mxu2  ;;  %v2917_v22 = vpop.f32.mrf.mxu3 }
 0x2e0   :  { %v2894_v36 = vadd.f32 %v5599_v19, %v2893_v33  ;;  %v2918_v62 = vadd.f32 %v5599_v19, %v2917_v22  ;;  %v2584_v22 = vmax.f32 %v2520_v37, 0.0 }
 0x2e2   :  { %v3023_v57 = vmax.f32 %v2894_v36, 0.0  ;;  %v3031_v24 = vmax.f32 %v2918_v62, 0.0  ;;  %v2821_v58 = vpop.f32.mrf.mxu1 }
 0x2e3   :  { %v2822_v52 = vadd.f32 %v5599_v19, %v2821_v58 }
 0x2e4   :  { %3087 = vst [vmem:[#allocation2 + $0xf8] sm:$0xff] %v3023_v57  ;;  %3322 = vmatmul.msk.f32.gmra.mxu3 %vm233_vm1, %v2580_v41 }
 0x2e5   :  { %3095 = vst [vmem:[#allocation2 + $0x138] sm:$0xff] %v3031_v24  ;;  %v2999_v34 = vmax.f32 %v2822_v52, 0.0  ;;  %3289 = vmatmul.msk.f32.gmra.mxu1 %vm233_vm1, %v2547_v3  ;;  %v2521_v24 = vmul.f32 %v5587_v28, %v5166_v11  ;;  %v2586_v28 = vmax.f32 %v2522_v35, 0.0 }
 0x2e7   :  { %3063 = vst [vmem:[#allocation2 + $0x38] sm:$0xff] %v2999_v34  ;;  %v2896_v17 = vpop.f32.mrf.mxu2  ;;  %v2920_v20 = vpop.f32.mrf.mxu3  ;;  %v2585_v40 = vmax.f32 %v2521_v24, 0.0 }
 0x2e8   :  { %v2897_v29 = vadd.f32 %v5599_v19, %v2896_v17  ;;  %v2921_v32 = vadd.f32 %v5599_v19, %v2920_v20 }
 0x2ea   :  { %v3024_v5 = vmax.f32 %v2897_v29, 0.0  ;;  %v3032_v13 = vmax.f32 %v2921_v32, 0.0  ;;  %v2824_v2 = vpop.f32.mrf.mxu1 }
 0x2eb   :  { %v2825_v49 = vadd.f32 %v5599_v19, %v2824_v2 }
 0x2ec   :  { %3088 = vst [vmem:[#allocation2 + $0x100] sm:$0xff] %v3024_v5  ;;  %3323 = vmatmul.msk.f32.gmra.mxu3 %vm233_vm1, %v2581_v59  ;;  %v2523_v59 = vmul.f32 %v5619_v47, %v5341_v14 }
 0x2ed   :  { %3096 = vst [vmem:[#allocation2 + $0x140] sm:$0xff] %v3032_v13  ;;  %v3000_v61 = vmax.f32 %v2825_v49, 0.0  ;;  %3290 = vmatmul.msk.f32.gmra.mxu1 %vm233_vm1, %v2548_v16 }
 0x2ee   :  { %v2587_v63 = vmax.f32 %v2523_v59, 0.0 }
 0x2ef   :  { %3064 = vst [vmem:[#allocation2 + $0x40] sm:$0xff] %v3000_v61  ;;  %v2899_v26 = vpop.f32.mrf.mxu2  ;;  %v2923_v6 = vpop.f32.mrf.mxu3 }
 0x2f0   :  { %v2900_v9 = vadd.f32 %v5599_v19, %v2899_v26  ;;  %v2924_v31 = vadd.f32 %v5599_v19, %v2923_v6 }
 0x2f2   :  { %v3025_v15 = vmax.f32 %v2900_v9, 0.0  ;;  %v3033_v12 = vmax.f32 %v2924_v31, 0.0  ;;  %v2827_v30 = vpop.f32.mrf.mxu1 }
 0x2f3   :  { %v2828_v39 = vadd.f32 %v5599_v19, %v2827_v30 }
 0x2f4   :  { %3089 = vst [vmem:[#allocation2 + $0x108] sm:$0xff] %v3025_v15  ;;  %3324 = vmatmul.msk.f32.gmra.mxu3 %vm233_vm1, %v2582_v8 }
 0x2f5   :  { %3097 = vst [vmem:[#allocation2 + $0x148] sm:$0xff] %v3033_v12  ;;  %v3001_v38 = vmax.f32 %v2828_v39, 0.0  ;;  %3291 = vmatmul.msk.f32.gmra.mxu1 %vm233_vm1, %v2549_v1 }
 0x2f7   :  { %3065 = vst [vmem:[#allocation2 + $0x48] sm:$0xff] %v3001_v38  ;;  %v2902_v48 = vpop.f32.mrf.mxu2  ;;  %v2926_v51 = vpop.f32.mrf.mxu3 }
 0x2f8   :  { %v2903_v45 = vadd.f32 %v5599_v19, %v2902_v48  ;;  %v2927_v18 = vadd.f32 %v5599_v19, %v2926_v51 }
 0x2fa   :  { %v3026_v43 = vmax.f32 %v2903_v45, 0.0  ;;  %v3034_v44 = vmax.f32 %v2927_v18, 0.0  ;;  %v2830_v50 = vpop.f32.mrf.mxu1 }
 0x2fb   :  { %v2831_v60 = vadd.f32 %v5599_v19, %v2830_v50 }
 0x2fc   :  { %3090 = vst [vmem:[#allocation2 + $0x110] sm:$0xff] %v3026_v43  ;;  %3325 = vmatmul.msk.f32.gmra.mxu3 %vm233_vm1, %v2583_v4 }
 0x2fd   :  { %3098 = vst [vmem:[#allocation2 + $0x150] sm:$0xff] %v3034_v44  ;;  %v3002_v0 = vmax.f32 %v2831_v60, 0.0  ;;  %3292 = vmatmul.msk.f32.gmra.mxu1 %vm233_vm1, %v2550_v42 }
 0x2ff   :  { %3066 = vst [vmem:[#allocation2 + $0x50] sm:$0xff] %v3002_v0  ;;  %v2929_v10 = vpop.f32.mrf.mxu3 }
 0x300   :  { %v2930_v33 = vadd.f32 %v5599_v19, %v2929_v10 }
 0x302   :  { %v3035_v36 = vmax.f32 %v2930_v33, 0.0  ;;  %v2833_v62 = vpop.f32.mrf.mxu1 }
 0x303   :  { %v2834_v41 = vadd.f32 %v5599_v19, %v2833_v62 }
 0x304   :  { %3099 = vst [vmem:[#allocation2 + $0x158] sm:$0xff] %v3035_v36  ;;  %3326 = vmatmul.msk.f32.gmra.mxu3 %vm233_vm1, %v2584_v22 }
 0x305   :  { %v3003_v57 = vmax.f32 %v2834_v41, 0.0 }
 0x307   :  { %3067 = vst [vmem:[#allocation2 + $0x58] sm:$0xff] %v3003_v57  ;;  %v2932_v58 = vpop.f32.mrf.mxu3 }
 0x308   :  { %v2933_v21 = vadd.f32 %v5599_v19, %v2932_v58 }
 0x30a   :  { %v3036_v3 = vmax.f32 %v2933_v21, 0.0  ;;  %v2836_v52 = vpop.f32.mrf.mxu1 }
 0x30b   :  { %v2837_v34 = vadd.f32 %v5599_v19, %v2836_v52 }
 0x30c   :  { %3100 = vst [vmem:[#allocation2 + $0x160] sm:$0xff] %v3036_v3  ;;  %3327 = vmatmul.msk.f32.gmra.mxu3 %vm233_vm1, %v2585_v40 }
 0x30d   :  { %v3004_v46 = vmax.f32 %v2837_v34, 0.0 }
 0x30f   :  { %3068 = vst [vmem:[#allocation2 + $0x60] sm:$0xff] %v3004_v46  ;;  %v2935_v27 = vpop.f32.mrf.mxu3 }
 0x310   :  { %v2936_v11 = vadd.f32 %v5599_v19, %v2935_v27 }
 0x312   :  { %v3037_v17 = vmax.f32 %v2936_v11, 0.0  ;;  %v2839_v20 = vpop.f32.mrf.mxu1 }
 0x313   :  { %v2840_v29 = vadd.f32 %v5599_v19, %v2839_v20 }
 0x314   :  { %3101 = vst [vmem:[#allocation2 + $0x168] sm:$0xff] %v3037_v17  ;;  %3328 = vmatmul.msk.f32.gmra.mxu3 %vm233_vm1, %v2586_v28 }
 0x315   :  { %v3005_v32 = vmax.f32 %v2840_v29, 0.0 }
 0x317   :  { %3069 = vst [vmem:[#allocation2 + $0x68] sm:$0xff] %v3005_v32  ;;  %v2938_v5 = vpop.f32.mrf.mxu3 }
 0x318   :  { %v2939_v23 = vadd.f32 %v5599_v19, %v2938_v5 }
 0x31a   :  { %v3038_v13 = vmax.f32 %v2939_v23, 0.0  ;;  %v2842_v2 = vpop.f32.mrf.mxu1 }
 0x31b   :  { %v2843_v16 = vadd.f32 %v5599_v19, %v2842_v2 }
 0x31c   :  { %3102 = vst [vmem:[#allocation2 + $0x170] sm:$0xff] %v3038_v13  ;;  %3329 = vmatmul.msk.f32.gmra.mxu3 %vm233_vm1, %v2587_v63 }
 0x31d   :  { %v3006_v49 = vmax.f32 %v2843_v16, 0.0 }
 0x31f   :  { %3070 = vst [vmem:[#allocation2 + $0x70] sm:$0xff] %v3006_v49  ;;  %v2941_v61 = vpop.f32.mrf.mxu3 }
 0x320   :  { %v2942_v53 = vadd.f32 %v5599_v19, %v2941_v61 }
 0x322   :  { %v3039_v25 = vmax.f32 %v2942_v53, 0.0  ;;  %v2845_v54 = vpop.f32.mrf.mxu1 }
 0x323   :  { %v2846_v14 = vadd.f32 %v5599_v19, %v2845_v54 }
 0x324   :  { %3103 = vst [vmem:[#allocation2 + $0x178] sm:$0xff] %v3039_v25 }
 0x325   :  { %v3007_v47 = vmax.f32 %v2846_v14, 0.0 }
 0x327   :  { %3071 = vst [vmem:[#allocation2 + $0x78] sm:$0xff] %v3007_v47  ;;  %v2944_v26 = vpop.f32.mrf.mxu3 }
 0x328   :  { %v2945_v6 = vadd.f32 %v5599_v19, %v2944_v26 }
 0x32a   :  { %v3040_v9 = vmax.f32 %v2945_v6, 0.0  ;;  %v2848_v31 = vpop.f32.mrf.mxu1 }
 0x32b   :  { %v2849_v8 = vadd.f32 %v5599_v19, %v2848_v31 }
 0x32c   :  { %3104 = vst [vmem:[#allocation2 + $0x180] sm:$0xff] %v3040_v9 }
 0x32d   :  { %v3008_v15 = vmax.f32 %v2849_v8, 0.0 }
 0x32f   :  { %3072 = vst [vmem:[#allocation2 + $0x80] sm:$0xff] %v3008_v15  ;;  %v2947_v12 = vpop.f32.mrf.mxu3 }
 0x330   :  { %v2948_v30 = vadd.f32 %v5599_v19, %v2947_v12 }
 0x332   :  { %v3041_v1 = vmax.f32 %v2948_v30, 0.0  ;;  %v2851_v39 = vpop.f32.mrf.mxu1 }
 0x333   :  { %v2852_v38 = vadd.f32 %v5599_v19, %v2851_v39 }
 0x334   :  { %3105 = vst [vmem:[#allocation2 + $0x188] sm:$0xff] %v3041_v1 }
 0x335   :  { %v3009_v56 = vmax.f32 %v2852_v38, 0.0 }
 0x337   :  { %3073 = vst [vmem:[#allocation2 + $0x88] sm:$0xff] %v3009_v56  ;;  %v2950_v7 = vpop.f32.mrf.mxu3 }
 0x338   :  { %v2951_v55 = vadd.f32 %v5599_v19, %v2950_v7 }
 0x33a   :  { %v3042_v48 = vmax.f32 %v2951_v55, 0.0  ;;  %v2854_v51 = vpop.f32.mrf.mxu1 }
 0x33b   :  { %v2855_v45 = vadd.f32 %v5599_v19, %v2854_v51 }
 0x33c   :  { %3106 = vst [vmem:[#allocation2 + $0x190] sm:$0xff] %v3042_v48 }
 0x33d   :  { %v3010_v18 = vmax.f32 %v2855_v45, 0.0 }
 0x33f   :  { %3074 = vst [vmem:[#allocation2 + $0x90] sm:$0xff] %v3010_v18  ;;  %v2953_v4 = vpop.f32.mrf.mxu3 }
 0x340   :  { %v2954_v43 = vadd.f32 %v5599_v19, %v2953_v4 }
 0x342   :  { %v3043_v44 = vmax.f32 %v2954_v43, 0.0  ;;  %v2857_v50 = vpop.f32.mrf.mxu1 }
 0x343   :  { %v2858_v42 = vadd.f32 %v5599_v19, %v2857_v50 }
 0x344   :  { %3107 = vst [vmem:[#allocation2 + $0x198] sm:$0xff] %v3043_v44 }
 0x345   :  { %v3011_v60 = vmax.f32 %v2858_v42, 0.0 }
 0x347   :  { %3075 = vst [vmem:[#allocation2 + $0x98] sm:$0xff] %v3011_v60  ;;  %v2956_v0 = vpop.f32.mrf.mxu3 }
 0x348   :  { %v2957_v37 = vadd.f32 %v5599_v19, %v2956_v0 }
 0x34a   :  { %v3044_v10 = vmax.f32 %v2957_v37, 0.0  ;;  %v2860_v33 = vpop.f32.mrf.mxu1 }
 0x34b   :  { %v2861_v22 = vadd.f32 %v5599_v19, %v2860_v33 }
 0x34c   :  { %3108 = vst [vmem:[#allocation2 + $0x1a0] sm:$0xff] %v3044_v10 }
 0x34d   :  { %v3012_v36 = vmax.f32 %v2861_v22, 0.0 }
 0x34f   :  { %3076 = vst [vmem:[#allocation2 + $0xa0] sm:$0xff] %v3012_v36  ;;  %v2959_v62 = vpop.f32.mrf.mxu3 }
 0x350   :  { %v2960_v41 = vadd.f32 %v5599_v19, %v2959_v62 }
 0x352   :  { %v3045_v57 = vmax.f32 %v2960_v41, 0.0  ;;  %v2863_v24 = vpop.f32.mrf.mxu1 }
 0x353   :  { %v2864_v58 = vadd.f32 %v5599_v19, %v2863_v24 }
 0x354   :  { %3109 = vst [vmem:[#allocation2 + $0x1a8] sm:$0xff] %v3045_v57 }
 0x355   :  { %v3013_v21 = vmax.f32 %v2864_v58, 0.0 }
 0x357   :  { %3077 = vst [vmem:[#allocation2 + $0xa8] sm:$0xff] %v3013_v21  ;;  %v2962_v40 = vpop.f32.mrf.mxu3 }
 0x358   :  { %v2963_v3 = vadd.f32 %v5599_v19, %v2962_v40 }
 0x35a   :  { %v3046_v52 = vmax.f32 %v2963_v3, 0.0  ;;  %v2866_v34 = vpop.f32.mrf.mxu1 }
 0x35b   :  { %v2867_v46 = vadd.f32 %v5599_v19, %v2866_v34 }
 0x35c   :  { %3110 = vst [vmem:[#allocation2 + $0x1b0] sm:$0xff] %v3046_v52 }
 0x35d   :  { %v3014_v35 = vmax.f32 %v2867_v46, 0.0 }
 0x35f   :  { %3078 = vst [vmem:[#allocation2 + $0xb0] sm:$0xff] %v3014_v35  ;;  %v2965_v27 = vpop.f32.mrf.mxu3 }
 0x360   :  { %v2966_v11 = vadd.f32 %v5599_v19, %v2965_v27 }
 0x362   :  { %v3047_v28 = vmax.f32 %v2966_v11, 0.0  ;;  %v2869_v17 = vpop.f32.mrf.mxu1 }
 0x363   :  { %v2870_v20 = vadd.f32 %v5599_v19, %v2869_v17 }
 0x364   :  { %3111 = vst [vmem:[#allocation2 + $0x1b8] sm:$0xff] %v3047_v28 }
 0x365   :  { %v3015_v29 = vmax.f32 %v2870_v20, 0.0 }
 0x367   :  { %3079 = vst [vmem:[#allocation2 + $0xb8] sm:$0xff] %v3015_v29  ;;  %v2968_v32 = vpop.f32.mrf.mxu3 }
 0x368   :  { %v2969_v59 = vadd.f32 %v5599_v19, %v2968_v32 }
 0x36a   :  { %v3048_v5 = vmax.f32 %v2969_v59, 0.0  ;;  %v2872_v23 = vpop.f32.mrf.mxu1 }
 0x36b   :  { %v2873_v63 = vadd.f32 %v5599_v19, %v2872_v23 }
 0x36c   :  { %3112 = vst [vmem:[#allocation2 + $0x1c0] sm:$0xff] %v3048_v5 }
 0x36d   :  { %v3016_v13 = vmax.f32 %v2873_v63, 0.0 }
 0x36f   :  { %3080 = vst [vmem:[#allocation2 + $0xc0] sm:$0xff] %v3016_v13  ;;  %v2971_v2 = vpop.f32.mrf.mxu3 }
 0x370   :  { %v2972_v16 = vadd.f32 %v5599_v19, %v2971_v2 }
 0x372   :  { %v3049_v49 = vmax.f32 %v2972_v16, 0.0  ;;  %v2875_v61 = vpop.f32.mrf.mxu1 }
 0x373   :  { %v2876_v53 = vadd.f32 %v5599_v19, %v2875_v61 }
 0x374   :  { %3113 = vst [vmem:[#allocation2 + $0x1c8] sm:$0xff] %v3049_v49 }
 0x375   :  { %v3017_v25 = vmax.f32 %v2876_v53, 0.0 }
 0x377   :  { %3081 = vst [vmem:[#allocation2 + $0xc8] sm:$0xff] %v3017_v25  ;;  %v2974_v54 = vpop.f32.mrf.mxu3 }
 0x378   :  { %v2975_v14 = vadd.f32 %v5599_v19, %v2974_v54 }
 0x37a   :  { %v3050_v47 = vmax.f32 %v2975_v14, 0.0  ;;  %v2878_v26 = vpop.f32.mrf.mxu1 }
 0x37b   :  { %v2879_v6 = vadd.f32 %v5599_v19, %v2878_v26 }
 0x37c   :  { %3114 = vst [vmem:[#allocation2 + $0x1d0] sm:$0xff] %v3050_v47 }
 0x37d   :  { %v3018_v9 = vmax.f32 %v2879_v6, 0.0 }
 0x37f   :  { %3082 = vst [vmem:[#allocation2 + $0xd0] sm:$0xff] %v3018_v9  ;;  %v2977_v31 = vpop.f32.mrf.mxu3 }
 0x380   :  { %v2978_v8 = vadd.f32 %v5599_v19, %v2977_v31 }
 0x382   :  { %v3051_v15 = vmax.f32 %v2978_v8, 0.0 }
 0x384   :  { %3115 = vst [vmem:[#allocation2 + $0x1d8] sm:$0xff] %v3051_v15 }
 0x387   :  { %v2980_v12 = vpop.f32.mrf.mxu3 }
 0x388   :  { %v2981_v30 = vadd.f32 %v5599_v19, %v2980_v12 }
 0x38a   :  { %v3052_v1 = vmax.f32 %v2981_v30, 0.0 }
 0x38c   :  { %3116 = vst [vmem:[#allocation2 + $0x1e0] sm:$0xff] %v3052_v1 }
 0x38f   :  { %v2983_v39 = vpop.f32.mrf.mxu3 }
 0x390   :  { %v2984_v38 = vadd.f32 %v5599_v19, %v2983_v39 }
 0x392   :  { %v3053_v56 = vmax.f32 %v2984_v38, 0.0 }
 0x394   :  { %3117 = vst [vmem:[#allocation2 + $0x1e8] sm:$0xff] %v3053_v56 }
 0x397   :  { %v2986_v7 = vpop.f32.mrf.mxu3 }
 0x398   :  { %v2987_v55 = vadd.f32 %v5599_v19, %v2986_v7 }
 0x39a   :  { %v3054_v48 = vmax.f32 %v2987_v55, 0.0 }
 0x39c   :  { %3118 = vst [vmem:[#allocation2 + $0x1f0] sm:$0xff] %v3054_v48 }
 0x39f   :  { %v2989_v51 = vpop.f32.mrf.mxu3 }
 0x3a0   :  { %v2990_v45 = vadd.f32 %v5599_v19, %v2989_v51 }
 0x3a2   :  { %v3055_v18 = vmax.f32 %v2990_v45, 0.0 }
 0x3a4   :  { %3119 = vst [vmem:[#allocation2 + $0x1f8] sm:$0xff] %v3055_v18 }
 0x3a5   :  { %3132 = dma.vmem_to_hbm [thread:$0]  %s3125_s3, 8192, %s3127_s7, [#allocation3], %s3513_s8, %s3513_s8, %s3514_s9  }
 0x3a6   :  { %3510 = dma.done.wait [#allocation3], 8192  }
 0x3a7   :  { %3511 = vsyncadd [#allocation3], 4294959104 }
 0x3a8   :  { %3137 = vsyncpa [#allocation3], 1 }

</bundles_post_ra>
